<compile_context>
chip_gen: v6e
topology: v6e:2x2x1
jax: 0.10.0
libtpu: 0.0.40
codegen_flags: <defaults>
</compile_context>

<pallas_src>
import jax
import jax.numpy as jnp
from jax.experimental import pallas as pl
from jax.experimental.pallas import tpu as pltpu


def _to_float_kernel(x_ref, o_ref):
    # Elementwise cast on the VPU: whole tile at once (no extra VPU work so the
    # store slot / HBM DMA, not VALU, remains the limiter).
    o_ref[...] = x_ref[...].astype(jnp.float32)


_SUBLANE = 32                    # multiple of sublane packing for f32/bf16/int8
_FASTPATH_BYTES = 1 << 20        # below ~1 MiB of total HBM traffic: plain astype
_VMEM_BUDGET = 8 * 1024 * 1024   # double-buffered (in+out) VMEM budget per step


def to_float(x):
    """Pallas equivalent of ToFloat.forward: cast any-dtype array to float32."""
    orig_shape = x.shape
    n = x.size
    itemsize = jnp.dtype(x.dtype).itemsize

    # Fast path: empty / tiny inputs — launch + DMA setup dwarfs the cast.
    if n == 0 or n * (itemsize + 4) < _FASTPATH_BYTES:
        return x.astype(jnp.float32)

    # Widest lane-dense last dim (multiple of 128) that divides n exactly, so the
    # common aligned case avoids any padding copy.
    lanes = 128
    for cand in (4096, 2048, 1024, 512, 256):
        if n % cand == 0:
            lanes = cand
            break

    flat = x.reshape(-1)
    padded = (n % lanes) != 0
    if padded:
        # Tiny pad only up to the next lane multiple (not a full block).
        n_pad = pl.cdiv(n, lanes) * lanes
        flat = jnp.concatenate([flat, jnp.zeros((n_pad - n,), dtype=x.dtype)])
    else:
        n_pad = n

    rows = n_pad // lanes
    x2d = flat.reshape(rows, lanes)

    # Row tiling:
    #  (a) double-buffered in+out block stays within _VMEM_BUDGET,
    #  (b) block is multi-MiB to amortize per-step pipeline overhead,
    #  (c) grid has >= 2 steps when rows allow it (v7x megacore sharding),
    #  (d) row_tile is a multiple of 32 (packed-dtype sublane tile) unless the
    #      whole array fits in one block (full-dim block is always legal).
    if rows <= 2 * _SUBLANE:
        row_tile = rows
    else:
        db_bytes_per_elem = 2 * (itemsize + 4)  # in + f32 out, double-buffered
        max_rows_vmem = max(
            _SUBLANE,
            (_VMEM_BUDGET // db_bytes_per_elem // lanes) // _SUBLANE * _SUBLANE,
        )
        half_rows = pl.cdiv(pl.cdiv(rows, 2), _SUBLANE) * _SUBLANE
        row_tile = min(max_rows_vmem, half_rows, rows)

    grid = (pl.cdiv(rows, row_tile),)

    out2d = pl.pallas_call(
        _to_float_kernel,
        out_shape=jax.ShapeDtypeStruct((rows, lanes), jnp.float32),
        grid_spec=pltpu.PrefetchScalarGridSpec(
            num_scalar_prefetch=0,
            grid=grid,
            in_specs=[pl.BlockSpec((row_tile, lanes), lambda i: (i, 0))],
            out_specs=pl.BlockSpec((row_tile, lanes), lambda i: (i, 0)),
        ),
        compiler_params=pltpu.CompilerParams(
            dimension_semantics=("parallel",),
            vmem_limit_bytes=32 * 1024 * 1024,
        ),
        cost_estimate=pl.CostEstimate(
            flops=0,
            transcendentals=0,
            bytes_accessed=n_pad * (itemsize + 4),
        ),
    )(x2d)

    if padded:
        return out2d.reshape(-1)[:n].reshape(orig_shape)
    return out2d.reshape(orig_shape)


if __name__ == "__main__":
    key = jax.random.PRNGKey(0)
    k1, k2, k3 = jax.random.split(key, 3)

    # 1) Tiny NCHW NLE-style observation (uint8) — exercises the fast path.
    x_small = jax.random.randint(k1, (2, 4, 16, 16), 0, 256, dtype=jnp.int32)
    x_small = x_small.astype(jnp.uint8)
    y_small = jax.block_until_ready(to_float(x_small))
    assert y_small.dtype == jnp.float32 and y_small.shape == x_small.shape
    assert jnp.array_equal(y_small, x_small.astype(jnp.float32))

    # 2) Larger aligned uint8 batch — exercises the Pallas kernel, no padding,
    #    lanes=4096, grid of >= 2 steps (megacore-friendly on v7x).
    x_big = jax.random.randint(k2, (8, 32, 64, 64), 0, 256, dtype=jnp.int32)
    x_big = x_big.astype(jnp.uint8)
    y_big = jax.block_until_ready(to_float(x_big))
    assert y_big.dtype == jnp.float32 and y_big.shape == x_big.shape
    assert jnp.array_equal(y_big, x_big.astype(jnp.float32))

    # 3) Non-128-aligned float32 input — exercises the tiny-pad + partial
    #    trailing block path.
    x_odd = jax.random.normal(k3, (5, 7, 93, 129), dtype=jnp.float32)
    y_odd = jax.block_until_ready(to_float(x_odd))
    assert y_odd.dtype == jnp.float32 and y_odd.shape == x_odd.shape
    assert jnp.array_equal(y_odd, x_odd.astype(jnp.float32))

    print("KERNEL_OK")
</pallas_src>

<mosaic_0001>
module attributes {stable_mosaic.version = 11 : i64} {
  func.func @_to_float_kernel(%arg0: i32, %arg1: memref<128x4096xi8, #tpu.memory_space<vmem>>, %arg2: memref<128x4096xf32, #tpu.memory_space<vmem>>) attributes {dimension_semantics = [#tpu.dimension_semantics<parallel>], iteration_bounds = array<i64: 2>, scalar_prefetch = 0 : i64, scratch_operands = 0 : i64, tpu.core_type = #tpu.core_type<tc>, window_params = [{transform_indices = @transform_0, window_bounds = array<i64: 128, 4096>}, {transform_indices = @transform_1, window_bounds = array<i64: 128, 4096>}]} {
    %c0 = arith.constant 0 : index
    %c0_0 = arith.constant 0 : index
    %0 = vector.load %arg1[%c0, %c0_0] : memref<128x4096xi8, #tpu.memory_space<vmem>>, vector<128x4096xi8>
    %1 = arith.uitofp %0 : vector<128x4096xi8> to vector<128x4096xf32>
    %c0_1 = arith.constant 0 : index
    %c0_2 = arith.constant 0 : index
    %2 = vector.load %arg2[%c0_1, %c0_2] : memref<128x4096xf32, #tpu.memory_space<vmem>>, vector<128x4096xf32>
    tpu.vector_store %arg2[%c0_1, %c0_2], %1 {strides = array<i32>} : memref<128x4096xf32, #tpu.memory_space<vmem>>, vector<128x4096xf32>,
    return
  }
  func.func @transform_0(%arg0: i32) -> (i32, i32) {
    %c0_i32 = arith.constant 0 : i32
    %c0_i32_0 = arith.constant 0 : i32
    return %arg0, %c0_i32 : i32, i32
  }
  func.func @transform_1(%arg0: i32) -> (i32, i32) {
    %c0_i32 = arith.constant 0 : i32
    %c0_i32_0 = arith.constant 0 : i32
    return %arg0, %c0_i32 : i32, i32
  }
}

</mosaic_0001>

<bundles_post_ra>
// kernel: tpu_custom_call.1
= control target key start
LH: loop header
LB: loop body
LE: loop exit
PB: predicated region body
PF: predicated region fallthrough
CT: control target
= control target key end

     0   :  { %6 = vsyncpa [#allocation3], 0  ;;  %s4156_s0 = inlined_call_operand.hbm [shape: u8[256,4096], index: 0, kind: input, shape index: {}]   ;;  %s4157_s1 = inlined_call_operand.hbm [shape: f32[256,4096], index: 1, kind: output, shape index: {}]  }
   0x1   :  { %8 = vsyncpa [#allocation3 + $0x1], 0 }
   0x2   :  { %9 = vsyncpa [#allocation4], 0 }
   0x3   :  { %11 = vsyncpa [#allocation4 + $0x1], 0  ;;  %s2582_s6 = smov 0   ;;  %s2584_s7 = smov 0  }
   0x4   :  { %s2586_s8 = smov 0   ;;  %s2588_s9 = smov 0  }
   0x5 LB: > { %s2603_s10 = sadd.s32 4294967295, %s2564_s9   ;;  %s2402_s11 = sadd.s32 4294967294, %s2564_s9   ;;  %s2564_s9 = sphi %s2588_s9, %s4172_s9   ;;  %s2560_s8 = sphi %s2586_s8, %s4171_s8   ;;  %s2556_s7 = sphi %s2584_s7, %s4170_s7   ;;  %s2552_s6 = sphi %s2582_s6, %s4169_s6  }
   0x6   : > { %s2607_s12 = sadd.s32 1, %s2564_s9   ;;  %s24_s13 = sadd.s32 1, %s2560_s8 }
   0x7   : > { %s21_s14 = ssub.s32 %s2564_s9, %s2607_s12  ;;  %p31_p0 = scmp.ne.s32.totalorder %s2560_s8, %s2556_s7 }
   0x8   : > { %p22_p1 = scmp.eq.s32.totalorder %s21_s14, 0  ;;  %p32_p2 = scmp.eq.s32.totalorder %s2564_s9, 0 }
   0x9   : > { %p37_p3 = scmp.ne.s32.totalorder %s2556_s7, %s2552_s6  ;;  %p38_p4 = scmp.eq.s32.totalorder %s2603_s10, 0 }
   0xa   : > { %s2619_s15 = scalar_select %p22_p1, %s2560_s8, %s24_s13  }
   0xb   : > { %p2621_p5 = por %p32_p2, %p31_p0  ;;  %p2625_p6 = por %p38_p4, %p37_p3 }
   0xc   : > { %p61_p7 = scmp.eq.s32.totalorder %s2603_s10, 1  ;;  %p67_p8 = scmp.eq.s32.totalorder %s2402_s11, 1 }
   0xd   : > { %s4161_s17 = scalar_select %p2625_p6, 1, 0 }
   0xe   : > { %p2434_p10 = scmp.lt.s32.totalorder %s2564_s9, 2  ;;  %p2632_p11 = por %p61_p7, %p31_p0 }
   0xf   : > { %p2636_p12 = por %p67_p8, %p37_p3  ;;  %s87_s20 = sand.u32 1, %s2560_s8  }
  0x10   : > { %s4162_s18 = scalar_select %p2632_p11, 1, 0 }
  0x11   : > { %s4163_s19 = scalar_select %p2636_p12, 1, 0 }
  0x12   : > { %s2419_s21 = sshll.u32 %s2564_s9, 14  ;;  %s2405_s22 = sshll.u32 %s87_s20, 10 }
  0x13   : > { %s2645_s25 = scalar_lea.hbm %s4156_s0, %s2419_s21  ;;  %s91_s26 = scalar_lea.vmem [#allocation2], %s2405_s22 }
  0x14   : > { %s99_s27 = sshll.u32 %s91_s26, 4  ;;  %p2649_p13 = pnand %p2434_p10, %p2621_p5  ;;  %s2653_s27 = int_to_ptr.vmem [resolvable:$true] %s99_s27 }
  0x15   : > { %s2655_s29 = scalar_lea.sflag [#allocation3], %s87_s20  ;;  %s2472_s30 = scalar_lea.hbm %s2645_s25, 16384 }
  0x16   : > { %p2473_p0 = scmp.ne.s32.totalorder %s2645_s25, %s2472_s30  ;;  %p2474_p1 = pneg %p2649_p13 }
  0x17   : > { %s2477_s4 = scalar_lea.hbm %s4156_s0, 32768  ;;  %p2478_p4 = scmp.lt.s32.totalorder %s2645_s25, %s4156_s0 }
  0x18   : > { %p2475_p2 = pnand %p2474_p1, %p2473_p0  ;;  %p2479_p5 = scmp.lt.s32.totalorder %s2477_s4, %s2472_s30 }
  0x1a   : > { %p2476_p3 = pneg %p2475_p2  ;;  %p2480_p7 = por %p2479_p5, %p2478_p4 }
  0x1c   : > { %p2481_p8 = pnand %p2480_p7, %p2476_p3 }
  0x1e   : > { %2484 = shalt.err (!%p2481_p8)
}
  0x1f   : > { %s2485_s13 = scalar_lea.vmem %s2653_s27, 16384  ;;  %s2566_s14 = smov [#allocation2]  }
  0x20   : > { %p2486_p10 = scmp.ne.s32.totalorder %s2653_s27, %s2485_s13  ;;  %s2490_s16 = sshll.u32 %s2566_s14, 4  ;;  %s2491_s16 = int_to_ptr.vmem [resolvable:$false] %s2490_s16 }
  0x21   : > { %s2492_s20 = scalar_lea.vmem %s2491_s16, 32768  ;;  %p2493_p2 = scmp.lt.s32.totalorder %s2653_s27, %s2491_s16 }
  0x22   : > { %p2488_p9 = pnand %p2486_p10, %p2474_p1  ;;  %p2494_p12 = scmp.lt.s32.totalorder %s2492_s20, %s2485_s13 }
  0x24   : > { %p2489_p0 = pneg %p2488_p9  ;;  %p2495_p11 = por %p2494_p12, %p2493_p2 }
  0x26   : > { %p2496_p6 = pnand %p2495_p11, %p2489_p0 }
  0x28   : > { %2499 = shalt.err (!%p2496_p6)
}
  0x29   : > { %s2567_s21 = smov 4096   ;;  %s2568_s22 = smov 256  }
  0x2a   : > { %2429 = dma.hbm_to_vmem [thread:$0]  (!%p2649_p13), %s2645_s25, 16384, %s2653_s27, %s2655_s29, %s2567_s21, %s2567_s21, %s2568_s22  }
  0x2b   : > { %p2409_p9 = scmp.ge.s32.totalorder %s2564_s9, 1  ;;  %p107_p1 = scmp.lt.s32.totalorder %s2564_s9, 3 }
  0x2d   : > { %p108_p3 = pnand %p2409_p9, %p107_p1 }
  0x2e   : > { %s2679_s23 = sand.u32 (!%p108_p3), 1, %s2556_s7   ;;  %p4165_p6 = scmp.ne.s32.totalorder (!%p108_p3), %s4161_s17, 0 }
  0x2f   : > { %111 = sbr.rel (%p108_p3) target bundleno = 455 (0x1c7), region = 24  ;;  %s2410_s24 = sshll.u32 (!%p108_p3), %s2679_s23, 10 }
  0x30   : > { %s114_s26 = scalar_lea.sflag (!%p108_p3), [#allocation3], %s2679_s23  ;;  %s2683_s30 = scalar_lea.vmem (!%p108_p3), [#allocation2], %s2410_s24 }
  0x34   : > { %2543 = dma.done.wait (%p4165_p6), %s114_s26, 16384  }
  0x35   : > { %2545 = vsyncadd (%p4165_p6), %s114_s26, 4294950912  ;;  %s2411_s25 = sshll.u32 %s2679_s23, 12  ;;  %v2691_v0 = vld [vmem:[%s2683_s30] sm:$0xff]  ;;  %v2694_v1 = vld [vmem:[%s2683_s30 + $0x8] sm:$0xff]  ;;  %s2421_s27 = sshll.u32 %s2603_s10, 16 }
  0x36   : > { %v2697_v2 = vld [vmem:[%s2683_s30 + $0x10] sm:$0xff]  ;;  %v266_v3 = vunpack.c.0.s8 %v2691_v0  ;;  %v267_v4 = vunpack.c.0.s8 %v2694_v1  ;;  %v2703_v6 = vld [vmem:[%s2683_s30 + $0x18] sm:$0xff]  ;;  %v2706_v7 = vld [vmem:[%s2683_s30 + $0x20] sm:$0xff]  ;;  %v298_v9 = vunpack.c.1.s8 %v2691_v0  ;;  %v299_v15 = vunpack.c.1.s8 %v2694_v1  ;;  %s2747_s17 = scalar_lea.vmem [#allocation5], %s2411_s25  ;;  %s4106_s10 = scalar_lea.hbm %s4157_s1, %s2421_s27 }
  0x37   : > { %v268_v5 = vunpack.c.0.s8 %v2697_v2  ;;  %v2709_v8 = vld [vmem:[%s2683_s30 + $0x28] sm:$0xff]  ;;  %v269_v10 = vunpack.c.0.s8 %v2703_v6  ;;  %v270_v11 = vunpack.c.0.s8 %v2706_v7  ;;  %v2716_v13 = vld [vmem:[%s2683_s30 + $0x30] sm:$0xff]  ;;  %v2719_v14 = vld [vmem:[%s2683_s30 + $0x38] sm:$0xff]  ;;  %s2329_s28 = sshll.u32 %s2747_s17, 4  ;;  %s2315_s3 = scalar_lea.sflag [#allocation4], %s2679_s23  ;;  %s4108_s28 = int_to_ptr.vmem [resolvable:$true] %s2329_s28 }
  0x38   : > { %v271_v12 = vunpack.c.0.s8 %v2709_v8  ;;  %v778_v16 = vand.u32 255, %v266_v3  ;;  %v779_v17 = vand.u32 255, %v267_v4  ;;  %v272_v19 = vunpack.c.0.s8 %v2716_v13  ;;  %v2725_v24 = vld [vmem:[%s2683_s30 + $0x40] sm:$0xff]  ;;  %v2728_v25 = vld [vmem:[%s2683_s30 + $0x48] sm:$0xff]  ;;  %v2731_v26 = vld [vmem:[%s2683_s30 + $0x50] sm:$0xff]  ;;  %s2500_s4 = scalar_lea.vmem %s4108_s28, 65536 }
  0x39   : > { %v780_v18 = vand.u32 255, %v268_v5  ;;  %v781_v20 = vand.u32 255, %v269_v10  ;;  %v782_v21 = vand.u32 255, %v270_v11  ;;  %v273_v23 = vunpack.c.0.s8 %v2719_v14  ;;  %v2734_v31 = vld [vmem:[%s2683_s30 + $0x58] sm:$0xff]  ;;  %v2737_v32 = vld [vmem:[%s2683_s30 + $0x60] sm:$0xff]  ;;  %v2740_v33 = vld [vmem:[%s2683_s30 + $0x68] sm:$0xff]  ;;  %p2501_p11 = scmp.ne.s32.totalorder %s4108_s28, %s2500_s4 }
  0x3a   : > { %v783_v22 = vand.u32 255, %v271_v12  ;;  %v1290_v27 = vcvt.s32.f32 %v778_v16  ;;  %v1291_v28 = vcvt.s32.f32 %v779_v17  ;;  %v784_v30 = vand.u32 255, %v272_v19  ;;  %v2743_v38 = vld [vmem:[%s2683_s30 + $0x70] sm:$0xff]  ;;  %v2756_v43 = vld [vmem:[%s2683_s30 + $0x78] sm:$0xff]  ;;  %v2769_v56 = vld [vmem:[%s2683_s30 + $0x80] sm:$0xff]  ;;  %p4166_p12 = scmp.ne.s32.totalorder %s4162_s18, 0 }
  0x3b   : > { %v1292_v29 = vcvt.s32.f32 %v780_v18  ;;  %v1293_v34 = vcvt.s32.f32 %v781_v20  ;;  %v1294_v35 = vcvt.s32.f32 %v782_v21  ;;  %v785_v37 = vand.u32 255, %v273_v23  ;;  %v2772_v57 = vld [vmem:[%s2683_s30 + $0x88] sm:$0xff]  ;;  %v2775_v58 = vld [vmem:[%s2683_s30 + $0x90] sm:$0xff]  ;;  %v2778_v63 = vld [vmem:[%s2683_s30 + $0x98] sm:$0xff]  ;;  %s2569_s5 = smov [#allocation5]  }
  0x3c   : > { %v1295_v36 = vcvt.s32.f32 %v783_v22  ;;  %1802 = vst [vmem:[%s2747_s17] sm:$0xff] %v1290_v27  ;;  %1803 = vst [vmem:[%s2747_s17 + $0x8] sm:$0xff] %v1291_v28  ;;  %v1296_v39 = vcvt.s32.f32 %v784_v30  ;;  %v274_v40 = vunpack.c.0.s8 %v2725_v24  ;;  %v275_v41 = vunpack.c.0.s8 %v2728_v25  ;;  %v2781_v3 = vld [vmem:[%s2683_s30 + $0xa0] sm:$0xff]  ;;  %v2784_v4 = vld [vmem:[%s2683_s30 + $0xa8] sm:$0xff]  ;;  %p2502_p13 = pnand %p2501_p11, %p4166_p12  ;;  %s2504_s11 = sshll.u32 %s2569_s5, 4  ;;  %s2505_s11 = int_to_ptr.vmem [resolvable:$false] %s2504_s11 }
  0x3d   : > { %1804 = vst [vmem:[%s2747_s17 + $0x10] sm:$0xff] %v1292_v29  ;;  %v276_v42 = vunpack.c.0.s8 %v2731_v26  ;;  %1805 = vst [vmem:[%s2747_s17 + $0x18] sm:$0xff] %v1293_v34  ;;  %v1297_v44 = vcvt.s32.f32 %v785_v37  ;;  %v277_v45 = vunpack.c.0.s8 %v2734_v31  ;;  %v278_v46 = vunpack.c.0.s8 %v2737_v32  ;;  %v2787_v16 = vld [vmem:[%s2683_s30 + $0xb0] sm:$0xff]  ;;  %v2796_v21 = vld [vmem:[%s2683_s30 + $0xb8] sm:$0xff]  ;;  %s2506_s13 = scalar_lea.vmem %s2505_s11, 131072  ;;  %p2507_p5 = scmp.lt.s32.totalorder %s4108_s28, %s2505_s11 }
  0x3e   : > { %1806 = vst [vmem:[%s2747_s17 + $0x20] sm:$0xff] %v1294_v35  ;;  %1807 = vst [vmem:[%s2747_s17 + $0x28] sm:$0xff] %v1295_v36  ;;  %v279_v47 = vunpack.c.0.s8 %v2740_v33  ;;  %v786_v48 = vand.u32 255, %v274_v40  ;;  %v787_v49 = vand.u32 255, %v275_v41  ;;  %v280_v51 = vunpack.c.0.s8 %v2743_v38  ;;  %v2809_v41 = vld [vmem:[%s2683_s30 + $0xc0] sm:$0xff]  ;;  %p2503_p4 = pneg %p2502_p13  ;;  %p2508_p7 = scmp.lt.s32.totalorder %s2506_s13, %s2500_s4 }
  0x3f   : > { %1808 = vst [vmem:[%s2747_s17 + $0x30] sm:$0xff] %v1296_v39  ;;  %v788_v50 = vand.u32 255, %v276_v42  ;;  %1809 = vst [vmem:[%s2747_s17 + $0x38] sm:$0xff] %v1297_v44  ;;  %v789_v52 = vand.u32 255, %v277_v45  ;;  %v790_v53 = vand.u32 255, %v278_v46  ;;  %v281_v55 = vunpack.c.0.s8 %v2756_v43  ;;  %v2812_v42 = vld [vmem:[%s2683_s30 + $0xc8] sm:$0xff] }
  0x40   : > { %v791_v54 = vand.u32 255, %v279_v47  ;;  %v1298_v59 = vcvt.s32.f32 %v786_v48  ;;  %v1299_v60 = vcvt.s32.f32 %v787_v49  ;;  %v792_v62 = vand.u32 255, %v280_v51  ;;  %v2815_v44 = vld [vmem:[%s2683_s30 + $0xd0] sm:$0xff]  ;;  %v2818_v49 = vld [vmem:[%s2683_s30 + $0xd8] sm:$0xff]  ;;  %v2824_v51 = vld [vmem:[%s2683_s30 + $0xe8] sm:$0xff]  ;;  %p2509_p8 = por %p2508_p7, %p2507_p5 }
  0x41   : > { %v1300_v61 = vcvt.s32.f32 %v788_v50  ;;  %v1301_v5 = vcvt.s32.f32 %v789_v52  ;;  %v1302_v10 = vcvt.s32.f32 %v790_v53  ;;  %v793_v12 = vand.u32 255, %v281_v55  ;;  %v2821_v50 = vld [vmem:[%s2683_s30 + $0xe0] sm:$0xff] }
  0x42   : > { %v1303_v11 = vcvt.s32.f32 %v791_v54  ;;  %1810 = vst [vmem:[%s2747_s17 + $0x40] sm:$0xff] %v1298_v59  ;;  %1811 = vst [vmem:[%s2747_s17 + $0x48] sm:$0xff] %v1299_v60  ;;  %v1304_v17 = vcvt.s32.f32 %v792_v62  ;;  %v282_v18 = vunpack.c.0.s8 %v2769_v56  ;;  %v283_v19 = vunpack.c.0.s8 %v2772_v57  ;;  %v2827_v59 = vld [vmem:[%s2683_s30 + $0xf0] sm:$0xff]  ;;  %p2510_p10 = pnand %p2509_p8, %p2503_p4 }
  0x43   : > { %1812 = vst [vmem:[%s2747_s17 + $0x50] sm:$0xff] %v1300_v61  ;;  %v284_v20 = vunpack.c.0.s8 %v2775_v58  ;;  %1813 = vst [vmem:[%s2747_s17 + $0x58] sm:$0xff] %v1301_v5  ;;  %v1305_v22 = vcvt.s32.f32 %v793_v12  ;;  %v285_v23 = vunpack.c.0.s8 %v2778_v63  ;;  %v286_v27 = vunpack.c.0.s8 %v2781_v3 }
  0x44   : > { %1814 = vst [vmem:[%s2747_s17 + $0x60] sm:$0xff] %v1302_v10  ;;  %1815 = vst [vmem:[%s2747_s17 + $0x68] sm:$0xff] %v1303_v11  ;;  %v287_v28 = vunpack.c.0.s8 %v2784_v4  ;;  %v794_v29 = vand.u32 255, %v282_v18  ;;  %v795_v30 = vand.u32 255, %v283_v19  ;;  %v288_v35 = vunpack.c.0.s8 %v2787_v16  ;;  %v2836_v10 = vld [vmem:[%s2683_s30 + $0xf8] sm:$0xff] }
  0x45   : > { %1816 = vst [vmem:[%s2747_s17 + $0x70] sm:$0xff] %v1304_v17  ;;  %v796_v34 = vand.u32 255, %v284_v20  ;;  %1817 = vst [vmem:[%s2747_s17 + $0x78] sm:$0xff] %v1305_v22  ;;  %v797_v36 = vand.u32 255, %v285_v23  ;;  %v798_v37 = vand.u32 255, %v286_v27  ;;  %v289_v40 = vunpack.c.0.s8 %v2796_v21 }
  0x46   : > { %v799_v39 = vand.u32 255, %v287_v28  ;;  %v1306_v45 = vcvt.s32.f32 %v794_v29  ;;  %v1307_v46 = vcvt.s32.f32 %v795_v30  ;;  %v800_v48 = vand.u32 255, %v288_v35 }
  0x47   : > { %v1308_v47 = vcvt.s32.f32 %v796_v34  ;;  %v1309_v52 = vcvt.s32.f32 %v797_v36  ;;  %v1310_v53 = vcvt.s32.f32 %v798_v37  ;;  %v801_v55 = vand.u32 255, %v289_v40 }
  0x48   : > { %v1311_v54 = vcvt.s32.f32 %v799_v39  ;;  %1818 = vst [vmem:[%s2747_s17 + $0x80] sm:$0xff] %v1306_v45  ;;  %1819 = vst [vmem:[%s2747_s17 + $0x88] sm:$0xff] %v1307_v46  ;;  %v1312_v60 = vcvt.s32.f32 %v800_v48  ;;  %v290_v61 = vunpack.c.0.s8 %v2809_v41  ;;  %v291_v62 = vunpack.c.0.s8 %v2812_v42 }
  0x49   : > { %1820 = vst [vmem:[%s2747_s17 + $0x90] sm:$0xff] %v1308_v47  ;;  %v292_v5 = vunpack.c.0.s8 %v2815_v44  ;;  %1821 = vst [vmem:[%s2747_s17 + $0x98] sm:$0xff] %v1309_v52  ;;  %v1313_v11 = vcvt.s32.f32 %v801_v55  ;;  %v293_v12 = vunpack.c.0.s8 %v2818_v49  ;;  %v294_v17 = vunpack.c.0.s8 %v2821_v50 }
  0x4a   : > { %1822 = vst [vmem:[%s2747_s17 + $0xa0] sm:$0xff] %v1310_v53  ;;  %1823 = vst [vmem:[%s2747_s17 + $0xa8] sm:$0xff] %v1311_v54  ;;  %v295_v18 = vunpack.c.0.s8 %v2824_v51  ;;  %v802_v19 = vand.u32 255, %v290_v61  ;;  %v803_v20 = vand.u32 255, %v291_v62  ;;  %v296_v23 = vunpack.c.0.s8 %v2827_v59 }
  0x4b   : > { %1824 = vst [vmem:[%s2747_s17 + $0xb0] sm:$0xff] %v1312_v60  ;;  %v804_v22 = vand.u32 255, %v292_v5  ;;  %1825 = vst [vmem:[%s2747_s17 + $0xb8] sm:$0xff] %v1313_v11  ;;  %v805_v27 = vand.u32 255, %v293_v12  ;;  %v806_v28 = vand.u32 255, %v294_v17  ;;  %v297_v30 = vunpack.c.0.s8 %v2836_v10 }
  0x4c   : > { %v807_v29 = vand.u32 255, %v295_v18  ;;  %v1314_v34 = vcvt.s32.f32 %v802_v19  ;;  %v1315_v35 = vcvt.s32.f32 %v803_v20  ;;  %v808_v37 = vand.u32 255, %v296_v23 }
  0x4d   : > { %v1316_v36 = vcvt.s32.f32 %v804_v22  ;;  %v1317_v39 = vcvt.s32.f32 %v805_v27  ;;  %v1318_v40 = vcvt.s32.f32 %v806_v28  ;;  %v809_v46 = vand.u32 255, %v297_v30 }
  0x4e   : > { %v1319_v45 = vcvt.s32.f32 %v807_v29  ;;  %1826 = vst [vmem:[%s2747_s17 + $0xc0] sm:$0xff] %v1314_v34  ;;  %1827 = vst [vmem:[%s2747_s17 + $0xc8] sm:$0xff] %v1315_v35  ;;  %v1320_v47 = vcvt.s32.f32 %v808_v37  ;;  %v810_v48 = vand.u32 255, %v298_v9  ;;  %v811_v52 = vand.u32 255, %v299_v15 }
  0x4f   : > { %1828 = vst [vmem:[%s2747_s17 + $0xd0] sm:$0xff] %v1316_v36  ;;  %v300_v53 = vunpack.c.1.s8 %v2697_v2  ;;  %1829 = vst [vmem:[%s2747_s17 + $0xd8] sm:$0xff] %v1317_v39  ;;  %v1321_v54 = vcvt.s32.f32 %v809_v46  ;;  %v301_v55 = vunpack.c.1.s8 %v2703_v6  ;;  %v302_v60 = vunpack.c.1.s8 %v2706_v7 }
  0x50   : > { %1830 = vst [vmem:[%s2747_s17 + $0xe0] sm:$0xff] %v1318_v40  ;;  %1831 = vst [vmem:[%s2747_s17 + $0xe8] sm:$0xff] %v1319_v45  ;;  %v303_v61 = vunpack.c.1.s8 %v2709_v8  ;;  %v1322_v62 = vcvt.s32.f32 %v810_v48  ;;  %v1323_v9 = vcvt.s32.f32 %v811_v52  ;;  %v304_v15 = vunpack.c.1.s8 %v2716_v13 }
  0x51   : > { %1832 = vst [vmem:[%s2747_s17 + $0xf0] sm:$0xff] %v1320_v47  ;;  %v812_v5 = vand.u32 255, %v300_v53  ;;  %1833 = vst [vmem:[%s2747_s17 + $0xf8] sm:$0xff] %v1321_v54  ;;  %v813_v11 = vand.u32 255, %v301_v55  ;;  %v814_v12 = vand.u32 255, %v302_v60  ;;  %v305_v18 = vunpack.c.1.s8 %v2719_v14 }
  0x52   : > { %v815_v17 = vand.u32 255, %v303_v61  ;;  %1834 = vst [vmem:[%s2747_s17 + $0x100] sm:$0xff] %v1322_v62  ;;  %1835 = vst [vmem:[%s2747_s17 + $0x108] sm:$0xff] %v1323_v9  ;;  %v816_v20 = vand.u32 255, %v304_v15  ;;  %v306_v22 = vunpack.c.1.s8 %v2725_v24  ;;  %v307_v23 = vunpack.c.1.s8 %v2728_v25 }
  0x53   : > { %v1324_v19 = vcvt.s32.f32 %v812_v5  ;;  %v1325_v27 = vcvt.s32.f32 %v813_v11  ;;  %v1326_v28 = vcvt.s32.f32 %v814_v12  ;;  %v817_v30 = vand.u32 255, %v305_v18 }
  0x54   : > { %v1327_v29 = vcvt.s32.f32 %v815_v17  ;;  %v1328_v34 = vcvt.s32.f32 %v816_v20  ;;  %v818_v35 = vand.u32 255, %v306_v22  ;;  %v819_v36 = vand.u32 255, %v307_v23 }
  0x55   : > { %1836 = vst [vmem:[%s2747_s17 + $0x110] sm:$0xff] %v1324_v19  ;;  %v308_v37 = vunpack.c.1.s8 %v2731_v26  ;;  %1837 = vst [vmem:[%s2747_s17 + $0x118] sm:$0xff] %v1325_v27  ;;  %v1329_v39 = vcvt.s32.f32 %v817_v30  ;;  %v309_v40 = vunpack.c.1.s8 %v2734_v31  ;;  %v310_v45 = vunpack.c.1.s8 %v2737_v32 }
  0x56   : > { %1838 = vst [vmem:[%s2747_s17 + $0x120] sm:$0xff] %v1326_v28  ;;  %1839 = vst [vmem:[%s2747_s17 + $0x128] sm:$0xff] %v1327_v29  ;;  %v311_v46 = vunpack.c.1.s8 %v2740_v33  ;;  %v1330_v47 = vcvt.s32.f32 %v818_v35  ;;  %v1331_v48 = vcvt.s32.f32 %v819_v36  ;;  %v312_v53 = vunpack.c.1.s8 %v2743_v38 }
  0x57   : > { %1840 = vst [vmem:[%s2747_s17 + $0x130] sm:$0xff] %v1328_v34  ;;  %v820_v52 = vand.u32 255, %v308_v37  ;;  %1841 = vst [vmem:[%s2747_s17 + $0x138] sm:$0xff] %v1329_v39  ;;  %v821_v54 = vand.u32 255, %v309_v40  ;;  %v822_v55 = vand.u32 255, %v310_v45  ;;  %v313_v61 = vunpack.c.1.s8 %v2756_v43 }
  0x58   : > { %v823_v60 = vand.u32 255, %v311_v46  ;;  %1842 = vst [vmem:[%s2747_s17 + $0x140] sm:$0xff] %v1330_v47  ;;  %1843 = vst [vmem:[%s2747_s17 + $0x148] sm:$0xff] %v1331_v48  ;;  %v824_v9 = vand.u32 255, %v312_v53  ;;  %v314_v5 = vunpack.c.1.s8 %v2769_v56  ;;  %v315_v15 = vunpack.c.1.s8 %v2772_v57 }
  0x59   : > { %v1332_v62 = vcvt.s32.f32 %v820_v52  ;;  %v1333_v11 = vcvt.s32.f32 %v821_v54  ;;  %v1334_v12 = vcvt.s32.f32 %v822_v55  ;;  %v825_v18 = vand.u32 255, %v313_v61 }
  0x5a   : > { %v1335_v17 = vcvt.s32.f32 %v823_v60  ;;  %v1336_v19 = vcvt.s32.f32 %v824_v9  ;;  %v826_v20 = vand.u32 255, %v314_v5  ;;  %v827_v22 = vand.u32 255, %v315_v15 }
  0x5b   : > { %1844 = vst [vmem:[%s2747_s17 + $0x150] sm:$0xff] %v1332_v62  ;;  %v316_v23 = vunpack.c.1.s8 %v2775_v58  ;;  %1845 = vst [vmem:[%s2747_s17 + $0x158] sm:$0xff] %v1333_v11  ;;  %v1337_v27 = vcvt.s32.f32 %v825_v18  ;;  %v317_v28 = vunpack.c.1.s8 %v2778_v63  ;;  %v318_v29 = vunpack.c.1.s8 %v2781_v3 }
  0x5c   : > { %1846 = vst [vmem:[%s2747_s17 + $0x160] sm:$0xff] %v1334_v12  ;;  %1847 = vst [vmem:[%s2747_s17 + $0x168] sm:$0xff] %v1335_v17  ;;  %v319_v30 = vunpack.c.1.s8 %v2784_v4  ;;  %v1338_v34 = vcvt.s32.f32 %v826_v20  ;;  %v1339_v35 = vcvt.s32.f32 %v827_v22  ;;  %v320_v37 = vunpack.c.1.s8 %v2787_v16 }
  0x5d   : > { %1848 = vst [vmem:[%s2747_s17 + $0x170] sm:$0xff] %v1336_v19  ;;  %v828_v36 = vand.u32 255, %v316_v23  ;;  %1849 = vst [vmem:[%s2747_s17 + $0x178] sm:$0xff] %v1337_v27  ;;  %v829_v39 = vand.u32 255, %v317_v28  ;;  %v830_v40 = vand.u32 255, %v318_v29  ;;  %v321_v46 = vunpack.c.1.s8 %v2796_v21 }
  0x5e   : > { %v831_v45 = vand.u32 255, %v319_v30  ;;  %1850 = vst [vmem:[%s2747_s17 + $0x180] sm:$0xff] %v1338_v34  ;;  %1851 = vst [vmem:[%s2747_s17 + $0x188] sm:$0xff] %v1339_v35  ;;  %v832_v48 = vand.u32 255, %v320_v37  ;;  %v322_v52 = vunpack.c.1.s8 %v2809_v41  ;;  %v323_v53 = vunpack.c.1.s8 %v2812_v42 }
  0x5f   : > { %v1340_v47 = vcvt.s32.f32 %v828_v36  ;;  %v1341_v54 = vcvt.s32.f32 %v829_v39  ;;  %v1342_v55 = vcvt.s32.f32 %v830_v40  ;;  %v833_v61 = vand.u32 255, %v321_v46 }
  0x60   : > { %v1343_v60 = vcvt.s32.f32 %v831_v45  ;;  %v1344_v62 = vcvt.s32.f32 %v832_v48  ;;  %v834_v9 = vand.u32 255, %v322_v52  ;;  %v835_v5 = vand.u32 255, %v323_v53 }
  0x61   : > { %1852 = vst [vmem:[%s2747_s17 + $0x190] sm:$0xff] %v1340_v47  ;;  %v324_v15 = vunpack.c.1.s8 %v2815_v44  ;;  %1853 = vst [vmem:[%s2747_s17 + $0x198] sm:$0xff] %v1341_v54  ;;  %v1345_v11 = vcvt.s32.f32 %v833_v61  ;;  %v325_v12 = vunpack.c.1.s8 %v2818_v49  ;;  %v326_v17 = vunpack.c.1.s8 %v2821_v50 }
  0x62   : > { %1854 = vst [vmem:[%s2747_s17 + $0x1a0] sm:$0xff] %v1342_v55  ;;  %1855 = vst [vmem:[%s2747_s17 + $0x1a8] sm:$0xff] %v1343_v60  ;;  %v327_v18 = vunpack.c.1.s8 %v2824_v51  ;;  %v1346_v19 = vcvt.s32.f32 %v834_v9  ;;  %v1347_v20 = vcvt.s32.f32 %v835_v5  ;;  %v328_v23 = vunpack.c.1.s8 %v2827_v59 }
  0x63   : > { %1856 = vst [vmem:[%s2747_s17 + $0x1b0] sm:$0xff] %v1344_v62  ;;  %v836_v22 = vand.u32 255, %v324_v15  ;;  %1857 = vst [vmem:[%s2747_s17 + $0x1b8] sm:$0xff] %v1345_v11  ;;  %v837_v27 = vand.u32 255, %v325_v12  ;;  %v838_v28 = vand.u32 255, %v326_v17  ;;  %v329_v30 = vunpack.c.1.s8 %v2836_v10 }
  0x64   : > { %v839_v29 = vand.u32 255, %v327_v18  ;;  %1858 = vst [vmem:[%s2747_s17 + $0x1c0] sm:$0xff] %v1346_v19  ;;  %1859 = vst [vmem:[%s2747_s17 + $0x1c8] sm:$0xff] %v1347_v20  ;;  %v840_v35 = vand.u32 255, %v328_v23  ;;  %v330_v36 = vunpack.c.2.s8 %v2691_v0  ;;  %v331_v37 = vunpack.c.2.s8 %v2694_v1 }
  0x65   : > { %v1348_v34 = vcvt.s32.f32 %v836_v22  ;;  %v1349_v39 = vcvt.s32.f32 %v837_v27  ;;  %v1350_v40 = vcvt.s32.f32 %v838_v28  ;;  %v841_v46 = vand.u32 255, %v329_v30 }
  0x66   : > { %v1351_v45 = vcvt.s32.f32 %v839_v29  ;;  %v1352_v47 = vcvt.s32.f32 %v840_v35  ;;  %v842_v48 = vand.u32 255, %v330_v36  ;;  %v843_v52 = vand.u32 255, %v331_v37 }
  0x67   : > { %1860 = vst [vmem:[%s2747_s17 + $0x1d0] sm:$0xff] %v1348_v34  ;;  %v332_v53 = vunpack.c.2.s8 %v2697_v2  ;;  %1861 = vst [vmem:[%s2747_s17 + $0x1d8] sm:$0xff] %v1349_v39  ;;  %v1353_v54 = vcvt.s32.f32 %v841_v46  ;;  %v333_v55 = vunpack.c.2.s8 %v2703_v6  ;;  %v334_v60 = vunpack.c.2.s8 %v2706_v7 }
  0x68   : > { %1862 = vst [vmem:[%s2747_s17 + $0x1e0] sm:$0xff] %v1350_v40  ;;  %1863 = vst [vmem:[%s2747_s17 + $0x1e8] sm:$0xff] %v1351_v45  ;;  %v335_v61 = vunpack.c.2.s8 %v2709_v8  ;;  %v1354_v62 = vcvt.s32.f32 %v842_v48  ;;  %v1355_v9 = vcvt.s32.f32 %v843_v52  ;;  %v336_v15 = vunpack.c.2.s8 %v2716_v13 }
  0x69   : > { %1864 = vst [vmem:[%s2747_s17 + $0x1f0] sm:$0xff] %v1352_v47  ;;  %v844_v5 = vand.u32 255, %v332_v53  ;;  %1865 = vst [vmem:[%s2747_s17 + $0x1f8] sm:$0xff] %v1353_v54  ;;  %v845_v11 = vand.u32 255, %v333_v55  ;;  %v846_v12 = vand.u32 255, %v334_v60  ;;  %v337_v18 = vunpack.c.2.s8 %v2719_v14 }
  0x6a   : > { %v847_v17 = vand.u32 255, %v335_v61  ;;  %1866 = vst [vmem:[%s2747_s17 + $0x200] sm:$0xff] %v1354_v62  ;;  %1867 = vst [vmem:[%s2747_s17 + $0x208] sm:$0xff] %v1355_v9  ;;  %v848_v20 = vand.u32 255, %v336_v15  ;;  %v338_v22 = vunpack.c.2.s8 %v2725_v24  ;;  %v339_v23 = vunpack.c.2.s8 %v2728_v25 }
  0x6b   : > { %v1356_v19 = vcvt.s32.f32 %v844_v5  ;;  %v1357_v27 = vcvt.s32.f32 %v845_v11  ;;  %v1358_v28 = vcvt.s32.f32 %v846_v12  ;;  %v849_v30 = vand.u32 255, %v337_v18 }
  0x6c   : > { %v1359_v29 = vcvt.s32.f32 %v847_v17  ;;  %v1360_v34 = vcvt.s32.f32 %v848_v20  ;;  %v850_v35 = vand.u32 255, %v338_v22  ;;  %v851_v36 = vand.u32 255, %v339_v23 }
  0x6d   : > { %1868 = vst [vmem:[%s2747_s17 + $0x210] sm:$0xff] %v1356_v19  ;;  %v340_v37 = vunpack.c.2.s8 %v2731_v26  ;;  %1869 = vst [vmem:[%s2747_s17 + $0x218] sm:$0xff] %v1357_v27  ;;  %v1361_v39 = vcvt.s32.f32 %v849_v30  ;;  %v341_v40 = vunpack.c.2.s8 %v2734_v31  ;;  %v342_v45 = vunpack.c.2.s8 %v2737_v32 }
  0x6e   : > { %1870 = vst [vmem:[%s2747_s17 + $0x220] sm:$0xff] %v1358_v28  ;;  %1871 = vst [vmem:[%s2747_s17 + $0x228] sm:$0xff] %v1359_v29  ;;  %v343_v46 = vunpack.c.2.s8 %v2740_v33  ;;  %v1362_v47 = vcvt.s32.f32 %v850_v35  ;;  %v1363_v48 = vcvt.s32.f32 %v851_v36  ;;  %v344_v53 = vunpack.c.2.s8 %v2743_v38 }
  0x6f   : > { %1872 = vst [vmem:[%s2747_s17 + $0x230] sm:$0xff] %v1360_v34  ;;  %v852_v52 = vand.u32 255, %v340_v37  ;;  %1873 = vst [vmem:[%s2747_s17 + $0x238] sm:$0xff] %v1361_v39  ;;  %v853_v54 = vand.u32 255, %v341_v40  ;;  %v854_v55 = vand.u32 255, %v342_v45  ;;  %v345_v61 = vunpack.c.2.s8 %v2756_v43 }
  0x70   : > { %v855_v60 = vand.u32 255, %v343_v46  ;;  %1874 = vst [vmem:[%s2747_s17 + $0x240] sm:$0xff] %v1362_v47  ;;  %1875 = vst [vmem:[%s2747_s17 + $0x248] sm:$0xff] %v1363_v48  ;;  %v856_v9 = vand.u32 255, %v344_v53  ;;  %v346_v5 = vunpack.c.2.s8 %v2769_v56  ;;  %v347_v15 = vunpack.c.2.s8 %v2772_v57 }
  0x71   : > { %v1364_v62 = vcvt.s32.f32 %v852_v52  ;;  %v1365_v11 = vcvt.s32.f32 %v853_v54  ;;  %v1366_v12 = vcvt.s32.f32 %v854_v55  ;;  %v857_v18 = vand.u32 255, %v345_v61 }
  0x72   : > { %v1367_v17 = vcvt.s32.f32 %v855_v60  ;;  %v1368_v19 = vcvt.s32.f32 %v856_v9  ;;  %v858_v20 = vand.u32 255, %v346_v5  ;;  %v859_v22 = vand.u32 255, %v347_v15 }
  0x73   : > { %1876 = vst [vmem:[%s2747_s17 + $0x250] sm:$0xff] %v1364_v62  ;;  %v348_v23 = vunpack.c.2.s8 %v2775_v58  ;;  %1877 = vst [vmem:[%s2747_s17 + $0x258] sm:$0xff] %v1365_v11  ;;  %v1369_v27 = vcvt.s32.f32 %v857_v18  ;;  %v349_v28 = vunpack.c.2.s8 %v2778_v63  ;;  %v350_v29 = vunpack.c.2.s8 %v2781_v3 }
  0x74   : > { %1878 = vst [vmem:[%s2747_s17 + $0x260] sm:$0xff] %v1366_v12  ;;  %1879 = vst [vmem:[%s2747_s17 + $0x268] sm:$0xff] %v1367_v17  ;;  %v351_v30 = vunpack.c.2.s8 %v2784_v4  ;;  %v1370_v34 = vcvt.s32.f32 %v858_v20  ;;  %v1371_v35 = vcvt.s32.f32 %v859_v22  ;;  %v352_v37 = vunpack.c.2.s8 %v2787_v16 }
  0x75   : > { %1880 = vst [vmem:[%s2747_s17 + $0x270] sm:$0xff] %v1368_v19  ;;  %v860_v36 = vand.u32 255, %v348_v23  ;;  %1881 = vst [vmem:[%s2747_s17 + $0x278] sm:$0xff] %v1369_v27  ;;  %v861_v39 = vand.u32 255, %v349_v28  ;;  %v862_v40 = vand.u32 255, %v350_v29  ;;  %v353_v46 = vunpack.c.2.s8 %v2796_v21 }
  0x76   : > { %v863_v45 = vand.u32 255, %v351_v30  ;;  %1882 = vst [vmem:[%s2747_s17 + $0x280] sm:$0xff] %v1370_v34  ;;  %1883 = vst [vmem:[%s2747_s17 + $0x288] sm:$0xff] %v1371_v35  ;;  %v864_v48 = vand.u32 255, %v352_v37  ;;  %v354_v52 = vunpack.c.2.s8 %v2809_v41  ;;  %v355_v53 = vunpack.c.2.s8 %v2812_v42 }
  0x77   : > { %v1372_v47 = vcvt.s32.f32 %v860_v36  ;;  %v1373_v54 = vcvt.s32.f32 %v861_v39  ;;  %v1374_v55 = vcvt.s32.f32 %v862_v40  ;;  %v865_v61 = vand.u32 255, %v353_v46 }
  0x78   : > { %v1375_v60 = vcvt.s32.f32 %v863_v45  ;;  %v1376_v62 = vcvt.s32.f32 %v864_v48  ;;  %v866_v9 = vand.u32 255, %v354_v52  ;;  %v867_v5 = vand.u32 255, %v355_v53 }
  0x79   : > { %1884 = vst [vmem:[%s2747_s17 + $0x290] sm:$0xff] %v1372_v47  ;;  %v356_v15 = vunpack.c.2.s8 %v2815_v44  ;;  %1885 = vst [vmem:[%s2747_s17 + $0x298] sm:$0xff] %v1373_v54  ;;  %v1377_v11 = vcvt.s32.f32 %v865_v61  ;;  %v357_v12 = vunpack.c.2.s8 %v2818_v49  ;;  %v358_v17 = vunpack.c.2.s8 %v2821_v50 }
  0x7a   : > { %1886 = vst [vmem:[%s2747_s17 + $0x2a0] sm:$0xff] %v1374_v55  ;;  %1887 = vst [vmem:[%s2747_s17 + $0x2a8] sm:$0xff] %v1375_v60  ;;  %v359_v18 = vunpack.c.2.s8 %v2824_v51  ;;  %v1378_v19 = vcvt.s32.f32 %v866_v9  ;;  %v1379_v20 = vcvt.s32.f32 %v867_v5  ;;  %v360_v23 = vunpack.c.2.s8 %v2827_v59 }
  0x7b   : > { %1888 = vst [vmem:[%s2747_s17 + $0x2b0] sm:$0xff] %v1376_v62  ;;  %v868_v22 = vand.u32 255, %v356_v15  ;;  %1889 = vst [vmem:[%s2747_s17 + $0x2b8] sm:$0xff] %v1377_v11  ;;  %v869_v27 = vand.u32 255, %v357_v12  ;;  %v870_v28 = vand.u32 255, %v358_v17  ;;  %v361_v30 = vunpack.c.2.s8 %v2836_v10 }
  0x7c   : > { %v871_v29 = vand.u32 255, %v359_v18  ;;  %1890 = vst [vmem:[%s2747_s17 + $0x2c0] sm:$0xff] %v1378_v19  ;;  %1891 = vst [vmem:[%s2747_s17 + $0x2c8] sm:$0xff] %v1379_v20  ;;  %v872_v35 = vand.u32 255, %v360_v23  ;;  %v362_v36 = vunpack.c.3.s8 %v2691_v0  ;;  %v363_v37 = vunpack.c.3.s8 %v2694_v1 }
  0x7d   : > { %v1380_v34 = vcvt.s32.f32 %v868_v22  ;;  %v1381_v39 = vcvt.s32.f32 %v869_v27  ;;  %v1382_v40 = vcvt.s32.f32 %v870_v28  ;;  %v873_v46 = vand.u32 255, %v361_v30 }
  0x7e   : > { %v1383_v45 = vcvt.s32.f32 %v871_v29  ;;  %v1384_v47 = vcvt.s32.f32 %v872_v35  ;;  %v874_v48 = vand.u32 255, %v362_v36  ;;  %v875_v52 = vand.u32 255, %v363_v37 }
  0x7f   : > { %1892 = vst [vmem:[%s2747_s17 + $0x2d0] sm:$0xff] %v1380_v34  ;;  %v364_v53 = vunpack.c.3.s8 %v2697_v2  ;;  %1893 = vst [vmem:[%s2747_s17 + $0x2d8] sm:$0xff] %v1381_v39  ;;  %v1385_v0 = vcvt.s32.f32 %v873_v46  ;;  %v365_v1 = vunpack.c.3.s8 %v2703_v6  ;;  %v366_v54 = vunpack.c.3.s8 %v2706_v7 }
  0x80   : > { %1894 = vst [vmem:[%s2747_s17 + $0x2e0] sm:$0xff] %v1382_v40  ;;  %1895 = vst [vmem:[%s2747_s17 + $0x2e8] sm:$0xff] %v1383_v45  ;;  %v367_v55 = vunpack.c.3.s8 %v2709_v8  ;;  %v1386_v60 = vcvt.s32.f32 %v874_v48  ;;  %v1387_v61 = vcvt.s32.f32 %v875_v52  ;;  %v368_v9 = vunpack.c.3.s8 %v2716_v13 }
  0x81   : > { %1896 = vst [vmem:[%s2747_s17 + $0x2f0] sm:$0xff] %v1384_v47  ;;  %v876_v62 = vand.u32 255, %v364_v53  ;;  %1897 = vst [vmem:[%s2747_s17 + $0x2f8] sm:$0xff] %v1385_v0  ;;  %v877_v2 = vand.u32 255, %v365_v1  ;;  %v878_v5 = vand.u32 255, %v366_v54  ;;  %v369_v11 = vunpack.c.3.s8 %v2719_v14 }
  0x82   : > { %v879_v15 = vand.u32 255, %v367_v55  ;;  %1898 = vst [vmem:[%s2747_s17 + $0x300] sm:$0xff] %v1386_v60  ;;  %1899 = vst [vmem:[%s2747_s17 + $0x308] sm:$0xff] %v1387_v61  ;;  %v880_v7 = vand.u32 255, %v368_v9  ;;  %v370_v8 = vunpack.c.3.s8 %v2725_v24  ;;  %v371_v12 = vunpack.c.3.s8 %v2728_v25 }
  0x83   : > { %v1388_v6 = vcvt.s32.f32 %v876_v62  ;;  %v1389_v17 = vcvt.s32.f32 %v877_v2  ;;  %v1390_v13 = vcvt.s32.f32 %v878_v5  ;;  %v881_v19 = vand.u32 255, %v369_v11 }
  0x84   : > { %v1391_v18 = vcvt.s32.f32 %v879_v15  ;;  %v1392_v20 = vcvt.s32.f32 %v880_v7  ;;  %v882_v14 = vand.u32 255, %v370_v8  ;;  %v883_v22 = vand.u32 255, %v371_v12 }
  0x85   : > { %1900 = vst [vmem:[%s2747_s17 + $0x310] sm:$0xff] %v1388_v6  ;;  %v372_v23 = vunpack.c.3.s8 %v2731_v26  ;;  %1901 = vst [vmem:[%s2747_s17 + $0x318] sm:$0xff] %v1389_v17  ;;  %v1393_v24 = vcvt.s32.f32 %v881_v19  ;;  %v373_v25 = vunpack.c.3.s8 %v2734_v31  ;;  %v374_v27 = vunpack.c.3.s8 %v2737_v32  ;;  %v3042_v19 = vld [vmem:[%s2683_s30 + $0x108] sm:$0xff] }
  0x86   : > { %1902 = vst [vmem:[%s2747_s17 + $0x320] sm:$0xff] %v1390_v13  ;;  %1903 = vst [vmem:[%s2747_s17 + $0x328] sm:$0xff] %v1391_v18  ;;  %v375_v28 = vunpack.c.3.s8 %v2740_v33  ;;  %v1394_v29 = vcvt.s32.f32 %v882_v14  ;;  %v1395_v30 = vcvt.s32.f32 %v883_v22  ;;  %v376_v35 = vunpack.c.3.s8 %v2743_v38  ;;  %v3039_v18 = vld [vmem:[%s2683_s30 + $0x100] sm:$0xff] }
  0x87   : > { %1904 = vst [vmem:[%s2747_s17 + $0x330] sm:$0xff] %v1392_v20  ;;  %v884_v34 = vand.u32 255, %v372_v23  ;;  %1905 = vst [vmem:[%s2747_s17 + $0x338] sm:$0xff] %v1393_v24  ;;  %v885_v26 = vand.u32 255, %v373_v25  ;;  %v886_v36 = vand.u32 255, %v374_v27  ;;  %v377_v39 = vunpack.c.3.s8 %v2756_v43  ;;  %v3049_v24 = vld [vmem:[%s2683_s30 + $0x110] sm:$0xff] }
  0x88   : > { %v887_v37 = vand.u32 255, %v375_v28  ;;  %1906 = vst [vmem:[%s2747_s17 + $0x340] sm:$0xff] %v1394_v29  ;;  %1907 = vst [vmem:[%s2747_s17 + $0x348] sm:$0xff] %v1395_v30  ;;  %v888_v32 = vand.u32 255, %v376_v35  ;;  %v378_v33 = vunpack.c.3.s8 %v2769_v56  ;;  %v379_v40 = vunpack.c.3.s8 %v2772_v57  ;;  %v3056_v29 = vld [vmem:[%s2683_s30 + $0x118] sm:$0xff]  ;;  %v3059_v30 = vld [vmem:[%s2683_s30 + $0x120] sm:$0xff] }
  0x89   : > { %v1396_v31 = vcvt.s32.f32 %v884_v34  ;;  %v1397_v45 = vcvt.s32.f32 %v885_v26  ;;  %v1398_v38 = vcvt.s32.f32 %v886_v36  ;;  %v889_v47 = vand.u32 255, %v377_v39 }
  0x8a   : > { %v1399_v46 = vcvt.s32.f32 %v887_v37  ;;  %v1400_v48 = vcvt.s32.f32 %v888_v32  ;;  %v890_v43 = vand.u32 255, %v378_v33  ;;  %v891_v52 = vand.u32 255, %v379_v40  ;;  %v3065_v37 = vld [vmem:[%s2683_s30 + $0x130] sm:$0xff]  ;;  %v3070_v40 = vld [vmem:[%s2683_s30 + $0x138] sm:$0xff] }
  0x8b   : > { %1908 = vst [vmem:[%s2747_s17 + $0x350] sm:$0xff] %v1396_v31  ;;  %v380_v53 = vunpack.c.3.s8 %v2775_v58  ;;  %1909 = vst [vmem:[%s2747_s17 + $0x358] sm:$0xff] %v1397_v45  ;;  %v1401_v56 = vcvt.s32.f32 %v889_v47  ;;  %v381_v57 = vunpack.c.3.s8 %v2778_v63  ;;  %v382_v0 = vunpack.c.3.s8 %v2781_v3 }
  0x8c   : > { %1910 = vst [vmem:[%s2747_s17 + $0x360] sm:$0xff] %v1398_v38  ;;  %1911 = vst [vmem:[%s2747_s17 + $0x368] sm:$0xff] %v1399_v46  ;;  %v383_v1 = vunpack.c.3.s8 %v2784_v4  ;;  %v1402_v54 = vcvt.s32.f32 %v890_v43  ;;  %v1403_v55 = vcvt.s32.f32 %v891_v52  ;;  %v384_v61 = vunpack.c.3.s8 %v2787_v16  ;;  %v3082_v43 = vld [vmem:[%s2683_s30 + $0x148] sm:$0xff] }
  0x8d   : > { %1912 = vst [vmem:[%s2747_s17 + $0x370] sm:$0xff] %v1400_v48  ;;  %v892_v60 = vand.u32 255, %v380_v53  ;;  %1913 = vst [vmem:[%s2747_s17 + $0x378] sm:$0xff] %v1401_v56  ;;  %v893_v58 = vand.u32 255, %v381_v57  ;;  %v894_v62 = vand.u32 255, %v382_v0  ;;  %v385_v2 = vunpack.c.3.s8 %v2796_v21  ;;  %v3079_v48 = vld [vmem:[%s2683_s30 + $0x140] sm:$0xff] }
  0x8e   : > { %v895_v9 = vand.u32 255, %v383_v1  ;;  %1914 = vst [vmem:[%s2747_s17 + $0x380] sm:$0xff] %v1402_v54  ;;  %1915 = vst [vmem:[%s2747_s17 + $0x388] sm:$0xff] %v1403_v55  ;;  %v896_v3 = vand.u32 255, %v384_v61  ;;  %v386_v4 = vunpack.c.3.s8 %v2809_v41  ;;  %v387_v5 = vunpack.c.3.s8 %v2812_v42 }
  0x8f   : > { %v1404_v63 = vcvt.s32.f32 %v892_v60  ;;  %v1405_v15 = vcvt.s32.f32 %v893_v58  ;;  %v1406_v16 = vcvt.s32.f32 %v894_v62  ;;  %v897_v6 = vand.u32 255, %v385_v2  ;;  %v3089_v60 = vld [vmem:[%s2683_s30 + $0x150] sm:$0xff]  ;;  %v3096_v2 = vld [vmem:[%s2683_s30 + $0x158] sm:$0xff] }
  0x90   : > { %v1407_v11 = vcvt.s32.f32 %v895_v9  ;;  %v1408_v21 = vcvt.s32.f32 %v896_v3  ;;  %v898_v7 = vand.u32 255, %v386_v4  ;;  %v899_v8 = vand.u32 255, %v387_v5  ;;  %v3102_v3 = vld [vmem:[%s2683_s30 + $0x168] sm:$0xff] }
  0x91   : > { %1916 = vst [vmem:[%s2747_s17 + $0x390] sm:$0xff] %v1404_v63  ;;  %v388_v12 = vunpack.c.3.s8 %v2815_v44  ;;  %1917 = vst [vmem:[%s2747_s17 + $0x398] sm:$0xff] %v1405_v15  ;;  %v1409_v41 = vcvt.s32.f32 %v897_v6  ;;  %v389_v42 = vunpack.c.3.s8 %v2818_v49  ;;  %v390_v17 = vunpack.c.3.s8 %v2821_v50  ;;  %v3099_v63 = vld [vmem:[%s2683_s30 + $0x160] sm:$0xff] }
  0x92   : > { %1918 = vst [vmem:[%s2747_s17 + $0x3a0] sm:$0xff] %v1406_v16  ;;  %1919 = vst [vmem:[%s2747_s17 + $0x3a8] sm:$0xff] %v1407_v11  ;;  %v391_v13 = vunpack.c.3.s8 %v2824_v51  ;;  %v1410_v20 = vcvt.s32.f32 %v898_v7  ;;  %v1411_v44 = vcvt.s32.f32 %v899_v8  ;;  %v392_v22 = vunpack.c.3.s8 %v2827_v59  ;;  %v3105_v11 = vld [vmem:[%s2683_s30 + $0x170] sm:$0xff] }
  0x93   : > { %1920 = vst [vmem:[%s2747_s17 + $0x3b0] sm:$0xff] %v1408_v21  ;;  %v900_v14 = vand.u32 255, %v388_v12  ;;  %1921 = vst [vmem:[%s2747_s17 + $0x3b8] sm:$0xff] %v1409_v41  ;;  %v901_v49 = vand.u32 255, %v389_v42  ;;  %v902_v23 = vand.u32 255, %v390_v17  ;;  %v393_v51 = vunpack.c.3.s8 %v2836_v10  ;;  %v3062_v10 = vld [vmem:[%s2683_s30 + $0x128] sm:$0xff] }
  0x94   : > { %v903_v50 = vand.u32 255, %v391_v13  ;;  %1922 = vst [vmem:[%s2747_s17 + $0x3c0] sm:$0xff] %v1410_v20  ;;  %1923 = vst [vmem:[%s2747_s17 + $0x3c8] sm:$0xff] %v1411_v44  ;;  %v904_v27 = vand.u32 255, %v392_v22  ;;  %v394_v28 = vunpack.c.0.s8 %v3039_v18  ;;  %v395_v59 = vunpack.c.0.s8 %v3042_v19  ;;  %v3110_v12 = vld [vmem:[%s2683_s30 + $0x178] sm:$0xff]  ;;  %v3119_v20 = vld [vmem:[%s2683_s30 + $0x180] sm:$0xff] }
  0x95   : > { %v1412_v25 = vcvt.s32.f32 %v900_v14  ;;  %v1413_v34 = vcvt.s32.f32 %v901_v49  ;;  %v1414_v35 = vcvt.s32.f32 %v902_v23  ;;  %v905_v36 = vand.u32 255, %v393_v51  ;;  %v3122_v44 = vld [vmem:[%s2683_s30 + $0x188] sm:$0xff] }
  0x96   : > { %v1415_v26 = vcvt.s32.f32 %v903_v50  ;;  %v1416_v39 = vcvt.s32.f32 %v904_v27  ;;  %v906_v31 = vand.u32 255, %v394_v28  ;;  %v907_v32 = vand.u32 255, %v395_v59  ;;  %v3129_v28 = vld [vmem:[%s2683_s30 + $0x190] sm:$0xff] }
  0x97   : > { %1924 = vst [vmem:[%s2747_s17 + $0x3d0] sm:$0xff] %v1412_v25  ;;  %v396_v33 = vunpack.c.0.s8 %v3049_v24  ;;  %1925 = vst [vmem:[%s2747_s17 + $0x3d8] sm:$0xff] %v1413_v34  ;;  %v1417_v45 = vcvt.s32.f32 %v905_v36  ;;  %v397_v38 = vunpack.c.0.s8 %v3056_v29  ;;  %v398_v46 = vunpack.c.0.s8 %v3059_v30  ;;  %v3136_v36 = vld [vmem:[%s2683_s30 + $0x198] sm:$0xff] }
  0x98   : > { %1926 = vst [vmem:[%s2747_s17 + $0x3e0] sm:$0xff] %v1414_v35  ;;  %1927 = vst [vmem:[%s2747_s17 + $0x3e8] sm:$0xff] %v1415_v26  ;;  %v399_v47 = vunpack.c.0.s8 %v3062_v10  ;;  %v1418_v52 = vcvt.s32.f32 %v906_v31  ;;  %v1419_v53 = vcvt.s32.f32 %v907_v32  ;;  %v400_v57 = vunpack.c.0.s8 %v3065_v37  ;;  %v3142_v31 = vld [vmem:[%s2683_s30 + $0x1a8] sm:$0xff] }
  0x99   : > { %1928 = vst [vmem:[%s2747_s17 + $0x3f0] sm:$0xff] %v1416_v39  ;;  %v908_v56 = vand.u32 255, %v396_v33  ;;  %1929 = vst [vmem:[%s2747_s17 + $0x3f8] sm:$0xff] %v1417_v45  ;;  %v909_v0 = vand.u32 255, %v397_v38  ;;  %v910_v1 = vand.u32 255, %v398_v46  ;;  %v401_v55 = vunpack.c.0.s8 %v3070_v40  ;;  %v3139_v39 = vld [vmem:[%s2683_s30 + $0x1a0] sm:$0xff] }
  0x9a   : > { %v911_v54 = vand.u32 255, %v399_v47  ;;  %1930 = vst [vmem:[%s2747_s17 + $0x400] sm:$0xff] %v1418_v52  ;;  %1931 = vst [vmem:[%s2747_s17 + $0x408] sm:$0xff] %v1419_v53  ;;  %v912_v58 = vand.u32 255, %v400_v57  ;;  %v402_v62 = vunpack.c.0.s8 %v3079_v48  ;;  %v403_v9 = vunpack.c.0.s8 %v3082_v43  ;;  %v3145_v46 = vld [vmem:[%s2683_s30 + $0x1b0] sm:$0xff]  ;;  %v3150_v57 = vld [vmem:[%s2683_s30 + $0x1b8] sm:$0xff] }
  0x9b   : > { %v1420_v61 = vcvt.s32.f32 %v908_v56  ;;  %v1421_v4 = vcvt.s32.f32 %v909_v0  ;;  %v1422_v5 = vcvt.s32.f32 %v910_v1  ;;  %v913_v16 = vand.u32 255, %v401_v55 }
  0x9c   : > { %v1423_v15 = vcvt.s32.f32 %v911_v54  ;;  %v1424_v6 = vcvt.s32.f32 %v912_v58  ;;  %v914_v21 = vand.u32 255, %v402_v62  ;;  %v915_v7 = vand.u32 255, %v403_v9  ;;  %v3162_v58 = vld [vmem:[%s2683_s30 + $0x1c8] sm:$0xff] }
  0x9d   : > { %1932 = vst [vmem:[%s2747_s17 + $0x410] sm:$0xff] %v1420_v61  ;;  %v404_v8 = vunpack.c.0.s8 %v3089_v60  ;;  %1933 = vst [vmem:[%s2747_s17 + $0x418] sm:$0xff] %v1421_v4  ;;  %v1425_v41 = vcvt.s32.f32 %v913_v16  ;;  %v405_v42 = vunpack.c.0.s8 %v3096_v2  ;;  %v406_v17 = vunpack.c.0.s8 %v3099_v63  ;;  %v3159_v61 = vld [vmem:[%s2683_s30 + $0x1c0] sm:$0xff] }
  0x9e   : > { %1934 = vst [vmem:[%s2747_s17 + $0x420] sm:$0xff] %v1422_v5  ;;  %1935 = vst [vmem:[%s2747_s17 + $0x428] sm:$0xff] %v1423_v15  ;;  %v407_v13 = vunpack.c.0.s8 %v3102_v3  ;;  %v1426_v14 = vcvt.s32.f32 %v914_v21  ;;  %v1427_v22 = vcvt.s32.f32 %v915_v7  ;;  %v408_v23 = vunpack.c.0.s8 %v3105_v11  ;;  %v3169_v7 = vld [vmem:[%s2683_s30 + $0x1d0] sm:$0xff] }
  0x9f   : > { %1936 = vst [vmem:[%s2747_s17 + $0x430] sm:$0xff] %v1424_v6  ;;  %v916_v49 = vand.u32 255, %v404_v8  ;;  %1937 = vst [vmem:[%s2747_s17 + $0x438] sm:$0xff] %v1425_v41  ;;  %v917_v50 = vand.u32 255, %v405_v42  ;;  %v918_v51 = vand.u32 255, %v406_v17  ;;  %v409_v27 = vunpack.c.0.s8 %v3110_v12 }
  0xa0   : > { %v919_v25 = vand.u32 255, %v407_v13  ;;  %1938 = vst [vmem:[%s2747_s17 + $0x440] sm:$0xff] %v1426_v14  ;;  %1939 = vst [vmem:[%s2747_s17 + $0x448] sm:$0xff] %v1427_v22  ;;  %v920_v34 = vand.u32 255, %v408_v23  ;;  %v410_v35 = vunpack.c.0.s8 %v3119_v20  ;;  %v411_v26 = vunpack.c.0.s8 %v3122_v44  ;;  %v3176_v13 = vld [vmem:[%s2683_s30 + $0x1d8] sm:$0xff]  ;;  %v3179_v14 = vld [vmem:[%s2683_s30 + $0x1e0] sm:$0xff] }
  0xa1   : > { %v1428_v59 = vcvt.s32.f32 %v916_v49  ;;  %v1429_v32 = vcvt.s32.f32 %v917_v50  ;;  %v1430_v33 = vcvt.s32.f32 %v918_v51  ;;  %v921_v38 = vand.u32 255, %v409_v27  ;;  %v3182_v22 = vld [vmem:[%s2683_s30 + $0x1e8] sm:$0xff] }
  0xa2   : > { %v1431_v45 = vcvt.s32.f32 %v919_v25  ;;  %v1432_v47 = vcvt.s32.f32 %v920_v34  ;;  %v922_v52 = vand.u32 255, %v410_v35  ;;  %v923_v53 = vand.u32 255, %v411_v26  ;;  %v3185_v25 = vld [vmem:[%s2683_s30 + $0x1f0] sm:$0xff]  ;;  %v3190_v26 = vld [vmem:[%s2683_s30 + $0x1f8] sm:$0xff] }
  0xa3   : > { %1940 = vst [vmem:[%s2747_s17 + $0x450] sm:$0xff] %v1428_v59  ;;  %v412_v56 = vunpack.c.0.s8 %v3129_v28  ;;  %1941 = vst [vmem:[%s2747_s17 + $0x458] sm:$0xff] %v1429_v32  ;;  %v1433_v0 = vcvt.s32.f32 %v921_v38  ;;  %v413_v1 = vunpack.c.0.s8 %v3136_v36  ;;  %v414_v54 = vunpack.c.0.s8 %v3139_v39 }
  0xa4   : > { %1942 = vst [vmem:[%s2747_s17 + $0x460] sm:$0xff] %v1430_v33  ;;  %1943 = vst [vmem:[%s2747_s17 + $0x468] sm:$0xff] %v1431_v45  ;;  %v415_v55 = vunpack.c.0.s8 %v3142_v31  ;;  %v1434_v62 = vcvt.s32.f32 %v922_v52  ;;  %v1435_v9 = vcvt.s32.f32 %v923_v53  ;;  %v416_v5 = vunpack.c.0.s8 %v3145_v46 }
  0xa5   : > { %1944 = vst [vmem:[%s2747_s17 + $0x470] sm:$0xff] %v1432_v47  ;;  %v924_v4 = vand.u32 255, %v412_v56  ;;  %1945 = vst [vmem:[%s2747_s17 + $0x478] sm:$0xff] %v1433_v0  ;;  %v925_v15 = vand.u32 255, %v413_v1  ;;  %v926_v16 = vand.u32 255, %v414_v54  ;;  %v417_v21 = vunpack.c.0.s8 %v3150_v57 }
  0xa6   : > { %v927_v6 = vand.u32 255, %v415_v55  ;;  %1946 = vst [vmem:[%s2747_s17 + $0x480] sm:$0xff] %v1434_v62  ;;  %1947 = vst [vmem:[%s2747_s17 + $0x488] sm:$0xff] %v1435_v9  ;;  %v928_v41 = vand.u32 255, %v416_v5  ;;  %v418_v42 = vunpack.c.0.s8 %v3159_v61  ;;  %v419_v17 = vunpack.c.0.s8 %v3162_v58 }
  0xa7   : > { %v1436_v8 = vcvt.s32.f32 %v924_v4  ;;  %v1437_v49 = vcvt.s32.f32 %v925_v15  ;;  %v1438_v23 = vcvt.s32.f32 %v926_v16  ;;  %v929_v51 = vand.u32 255, %v417_v21 }
  0xa8   : > { %v1439_v50 = vcvt.s32.f32 %v927_v6  ;;  %v1440_v27 = vcvt.s32.f32 %v928_v41  ;;  %v930_v59 = vand.u32 255, %v418_v42  ;;  %v931_v34 = vand.u32 255, %v419_v17 }
  0xa9   : > { %1948 = vst [vmem:[%s2747_s17 + $0x490] sm:$0xff] %v1436_v8  ;;  %v420_v35 = vunpack.c.0.s8 %v3169_v7  ;;  %1949 = vst [vmem:[%s2747_s17 + $0x498] sm:$0xff] %v1437_v49  ;;  %v1441_v32 = vcvt.s32.f32 %v929_v51  ;;  %v421_v33 = vunpack.c.0.s8 %v3176_v13  ;;  %v422_v45 = vunpack.c.0.s8 %v3179_v14 }
  0xaa   : > { %1950 = vst [vmem:[%s2747_s17 + $0x4a0] sm:$0xff] %v1438_v23  ;;  %1951 = vst [vmem:[%s2747_s17 + $0x4a8] sm:$0xff] %v1439_v50  ;;  %v423_v38 = vunpack.c.0.s8 %v3182_v22  ;;  %v1442_v47 = vcvt.s32.f32 %v930_v59  ;;  %v1443_v52 = vcvt.s32.f32 %v931_v34  ;;  %v424_v56 = vunpack.c.0.s8 %v3185_v25 }
  0xab   : > { %1952 = vst [vmem:[%s2747_s17 + $0x4b0] sm:$0xff] %v1440_v27  ;;  %v932_v53 = vand.u32 255, %v420_v35  ;;  %1953 = vst [vmem:[%s2747_s17 + $0x4b8] sm:$0xff] %v1441_v32  ;;  %v933_v0 = vand.u32 255, %v421_v33  ;;  %v934_v1 = vand.u32 255, %v422_v45  ;;  %v425_v55 = vunpack.c.0.s8 %v3190_v26 }
  0xac   : > { %v935_v54 = vand.u32 255, %v423_v38  ;;  %1954 = vst [vmem:[%s2747_s17 + $0x4c0] sm:$0xff] %v1442_v47  ;;  %1955 = vst [vmem:[%s2747_s17 + $0x4c8] sm:$0xff] %v1443_v52  ;;  %v936_v9 = vand.u32 255, %v424_v56  ;;  %v426_v4 = vunpack.c.1.s8 %v3039_v18  ;;  %v427_v5 = vunpack.c.1.s8 %v3042_v19 }
  0xad   : > { %v1444_v62 = vcvt.s32.f32 %v932_v53  ;;  %v1445_v15 = vcvt.s32.f32 %v933_v0  ;;  %v1446_v16 = vcvt.s32.f32 %v934_v1  ;;  %v937_v21 = vand.u32 255, %v425_v55 }
  0xae   : > { %v1447_v6 = vcvt.s32.f32 %v935_v54  ;;  %v1448_v8 = vcvt.s32.f32 %v936_v9  ;;  %v938_v41 = vand.u32 255, %v426_v4  ;;  %v939_v42 = vand.u32 255, %v427_v5 }
  0xaf   : > { %1956 = vst [vmem:[%s2747_s17 + $0x4d0] sm:$0xff] %v1444_v62  ;;  %v428_v17 = vunpack.c.1.s8 %v3049_v24  ;;  %1957 = vst [vmem:[%s2747_s17 + $0x4d8] sm:$0xff] %v1445_v15  ;;  %v1449_v49 = vcvt.s32.f32 %v937_v21  ;;  %v429_v23 = vunpack.c.1.s8 %v3056_v29  ;;  %v430_v50 = vunpack.c.1.s8 %v3059_v30 }
  0xb0   : > { %1958 = vst [vmem:[%s2747_s17 + $0x4e0] sm:$0xff] %v1446_v16  ;;  %1959 = vst [vmem:[%s2747_s17 + $0x4e8] sm:$0xff] %v1447_v6  ;;  %v431_v51 = vunpack.c.1.s8 %v3062_v10  ;;  %v1450_v27 = vcvt.s32.f32 %v938_v41  ;;  %v1451_v59 = vcvt.s32.f32 %v939_v42  ;;  %v432_v35 = vunpack.c.1.s8 %v3065_v37 }
  0xb1   : > { %1960 = vst [vmem:[%s2747_s17 + $0x4f0] sm:$0xff] %v1448_v8  ;;  %v940_v34 = vand.u32 255, %v428_v17  ;;  %1961 = vst [vmem:[%s2747_s17 + $0x4f8] sm:$0xff] %v1449_v49  ;;  %v941_v32 = vand.u32 255, %v429_v23  ;;  %v942_v33 = vand.u32 255, %v430_v50  ;;  %v433_v38 = vunpack.c.1.s8 %v3070_v40 }
  0xb2   : > { %v943_v45 = vand.u32 255, %v431_v51  ;;  %1962 = vst [vmem:[%s2747_s17 + $0x500] sm:$0xff] %v1450_v27  ;;  %1963 = vst [vmem:[%s2747_s17 + $0x508] sm:$0xff] %v1451_v59  ;;  %v944_v52 = vand.u32 255, %v432_v35  ;;  %v434_v53 = vunpack.c.1.s8 %v3079_v48  ;;  %v435_v56 = vunpack.c.1.s8 %v3082_v43 }
  0xb3   : > { %v1452_v47 = vcvt.s32.f32 %v940_v34  ;;  %v1453_v0 = vcvt.s32.f32 %v941_v32  ;;  %v1454_v1 = vcvt.s32.f32 %v942_v33  ;;  %v945_v55 = vand.u32 255, %v433_v38 }
  0xb4   : > { %v1455_v54 = vcvt.s32.f32 %v943_v45  ;;  %v1456_v62 = vcvt.s32.f32 %v944_v52  ;;  %v946_v9 = vand.u32 255, %v434_v53  ;;  %v947_v4 = vand.u32 255, %v435_v56 }
  0xb5   : > { %1964 = vst [vmem:[%s2747_s17 + $0x510] sm:$0xff] %v1452_v47  ;;  %v436_v5 = vunpack.c.1.s8 %v3089_v60  ;;  %1965 = vst [vmem:[%s2747_s17 + $0x518] sm:$0xff] %v1453_v0  ;;  %v1457_v15 = vcvt.s32.f32 %v945_v55  ;;  %v437_v16 = vunpack.c.1.s8 %v3096_v2  ;;  %v438_v6 = vunpack.c.1.s8 %v3099_v63 }
  0xb6   : > { %1966 = vst [vmem:[%s2747_s17 + $0x520] sm:$0xff] %v1454_v1  ;;  %1967 = vst [vmem:[%s2747_s17 + $0x528] sm:$0xff] %v1455_v54  ;;  %v439_v21 = vunpack.c.1.s8 %v3102_v3  ;;  %v1458_v8 = vcvt.s32.f32 %v946_v9  ;;  %v1459_v41 = vcvt.s32.f32 %v947_v4  ;;  %v440_v17 = vunpack.c.1.s8 %v3105_v11 }
  0xb7   : > { %1968 = vst [vmem:[%s2747_s17 + $0x530] sm:$0xff] %v1456_v62  ;;  %v948_v42 = vand.u32 255, %v436_v5  ;;  %1969 = vst [vmem:[%s2747_s17 + $0x538] sm:$0xff] %v1457_v15  ;;  %v949_v49 = vand.u32 255, %v437_v16  ;;  %v950_v23 = vand.u32 255, %v438_v6  ;;  %v441_v51 = vunpack.c.1.s8 %v3110_v12 }
  0xb8   : > { %v951_v50 = vand.u32 255, %v439_v21  ;;  %1970 = vst [vmem:[%s2747_s17 + $0x540] sm:$0xff] %v1458_v8  ;;  %1971 = vst [vmem:[%s2747_s17 + $0x548] sm:$0xff] %v1459_v41  ;;  %v952_v59 = vand.u32 255, %v440_v17  ;;  %v442_v34 = vunpack.c.1.s8 %v3119_v20  ;;  %v443_v35 = vunpack.c.1.s8 %v3122_v44 }
  0xb9   : > { %v1460_v27 = vcvt.s32.f32 %v948_v42  ;;  %v1461_v32 = vcvt.s32.f32 %v949_v49  ;;  %v1462_v33 = vcvt.s32.f32 %v950_v23  ;;  %v953_v38 = vand.u32 255, %v441_v51 }
  0xba   : > { %v1463_v45 = vcvt.s32.f32 %v951_v50  ;;  %v1464_v47 = vcvt.s32.f32 %v952_v59  ;;  %v954_v52 = vand.u32 255, %v442_v34  ;;  %v955_v53 = vand.u32 255, %v443_v35 }
  0xbb   : > { %1972 = vst [vmem:[%s2747_s17 + $0x550] sm:$0xff] %v1460_v27  ;;  %v444_v56 = vunpack.c.1.s8 %v3129_v28  ;;  %1973 = vst [vmem:[%s2747_s17 + $0x558] sm:$0xff] %v1461_v32  ;;  %v1465_v0 = vcvt.s32.f32 %v953_v38  ;;  %v445_v1 = vunpack.c.1.s8 %v3136_v36  ;;  %v446_v54 = vunpack.c.1.s8 %v3139_v39 }
  0xbc   : > { %1974 = vst [vmem:[%s2747_s17 + $0x560] sm:$0xff] %v1462_v33  ;;  %1975 = vst [vmem:[%s2747_s17 + $0x568] sm:$0xff] %v1463_v45  ;;  %v447_v55 = vunpack.c.1.s8 %v3142_v31  ;;  %v1466_v62 = vcvt.s32.f32 %v954_v52  ;;  %v1467_v9 = vcvt.s32.f32 %v955_v53  ;;  %v448_v5 = vunpack.c.1.s8 %v3145_v46 }
  0xbd   : > { %1976 = vst [vmem:[%s2747_s17 + $0x570] sm:$0xff] %v1464_v47  ;;  %v956_v4 = vand.u32 255, %v444_v56  ;;  %1977 = vst [vmem:[%s2747_s17 + $0x578] sm:$0xff] %v1465_v0  ;;  %v957_v15 = vand.u32 255, %v445_v1  ;;  %v958_v16 = vand.u32 255, %v446_v54  ;;  %v449_v21 = vunpack.c.1.s8 %v3150_v57 }
  0xbe   : > { %v959_v6 = vand.u32 255, %v447_v55  ;;  %1978 = vst [vmem:[%s2747_s17 + $0x580] sm:$0xff] %v1466_v62  ;;  %1979 = vst [vmem:[%s2747_s17 + $0x588] sm:$0xff] %v1467_v9  ;;  %v960_v41 = vand.u32 255, %v448_v5  ;;  %v450_v42 = vunpack.c.1.s8 %v3159_v61  ;;  %v451_v17 = vunpack.c.1.s8 %v3162_v58 }
  0xbf   : > { %v1468_v8 = vcvt.s32.f32 %v956_v4  ;;  %v1469_v49 = vcvt.s32.f32 %v957_v15  ;;  %v1470_v23 = vcvt.s32.f32 %v958_v16  ;;  %v961_v51 = vand.u32 255, %v449_v21 }
  0xc0   : > { %v1471_v50 = vcvt.s32.f32 %v959_v6  ;;  %v1472_v27 = vcvt.s32.f32 %v960_v41  ;;  %v962_v59 = vand.u32 255, %v450_v42  ;;  %v963_v34 = vand.u32 255, %v451_v17 }
  0xc1   : > { %1980 = vst [vmem:[%s2747_s17 + $0x590] sm:$0xff] %v1468_v8  ;;  %v452_v35 = vunpack.c.1.s8 %v3169_v7  ;;  %1981 = vst [vmem:[%s2747_s17 + $0x598] sm:$0xff] %v1469_v49  ;;  %v1473_v32 = vcvt.s32.f32 %v961_v51  ;;  %v453_v33 = vunpack.c.1.s8 %v3176_v13  ;;  %v454_v45 = vunpack.c.1.s8 %v3179_v14 }
  0xc2   : > { %1982 = vst [vmem:[%s2747_s17 + $0x5a0] sm:$0xff] %v1470_v23  ;;  %1983 = vst [vmem:[%s2747_s17 + $0x5a8] sm:$0xff] %v1471_v50  ;;  %v455_v38 = vunpack.c.1.s8 %v3182_v22  ;;  %v1474_v47 = vcvt.s32.f32 %v962_v59  ;;  %v1475_v52 = vcvt.s32.f32 %v963_v34  ;;  %v456_v56 = vunpack.c.1.s8 %v3185_v25 }
  0xc3   : > { %1984 = vst [vmem:[%s2747_s17 + $0x5b0] sm:$0xff] %v1472_v27  ;;  %v964_v53 = vand.u32 255, %v452_v35  ;;  %1985 = vst [vmem:[%s2747_s17 + $0x5b8] sm:$0xff] %v1473_v32  ;;  %v965_v0 = vand.u32 255, %v453_v33  ;;  %v966_v1 = vand.u32 255, %v454_v45  ;;  %v457_v55 = vunpack.c.1.s8 %v3190_v26 }
  0xc4   : > { %v967_v54 = vand.u32 255, %v455_v38  ;;  %1986 = vst [vmem:[%s2747_s17 + $0x5c0] sm:$0xff] %v1474_v47  ;;  %1987 = vst [vmem:[%s2747_s17 + $0x5c8] sm:$0xff] %v1475_v52  ;;  %v968_v9 = vand.u32 255, %v456_v56  ;;  %v458_v4 = vunpack.c.2.s8 %v3039_v18  ;;  %v459_v5 = vunpack.c.2.s8 %v3042_v19 }
  0xc5   : > { %v1476_v62 = vcvt.s32.f32 %v964_v53  ;;  %v1477_v15 = vcvt.s32.f32 %v965_v0  ;;  %v1478_v16 = vcvt.s32.f32 %v966_v1  ;;  %v969_v21 = vand.u32 255, %v457_v55 }
  0xc6   : > { %v1479_v6 = vcvt.s32.f32 %v967_v54  ;;  %v1480_v8 = vcvt.s32.f32 %v968_v9  ;;  %v970_v41 = vand.u32 255, %v458_v4  ;;  %v971_v42 = vand.u32 255, %v459_v5 }
  0xc7   : > { %1988 = vst [vmem:[%s2747_s17 + $0x5d0] sm:$0xff] %v1476_v62  ;;  %v460_v17 = vunpack.c.2.s8 %v3049_v24  ;;  %1989 = vst [vmem:[%s2747_s17 + $0x5d8] sm:$0xff] %v1477_v15  ;;  %v1481_v49 = vcvt.s32.f32 %v969_v21  ;;  %v461_v23 = vunpack.c.2.s8 %v3056_v29  ;;  %v462_v50 = vunpack.c.2.s8 %v3059_v30 }
  0xc8   : > { %1990 = vst [vmem:[%s2747_s17 + $0x5e0] sm:$0xff] %v1478_v16  ;;  %1991 = vst [vmem:[%s2747_s17 + $0x5e8] sm:$0xff] %v1479_v6  ;;  %v463_v51 = vunpack.c.2.s8 %v3062_v10  ;;  %v1482_v27 = vcvt.s32.f32 %v970_v41  ;;  %v1483_v59 = vcvt.s32.f32 %v971_v42  ;;  %v464_v35 = vunpack.c.2.s8 %v3065_v37 }
  0xc9   : > { %1992 = vst [vmem:[%s2747_s17 + $0x5f0] sm:$0xff] %v1480_v8  ;;  %v972_v34 = vand.u32 255, %v460_v17  ;;  %1993 = vst [vmem:[%s2747_s17 + $0x5f8] sm:$0xff] %v1481_v49  ;;  %v973_v32 = vand.u32 255, %v461_v23  ;;  %v974_v33 = vand.u32 255, %v462_v50  ;;  %v465_v38 = vunpack.c.2.s8 %v3070_v40 }
  0xca   : > { %v975_v45 = vand.u32 255, %v463_v51  ;;  %1994 = vst [vmem:[%s2747_s17 + $0x600] sm:$0xff] %v1482_v27  ;;  %1995 = vst [vmem:[%s2747_s17 + $0x608] sm:$0xff] %v1483_v59  ;;  %v976_v52 = vand.u32 255, %v464_v35  ;;  %v466_v53 = vunpack.c.2.s8 %v3079_v48  ;;  %v467_v56 = vunpack.c.2.s8 %v3082_v43 }
  0xcb   : > { %v1484_v47 = vcvt.s32.f32 %v972_v34  ;;  %v1485_v0 = vcvt.s32.f32 %v973_v32  ;;  %v1486_v1 = vcvt.s32.f32 %v974_v33  ;;  %v977_v55 = vand.u32 255, %v465_v38 }
  0xcc   : > { %v1487_v54 = vcvt.s32.f32 %v975_v45  ;;  %v1488_v62 = vcvt.s32.f32 %v976_v52  ;;  %v978_v9 = vand.u32 255, %v466_v53  ;;  %v979_v4 = vand.u32 255, %v467_v56 }
  0xcd   : > { %1996 = vst [vmem:[%s2747_s17 + $0x610] sm:$0xff] %v1484_v47  ;;  %v468_v5 = vunpack.c.2.s8 %v3089_v60  ;;  %1997 = vst [vmem:[%s2747_s17 + $0x618] sm:$0xff] %v1485_v0  ;;  %v1489_v15 = vcvt.s32.f32 %v977_v55  ;;  %v469_v16 = vunpack.c.2.s8 %v3096_v2  ;;  %v470_v6 = vunpack.c.2.s8 %v3099_v63 }
  0xce   : > { %1998 = vst [vmem:[%s2747_s17 + $0x620] sm:$0xff] %v1486_v1  ;;  %1999 = vst [vmem:[%s2747_s17 + $0x628] sm:$0xff] %v1487_v54  ;;  %v471_v21 = vunpack.c.2.s8 %v3102_v3  ;;  %v1490_v8 = vcvt.s32.f32 %v978_v9  ;;  %v1491_v41 = vcvt.s32.f32 %v979_v4  ;;  %v472_v17 = vunpack.c.2.s8 %v3105_v11 }
  0xcf   : > { %2000 = vst [vmem:[%s2747_s17 + $0x630] sm:$0xff] %v1488_v62  ;;  %v980_v42 = vand.u32 255, %v468_v5  ;;  %2001 = vst [vmem:[%s2747_s17 + $0x638] sm:$0xff] %v1489_v15  ;;  %v981_v49 = vand.u32 255, %v469_v16  ;;  %v982_v23 = vand.u32 255, %v470_v6  ;;  %v473_v51 = vunpack.c.2.s8 %v3110_v12 }
  0xd0   : > { %v983_v50 = vand.u32 255, %v471_v21  ;;  %2002 = vst [vmem:[%s2747_s17 + $0x640] sm:$0xff] %v1490_v8  ;;  %2003 = vst [vmem:[%s2747_s17 + $0x648] sm:$0xff] %v1491_v41  ;;  %v984_v59 = vand.u32 255, %v472_v17  ;;  %v474_v34 = vunpack.c.2.s8 %v3119_v20  ;;  %v475_v35 = vunpack.c.2.s8 %v3122_v44 }
  0xd1   : > { %v1492_v27 = vcvt.s32.f32 %v980_v42  ;;  %v1493_v32 = vcvt.s32.f32 %v981_v49  ;;  %v1494_v33 = vcvt.s32.f32 %v982_v23  ;;  %v985_v38 = vand.u32 255, %v473_v51 }
  0xd2   : > { %v1495_v45 = vcvt.s32.f32 %v983_v50  ;;  %v1496_v47 = vcvt.s32.f32 %v984_v59  ;;  %v986_v52 = vand.u32 255, %v474_v34  ;;  %v987_v53 = vand.u32 255, %v475_v35 }
  0xd3   : > { %2004 = vst [vmem:[%s2747_s17 + $0x650] sm:$0xff] %v1492_v27  ;;  %v476_v56 = vunpack.c.2.s8 %v3129_v28  ;;  %2005 = vst [vmem:[%s2747_s17 + $0x658] sm:$0xff] %v1493_v32  ;;  %v1497_v0 = vcvt.s32.f32 %v985_v38  ;;  %v477_v1 = vunpack.c.2.s8 %v3136_v36  ;;  %v478_v54 = vunpack.c.2.s8 %v3139_v39 }
  0xd4   : > { %2006 = vst [vmem:[%s2747_s17 + $0x660] sm:$0xff] %v1494_v33  ;;  %2007 = vst [vmem:[%s2747_s17 + $0x668] sm:$0xff] %v1495_v45  ;;  %v479_v55 = vunpack.c.2.s8 %v3142_v31  ;;  %v1498_v62 = vcvt.s32.f32 %v986_v52  ;;  %v1499_v9 = vcvt.s32.f32 %v987_v53  ;;  %v480_v5 = vunpack.c.2.s8 %v3145_v46 }
  0xd5   : > { %2008 = vst [vmem:[%s2747_s17 + $0x670] sm:$0xff] %v1496_v47  ;;  %v988_v4 = vand.u32 255, %v476_v56  ;;  %2009 = vst [vmem:[%s2747_s17 + $0x678] sm:$0xff] %v1497_v0  ;;  %v989_v15 = vand.u32 255, %v477_v1  ;;  %v990_v16 = vand.u32 255, %v478_v54  ;;  %v481_v21 = vunpack.c.2.s8 %v3150_v57 }
  0xd6   : > { %v991_v6 = vand.u32 255, %v479_v55  ;;  %2010 = vst [vmem:[%s2747_s17 + $0x680] sm:$0xff] %v1498_v62  ;;  %2011 = vst [vmem:[%s2747_s17 + $0x688] sm:$0xff] %v1499_v9  ;;  %v992_v41 = vand.u32 255, %v480_v5  ;;  %v482_v42 = vunpack.c.2.s8 %v3159_v61  ;;  %v483_v17 = vunpack.c.2.s8 %v3162_v58 }
  0xd7   : > { %v1500_v8 = vcvt.s32.f32 %v988_v4  ;;  %v1501_v49 = vcvt.s32.f32 %v989_v15  ;;  %v1502_v23 = vcvt.s32.f32 %v990_v16  ;;  %v993_v51 = vand.u32 255, %v481_v21 }
  0xd8   : > { %v1503_v50 = vcvt.s32.f32 %v991_v6  ;;  %v1504_v27 = vcvt.s32.f32 %v992_v41  ;;  %v994_v59 = vand.u32 255, %v482_v42  ;;  %v995_v34 = vand.u32 255, %v483_v17 }
  0xd9   : > { %2012 = vst [vmem:[%s2747_s17 + $0x690] sm:$0xff] %v1500_v8  ;;  %v484_v35 = vunpack.c.2.s8 %v3169_v7  ;;  %2013 = vst [vmem:[%s2747_s17 + $0x698] sm:$0xff] %v1501_v49  ;;  %v1505_v32 = vcvt.s32.f32 %v993_v51  ;;  %v485_v33 = vunpack.c.2.s8 %v3176_v13  ;;  %v486_v45 = vunpack.c.2.s8 %v3179_v14 }
  0xda   : > { %2014 = vst [vmem:[%s2747_s17 + $0x6a0] sm:$0xff] %v1502_v23  ;;  %2015 = vst [vmem:[%s2747_s17 + $0x6a8] sm:$0xff] %v1503_v50  ;;  %v487_v38 = vunpack.c.2.s8 %v3182_v22  ;;  %v1506_v47 = vcvt.s32.f32 %v994_v59  ;;  %v1507_v52 = vcvt.s32.f32 %v995_v34  ;;  %v488_v56 = vunpack.c.2.s8 %v3185_v25 }
  0xdb   : > { %2016 = vst [vmem:[%s2747_s17 + $0x6b0] sm:$0xff] %v1504_v27  ;;  %v996_v53 = vand.u32 255, %v484_v35  ;;  %2017 = vst [vmem:[%s2747_s17 + $0x6b8] sm:$0xff] %v1505_v32  ;;  %v997_v0 = vand.u32 255, %v485_v33  ;;  %v998_v1 = vand.u32 255, %v486_v45  ;;  %v489_v55 = vunpack.c.2.s8 %v3190_v26 }
  0xdc   : > { %v999_v54 = vand.u32 255, %v487_v38  ;;  %2018 = vst [vmem:[%s2747_s17 + $0x6c0] sm:$0xff] %v1506_v47  ;;  %2019 = vst [vmem:[%s2747_s17 + $0x6c8] sm:$0xff] %v1507_v52  ;;  %v1000_v9 = vand.u32 255, %v488_v56  ;;  %v490_v4 = vunpack.c.3.s8 %v3039_v18  ;;  %v491_v5 = vunpack.c.3.s8 %v3042_v19 }
  0xdd   : > { %v1508_v62 = vcvt.s32.f32 %v996_v53  ;;  %v1509_v15 = vcvt.s32.f32 %v997_v0  ;;  %v1510_v16 = vcvt.s32.f32 %v998_v1  ;;  %v1001_v21 = vand.u32 255, %v489_v55 }
  0xde   : > { %v1511_v6 = vcvt.s32.f32 %v999_v54  ;;  %v1512_v8 = vcvt.s32.f32 %v1000_v9  ;;  %v1002_v41 = vand.u32 255, %v490_v4  ;;  %v1003_v42 = vand.u32 255, %v491_v5 }
  0xdf   : > { %2020 = vst [vmem:[%s2747_s17 + $0x6d0] sm:$0xff] %v1508_v62  ;;  %v492_v17 = vunpack.c.3.s8 %v3049_v24  ;;  %2021 = vst [vmem:[%s2747_s17 + $0x6d8] sm:$0xff] %v1509_v15  ;;  %v1513_v18 = vcvt.s32.f32 %v1001_v21  ;;  %v493_v19 = vunpack.c.3.s8 %v3056_v29  ;;  %v494_v49 = vunpack.c.3.s8 %v3059_v30 }
  0xe0   : > { %2022 = vst [vmem:[%s2747_s17 + $0x6e0] sm:$0xff] %v1510_v16  ;;  %2023 = vst [vmem:[%s2747_s17 + $0x6e8] sm:$0xff] %v1511_v6  ;;  %v495_v23 = vunpack.c.3.s8 %v3062_v10  ;;  %v1514_v50 = vcvt.s32.f32 %v1002_v41  ;;  %v1515_v51 = vcvt.s32.f32 %v1003_v42  ;;  %v496_v59 = vunpack.c.3.s8 %v3065_v37 }
  0xe1   : > { %2024 = vst [vmem:[%s2747_s17 + $0x6f0] sm:$0xff] %v1512_v8  ;;  %v1004_v27 = vand.u32 255, %v492_v17  ;;  %2025 = vst [vmem:[%s2747_s17 + $0x6f8] sm:$0xff] %v1513_v18  ;;  %v1005_v24 = vand.u32 255, %v493_v19  ;;  %v1006_v34 = vand.u32 255, %v494_v49  ;;  %v497_v32 = vunpack.c.3.s8 %v3070_v40 }
  0xe2   : > { %v1007_v35 = vand.u32 255, %v495_v23  ;;  %2026 = vst [vmem:[%s2747_s17 + $0x700] sm:$0xff] %v1514_v50  ;;  %2027 = vst [vmem:[%s2747_s17 + $0x708] sm:$0xff] %v1515_v51  ;;  %v1008_v30 = vand.u32 255, %v496_v59  ;;  %v498_v10 = vunpack.c.3.s8 %v3079_v48  ;;  %v499_v33 = vunpack.c.3.s8 %v3082_v43 }
  0xe3   : > { %v1516_v29 = vcvt.s32.f32 %v1004_v27  ;;  %v1517_v45 = vcvt.s32.f32 %v1005_v24  ;;  %v1518_v37 = vcvt.s32.f32 %v1006_v34  ;;  %v1009_v47 = vand.u32 255, %v497_v32 }
  0xe4   : > { %v1519_v38 = vcvt.s32.f32 %v1007_v35  ;;  %v1520_v52 = vcvt.s32.f32 %v1008_v30  ;;  %v1010_v40 = vand.u32 255, %v498_v10  ;;  %v1011_v53 = vand.u32 255, %v499_v33 }
  0xe5   : > { %2028 = vst [vmem:[%s2747_s17 + $0x710] sm:$0xff] %v1516_v29  ;;  %v500_v56 = vunpack.c.3.s8 %v3089_v60  ;;  %2029 = vst [vmem:[%s2747_s17 + $0x718] sm:$0xff] %v1517_v45  ;;  %v1521_v48 = vcvt.s32.f32 %v1009_v47  ;;  %v501_v43 = vunpack.c.3.s8 %v3096_v2  ;;  %v502_v0 = vunpack.c.3.s8 %v3099_v63  ;;  %v3394_v47 = vld [vmem:[%s2683_s30 + $0x208] sm:$0xff] }
  0xe6   : > { %2030 = vst [vmem:[%s2747_s17 + $0x720] sm:$0xff] %v1518_v37  ;;  %2031 = vst [vmem:[%s2747_s17 + $0x728] sm:$0xff] %v1519_v38  ;;  %v503_v1 = vunpack.c.3.s8 %v3102_v3  ;;  %v1522_v54 = vcvt.s32.f32 %v1010_v40  ;;  %v1523_v55 = vcvt.s32.f32 %v1011_v53  ;;  %v504_v9 = vunpack.c.3.s8 %v3105_v11  ;;  %v3391_v38 = vld [vmem:[%s2683_s30 + $0x200] sm:$0xff] }
  0xe7   : > { %2032 = vst [vmem:[%s2747_s17 + $0x730] sm:$0xff] %v1520_v52  ;;  %v1012_v62 = vand.u32 255, %v500_v56  ;;  %2033 = vst [vmem:[%s2747_s17 + $0x738] sm:$0xff] %v1521_v48  ;;  %v1013_v60 = vand.u32 255, %v501_v43  ;;  %v1014_v4 = vand.u32 255, %v502_v0  ;;  %v505_v15 = vunpack.c.3.s8 %v3110_v12  ;;  %v3401_v48 = vld [vmem:[%s2683_s30 + $0x210] sm:$0xff] }
  0xe8   : > { %v1015_v5 = vand.u32 255, %v503_v1  ;;  %2034 = vst [vmem:[%s2747_s17 + $0x740] sm:$0xff] %v1522_v54  ;;  %2035 = vst [vmem:[%s2747_s17 + $0x748] sm:$0xff] %v1523_v55  ;;  %v1016_v63 = vand.u32 255, %v504_v9  ;;  %v506_v3 = vunpack.c.3.s8 %v3119_v20  ;;  %v507_v16 = vunpack.c.3.s8 %v3122_v44  ;;  %v3408_v54 = vld [vmem:[%s2683_s30 + $0x218] sm:$0xff]  ;;  %v3411_v55 = vld [vmem:[%s2683_s30 + $0x220] sm:$0xff] }
  0xe9   : > { %v1524_v2 = vcvt.s32.f32 %v1012_v62  ;;  %v1525_v6 = vcvt.s32.f32 %v1013_v60  ;;  %v1526_v11 = vcvt.s32.f32 %v1014_v4  ;;  %v1017_v8 = vand.u32 255, %v505_v15 }
  0xea   : > { %v1527_v21 = vcvt.s32.f32 %v1015_v5  ;;  %v1528_v41 = vcvt.s32.f32 %v1016_v63  ;;  %v1018_v12 = vand.u32 255, %v506_v3  ;;  %v1019_v42 = vand.u32 255, %v507_v16  ;;  %v3417_v5 = vld [vmem:[%s2683_s30 + $0x230] sm:$0xff]  ;;  %v3422_v16 = vld [vmem:[%s2683_s30 + $0x238] sm:$0xff] }
  0xeb   : > { %2036 = vst [vmem:[%s2747_s17 + $0x750] sm:$0xff] %v1524_v2  ;;  %v508_v17 = vunpack.c.3.s8 %v3129_v28  ;;  %2037 = vst [vmem:[%s2747_s17 + $0x758] sm:$0xff] %v1525_v6  ;;  %v1529_v20 = vcvt.s32.f32 %v1017_v8  ;;  %v509_v44 = vunpack.c.3.s8 %v3136_v36  ;;  %v510_v18 = vunpack.c.3.s8 %v3139_v39 }
  0xec   : > { %2038 = vst [vmem:[%s2747_s17 + $0x760] sm:$0xff] %v1526_v11  ;;  %2039 = vst [vmem:[%s2747_s17 + $0x768] sm:$0xff] %v1527_v21  ;;  %v511_v19 = vunpack.c.3.s8 %v3142_v31  ;;  %v1530_v49 = vcvt.s32.f32 %v1018_v12  ;;  %v1531_v23 = vcvt.s32.f32 %v1019_v42  ;;  %v512_v51 = vunpack.c.3.s8 %v3145_v46  ;;  %v3434_v12 = vld [vmem:[%s2683_s30 + $0x248] sm:$0xff] }
  0xed   : > { %2040 = vst [vmem:[%s2747_s17 + $0x770] sm:$0xff] %v1528_v41  ;;  %v1020_v50 = vand.u32 255, %v508_v17  ;;  %2041 = vst [vmem:[%s2747_s17 + $0x778] sm:$0xff] %v1529_v20  ;;  %v1021_v28 = vand.u32 255, %v509_v44  ;;  %v1022_v27 = vand.u32 255, %v510_v18  ;;  %v513_v24 = vunpack.c.3.s8 %v3150_v57  ;;  %v3431_v41 = vld [vmem:[%s2683_s30 + $0x240] sm:$0xff] }
  0xee   : > { %v1023_v59 = vand.u32 255, %v511_v19  ;;  %2042 = vst [vmem:[%s2747_s17 + $0x780] sm:$0xff] %v1530_v49  ;;  %2043 = vst [vmem:[%s2747_s17 + $0x788] sm:$0xff] %v1531_v23  ;;  %v1024_v39 = vand.u32 255, %v512_v51  ;;  %v514_v31 = vunpack.c.3.s8 %v3159_v61  ;;  %v515_v34 = vunpack.c.3.s8 %v3162_v58 }
  0xef   : > { %v1532_v36 = vcvt.s32.f32 %v1020_v50  ;;  %v1533_v35 = vcvt.s32.f32 %v1021_v28  ;;  %v1534_v46 = vcvt.s32.f32 %v1022_v27  ;;  %v1025_v29 = vand.u32 255, %v513_v24  ;;  %v3441_v50 = vld [vmem:[%s2683_s30 + $0x250] sm:$0xff]  ;;  %v3448_v24 = vld [vmem:[%s2683_s30 + $0x258] sm:$0xff] }
  0xf0   : > { %v1535_v32 = vcvt.s32.f32 %v1023_v59  ;;  %v1536_v57 = vcvt.s32.f32 %v1024_v39  ;;  %v1026_v30 = vand.u32 255, %v514_v31  ;;  %v1027_v10 = vand.u32 255, %v515_v34  ;;  %v3454_v39 = vld [vmem:[%s2683_s30 + $0x268] sm:$0xff] }
  0xf1   : > { %2044 = vst [vmem:[%s2747_s17 + $0x790] sm:$0xff] %v1532_v36  ;;  %v516_v33 = vunpack.c.3.s8 %v3169_v7  ;;  %2045 = vst [vmem:[%s2747_s17 + $0x798] sm:$0xff] %v1533_v35  ;;  %v1537_v61 = vcvt.s32.f32 %v1025_v29  ;;  %v517_v58 = vunpack.c.3.s8 %v3176_v13  ;;  %v518_v45 = vunpack.c.3.s8 %v3179_v14  ;;  %v3451_v36 = vld [vmem:[%s2683_s30 + $0x260] sm:$0xff] }
  0xf2   : > { %2046 = vst [vmem:[%s2747_s17 + $0x7a0] sm:$0xff] %v1534_v46  ;;  %2047 = vst [vmem:[%s2747_s17 + $0x7a8] sm:$0xff] %v1535_v32  ;;  %v519_v37 = vunpack.c.3.s8 %v3182_v22  ;;  %v1538_v52 = vcvt.s32.f32 %v1026_v30  ;;  %v1539_v7 = vcvt.s32.f32 %v1027_v10  ;;  %v520_v53 = vunpack.c.3.s8 %v3185_v25  ;;  %v3457_v32 = vld [vmem:[%s2683_s30 + $0x270] sm:$0xff] }
  0xf3   : > { %2048 = vst [vmem:[%s2747_s17 + $0x7b0] sm:$0xff] %v1536_v57  ;;  %v1028_v40 = vand.u32 255, %v516_v33  ;;  %2049 = vst [vmem:[%s2747_s17 + $0x7b8] sm:$0xff] %v1537_v61  ;;  %v1029_v13 = vand.u32 255, %v517_v58  ;;  %v1030_v56 = vand.u32 255, %v518_v45  ;;  %v521_v22 = vunpack.c.3.s8 %v3190_v26  ;;  %v3414_v26 = vld [vmem:[%s2683_s30 + $0x228] sm:$0xff] }
  0xf4   : > { %v1031_v14 = vand.u32 255, %v519_v37  ;;  %2050 = vst [vmem:[%s2747_s17 + $0x7c0] sm:$0xff] %v1538_v52  ;;  %2051 = vst [vmem:[%s2747_s17 + $0x7c8] sm:$0xff] %v1539_v7  ;;  %v1032_v0 = vand.u32 255, %v520_v53  ;;  %v522_v1 = vunpack.c.0.s8 %v3391_v38  ;;  %v523_v25 = vunpack.c.0.s8 %v3394_v47  ;;  %v3462_v33 = vld [vmem:[%s2683_s30 + $0x278] sm:$0xff]  ;;  %v3471_v52 = vld [vmem:[%s2683_s30 + $0x280] sm:$0xff] }
  0xf5   : > { %v1540_v43 = vcvt.s32.f32 %v1028_v40  ;;  %v1541_v62 = vcvt.s32.f32 %v1029_v13  ;;  %v1542_v9 = vcvt.s32.f32 %v1030_v56  ;;  %v1033_v4 = vand.u32 255, %v521_v22  ;;  %v3474_v7 = vld [vmem:[%s2683_s30 + $0x288] sm:$0xff] }
  0xf6   : > { %v1543_v60 = vcvt.s32.f32 %v1031_v14  ;;  %v1544_v15 = vcvt.s32.f32 %v1032_v0  ;;  %v1034_v2 = vand.u32 255, %v522_v1  ;;  %v1035_v63 = vand.u32 255, %v523_v25  ;;  %v3481_v1 = vld [vmem:[%s2683_s30 + $0x290] sm:$0xff] }
  0xf7   : > { %2052 = vst [vmem:[%s2747_s17 + $0x7d0] sm:$0xff] %v1540_v43  ;;  %v524_v3 = vunpack.c.0.s8 %v3401_v48  ;;  %2053 = vst [vmem:[%s2747_s17 + $0x7d8] sm:$0xff] %v1541_v62  ;;  %v1545_v6 = vcvt.s32.f32 %v1033_v4  ;;  %v525_v11 = vunpack.c.0.s8 %v3408_v54  ;;  %v526_v21 = vunpack.c.0.s8 %v3411_v55  ;;  %v3488_v4 = vld [vmem:[%s2683_s30 + $0x298] sm:$0xff] }
  0xf8   : > { %2054 = vst [vmem:[%s2747_s17 + $0x7e0] sm:$0xff] %v1542_v9  ;;  %2055 = vst [vmem:[%s2747_s17 + $0x7e8] sm:$0xff] %v1543_v60  ;;  %v527_v8 = vunpack.c.0.s8 %v3414_v26  ;;  %v1546_v42 = vcvt.s32.f32 %v1034_v2  ;;  %v1547_v17 = vcvt.s32.f32 %v1035_v63  ;;  %v528_v44 = vunpack.c.0.s8 %v3417_v5  ;;  %v3494_v2 = vld [vmem:[%s2683_s30 + $0x2a8] sm:$0xff] }
  0xf9   : > { %2056 = vst [vmem:[%s2747_s17 + $0x7f0] sm:$0xff] %v1544_v15  ;;  %v1036_v20 = vand.u32 255, %v524_v3  ;;  %2057 = vst [vmem:[%s2747_s17 + $0x7f8] sm:$0xff] %v1545_v6  ;;  %v1037_v18 = vand.u32 255, %v525_v11  ;;  %v1038_v19 = vand.u32 255, %v526_v21  ;;  %v529_v23 = vunpack.c.0.s8 %v3422_v16  ;;  %v3491_v15 = vld [vmem:[%s2683_s30 + $0x2a0] sm:$0xff] }
  0xfa   : > { %v1039_v49 = vand.u32 255, %v527_v8  ;;  %2058 = vst [vmem:[%s2747_s17 + $0x800] sm:$0xff] %v1546_v42  ;;  %2059 = vst [vmem:[%s2747_s17 + $0x808] sm:$0xff] %v1547_v17  ;;  %v1040_v28 = vand.u32 255, %v528_v44  ;;  %v530_v27 = vunpack.c.0.s8 %v3431_v41  ;;  %v531_v59 = vunpack.c.0.s8 %v3434_v12  ;;  %v3497_v21 = vld [vmem:[%s2683_s30 + $0x2b0] sm:$0xff]  ;;  %v3502_v44 = vld [vmem:[%s2683_s30 + $0x2b8] sm:$0xff] }
  0xfb   : > { %v1548_v51 = vcvt.s32.f32 %v1036_v20  ;;  %v1549_v31 = vcvt.s32.f32 %v1037_v18  ;;  %v1550_v34 = vcvt.s32.f32 %v1038_v19  ;;  %v1041_v46 = vand.u32 255, %v529_v23 }
  0xfc   : > { %v1551_v35 = vcvt.s32.f32 %v1039_v49  ;;  %v1552_v29 = vcvt.s32.f32 %v1040_v28  ;;  %v1042_v57 = vand.u32 255, %v530_v27  ;;  %v1043_v30 = vand.u32 255, %v531_v59  ;;  %v3514_v28 = vld [vmem:[%s2683_s30 + $0x2c8] sm:$0xff] }
  0xfd   : > { %2060 = vst [vmem:[%s2747_s17 + $0x810] sm:$0xff] %v1548_v51  ;;  %v532_v10 = vunpack.c.0.s8 %v3441_v50  ;;  %2061 = vst [vmem:[%s2747_s17 + $0x818] sm:$0xff] %v1549_v31  ;;  %v1553_v61 = vcvt.s32.f32 %v1041_v46  ;;  %v533_v58 = vunpack.c.0.s8 %v3448_v24  ;;  %v534_v45 = vunpack.c.0.s8 %v3451_v36  ;;  %v3511_v51 = vld [vmem:[%s2683_s30 + $0x2c0] sm:$0xff] }
  0xfe   : > { %2062 = vst [vmem:[%s2747_s17 + $0x820] sm:$0xff] %v1550_v34  ;;  %2063 = vst [vmem:[%s2747_s17 + $0x828] sm:$0xff] %v1551_v35  ;;  %v535_v37 = vunpack.c.0.s8 %v3454_v39  ;;  %v1554_v40 = vcvt.s32.f32 %v1042_v57  ;;  %v1555_v53 = vcvt.s32.f32 %v1043_v30  ;;  %v536_v56 = vunpack.c.0.s8 %v3457_v32  ;;  %v3521_v30 = vld [vmem:[%s2683_s30 + $0x2d0] sm:$0xff] }
  0xff   : > { %2064 = vst [vmem:[%s2747_s17 + $0x830] sm:$0xff] %v1552_v29  ;;  %v1044_v13 = vand.u32 255, %v532_v10  ;;  %2065 = vst [vmem:[%s2747_s17 + $0x838] sm:$0xff] %v1553_v61  ;;  %v1045_v14 = vand.u32 255, %v533_v58  ;;  %v1046_v22 = vand.u32 255, %v534_v45  ;;  %v537_v0 = vunpack.c.0.s8 %v3462_v33 }
 0x100   : > { %v1047_v43 = vand.u32 255, %v535_v37  ;;  %2066 = vst [vmem:[%s2747_s17 + $0x840] sm:$0xff] %v1554_v40  ;;  %2067 = vst [vmem:[%s2747_s17 + $0x848] sm:$0xff] %v1555_v53  ;;  %v1048_v62 = vand.u32 255, %v536_v56  ;;  %v538_v9 = vunpack.c.0.s8 %v3471_v52  ;;  %v539_v60 = vunpack.c.0.s8 %v3474_v7  ;;  %v3528_v37 = vld [vmem:[%s2683_s30 + $0x2d8] sm:$0xff]  ;;  %v3531_v40 = vld [vmem:[%s2683_s30 + $0x2e0] sm:$0xff] }
 0x101   : > { %v1556_v25 = vcvt.s32.f32 %v1044_v13  ;;  %v1557_v63 = vcvt.s32.f32 %v1045_v14  ;;  %v1558_v3 = vcvt.s32.f32 %v1046_v22  ;;  %v1049_v11 = vand.u32 255, %v537_v0  ;;  %v3534_v53 = vld [vmem:[%s2683_s30 + $0x2e8] sm:$0xff] }
 0x102   : > { %v1559_v6 = vcvt.s32.f32 %v1047_v43  ;;  %v1560_v8 = vcvt.s32.f32 %v1048_v62  ;;  %v1050_v42 = vand.u32 255, %v538_v9  ;;  %v1051_v17 = vand.u32 255, %v539_v60  ;;  %v3537_v43 = vld [vmem:[%s2683_s30 + $0x2f0] sm:$0xff]  ;;  %v3542_v60 = vld [vmem:[%s2683_s30 + $0x2f8] sm:$0xff] }
 0x103   : > { %2068 = vst [vmem:[%s2747_s17 + $0x850] sm:$0xff] %v1556_v25  ;;  %v540_v20 = vunpack.c.0.s8 %v3481_v1  ;;  %2069 = vst [vmem:[%s2747_s17 + $0x858] sm:$0xff] %v1557_v63  ;;  %v1561_v18 = vcvt.s32.f32 %v1049_v11  ;;  %v541_v19 = vunpack.c.0.s8 %v3488_v4  ;;  %v542_v49 = vunpack.c.0.s8 %v3491_v15 }
 0x104   : > { %2070 = vst [vmem:[%s2747_s17 + $0x860] sm:$0xff] %v1558_v3  ;;  %2071 = vst [vmem:[%s2747_s17 + $0x868] sm:$0xff] %v1559_v6  ;;  %v543_v23 = vunpack.c.0.s8 %v3494_v2  ;;  %v1562_v27 = vcvt.s32.f32 %v1050_v42  ;;  %v1563_v59 = vcvt.s32.f32 %v1051_v17  ;;  %v544_v34 = vunpack.c.0.s8 %v3497_v21 }
 0x105   : > { %2072 = vst [vmem:[%s2747_s17 + $0x870] sm:$0xff] %v1560_v8  ;;  %v1052_v31 = vand.u32 255, %v540_v20  ;;  %2073 = vst [vmem:[%s2747_s17 + $0x878] sm:$0xff] %v1561_v18  ;;  %v1053_v35 = vand.u32 255, %v541_v19  ;;  %v1054_v46 = vand.u32 255, %v542_v49  ;;  %v545_v57 = vunpack.c.0.s8 %v3502_v44 }
 0x106   : > { %v1055_v29 = vand.u32 255, %v543_v23  ;;  %2074 = vst [vmem:[%s2747_s17 + $0x880] sm:$0xff] %v1562_v27  ;;  %2075 = vst [vmem:[%s2747_s17 + $0x888] sm:$0xff] %v1563_v59  ;;  %v1056_v61 = vand.u32 255, %v544_v34  ;;  %v546_v58 = vunpack.c.0.s8 %v3511_v51  ;;  %v547_v45 = vunpack.c.0.s8 %v3514_v28 }
 0x107   : > { %v1564_v10 = vcvt.s32.f32 %v1052_v31  ;;  %v1565_v13 = vcvt.s32.f32 %v1053_v35  ;;  %v1566_v56 = vcvt.s32.f32 %v1054_v46  ;;  %v1057_v22 = vand.u32 255, %v545_v57 }
 0x108   : > { %v1567_v14 = vcvt.s32.f32 %v1055_v29  ;;  %v1568_v0 = vcvt.s32.f32 %v1056_v61  ;;  %v1058_v25 = vand.u32 255, %v546_v58  ;;  %v1059_v62 = vand.u32 255, %v547_v45 }
 0x109   : > { %2076 = vst [vmem:[%s2747_s17 + $0x890] sm:$0xff] %v1564_v10  ;;  %v548_v9 = vunpack.c.0.s8 %v3521_v30  ;;  %2077 = vst [vmem:[%s2747_s17 + $0x898] sm:$0xff] %v1565_v13  ;;  %v1569_v63 = vcvt.s32.f32 %v1057_v22  ;;  %v549_v3 = vunpack.c.0.s8 %v3528_v37  ;;  %v550_v6 = vunpack.c.0.s8 %v3531_v40 }
 0x10a   : > { %2078 = vst [vmem:[%s2747_s17 + $0x8a0] sm:$0xff] %v1566_v56  ;;  %2079 = vst [vmem:[%s2747_s17 + $0x8a8] sm:$0xff] %v1567_v14  ;;  %v551_v11 = vunpack.c.0.s8 %v3534_v53  ;;  %v1570_v8 = vcvt.s32.f32 %v1058_v25  ;;  %v1571_v42 = vcvt.s32.f32 %v1059_v62  ;;  %v552_v20 = vunpack.c.0.s8 %v3537_v43 }
 0x10b   : > { %2080 = vst [vmem:[%s2747_s17 + $0x8b0] sm:$0xff] %v1568_v0  ;;  %v1060_v17 = vand.u32 255, %v548_v9  ;;  %2081 = vst [vmem:[%s2747_s17 + $0x8b8] sm:$0xff] %v1569_v63  ;;  %v1061_v18 = vand.u32 255, %v549_v3  ;;  %v1062_v19 = vand.u32 255, %v550_v6  ;;  %v553_v23 = vunpack.c.0.s8 %v3542_v60 }
 0x10c   : > { %v1063_v49 = vand.u32 255, %v551_v11  ;;  %2082 = vst [vmem:[%s2747_s17 + $0x8c0] sm:$0xff] %v1570_v8  ;;  %2083 = vst [vmem:[%s2747_s17 + $0x8c8] sm:$0xff] %v1571_v42  ;;  %v1064_v59 = vand.u32 255, %v552_v20  ;;  %v554_v31 = vunpack.c.1.s8 %v3391_v38  ;;  %v555_v34 = vunpack.c.1.s8 %v3394_v47 }
 0x10d   : > { %v1572_v27 = vcvt.s32.f32 %v1060_v17  ;;  %v1573_v35 = vcvt.s32.f32 %v1061_v18  ;;  %v1574_v46 = vcvt.s32.f32 %v1062_v19  ;;  %v1065_v57 = vand.u32 255, %v553_v23 }
 0x10e   : > { %v1575_v29 = vcvt.s32.f32 %v1063_v49  ;;  %v1576_v10 = vcvt.s32.f32 %v1064_v59  ;;  %v1066_v61 = vand.u32 255, %v554_v31  ;;  %v1067_v58 = vand.u32 255, %v555_v34 }
 0x10f   : > { %2084 = vst [vmem:[%s2747_s17 + $0x8d0] sm:$0xff] %v1572_v27  ;;  %v556_v45 = vunpack.c.1.s8 %v3401_v48  ;;  %2085 = vst [vmem:[%s2747_s17 + $0x8d8] sm:$0xff] %v1573_v35  ;;  %v1577_v13 = vcvt.s32.f32 %v1065_v57  ;;  %v557_v56 = vunpack.c.1.s8 %v3408_v54  ;;  %v558_v14 = vunpack.c.1.s8 %v3411_v55 }
 0x110   : > { %2086 = vst [vmem:[%s2747_s17 + $0x8e0] sm:$0xff] %v1574_v46  ;;  %2087 = vst [vmem:[%s2747_s17 + $0x8e8] sm:$0xff] %v1575_v29  ;;  %v559_v22 = vunpack.c.1.s8 %v3414_v26  ;;  %v1578_v0 = vcvt.s32.f32 %v1066_v61  ;;  %v1579_v25 = vcvt.s32.f32 %v1067_v58  ;;  %v560_v9 = vunpack.c.1.s8 %v3417_v5 }
 0x111   : > { %2088 = vst [vmem:[%s2747_s17 + $0x8f0] sm:$0xff] %v1576_v10  ;;  %v1068_v62 = vand.u32 255, %v556_v45  ;;  %2089 = vst [vmem:[%s2747_s17 + $0x8f8] sm:$0xff] %v1577_v13  ;;  %v1069_v63 = vand.u32 255, %v557_v56  ;;  %v1070_v3 = vand.u32 255, %v558_v14  ;;  %v561_v11 = vunpack.c.1.s8 %v3422_v16 }
 0x112   : > { %v1071_v6 = vand.u32 255, %v559_v22  ;;  %2090 = vst [vmem:[%s2747_s17 + $0x900] sm:$0xff] %v1578_v0  ;;  %2091 = vst [vmem:[%s2747_s17 + $0x908] sm:$0xff] %v1579_v25  ;;  %v1072_v42 = vand.u32 255, %v560_v9  ;;  %v562_v17 = vunpack.c.1.s8 %v3431_v41  ;;  %v563_v20 = vunpack.c.1.s8 %v3434_v12 }
 0x113   : > { %v1580_v8 = vcvt.s32.f32 %v1068_v62  ;;  %v1581_v18 = vcvt.s32.f32 %v1069_v63  ;;  %v1582_v19 = vcvt.s32.f32 %v1070_v3  ;;  %v1073_v23 = vand.u32 255, %v561_v11 }
 0x114   : > { %v1583_v49 = vcvt.s32.f32 %v1071_v6  ;;  %v1584_v27 = vcvt.s32.f32 %v1072_v42  ;;  %v1074_v59 = vand.u32 255, %v562_v17  ;;  %v1075_v31 = vand.u32 255, %v563_v20 }
 0x115   : > { %2092 = vst [vmem:[%s2747_s17 + $0x910] sm:$0xff] %v1580_v8  ;;  %v564_v34 = vunpack.c.1.s8 %v3441_v50  ;;  %2093 = vst [vmem:[%s2747_s17 + $0x918] sm:$0xff] %v1581_v18  ;;  %v1585_v35 = vcvt.s32.f32 %v1073_v23  ;;  %v565_v46 = vunpack.c.1.s8 %v3448_v24  ;;  %v566_v29 = vunpack.c.1.s8 %v3451_v36 }
 0x116   : > { %2094 = vst [vmem:[%s2747_s17 + $0x920] sm:$0xff] %v1582_v19  ;;  %2095 = vst [vmem:[%s2747_s17 + $0x928] sm:$0xff] %v1583_v49  ;;  %v567_v57 = vunpack.c.1.s8 %v3454_v39  ;;  %v1586_v10 = vcvt.s32.f32 %v1074_v59  ;;  %v1587_v61 = vcvt.s32.f32 %v1075_v31  ;;  %v568_v45 = vunpack.c.1.s8 %v3457_v32 }
 0x117   : > { %2096 = vst [vmem:[%s2747_s17 + $0x930] sm:$0xff] %v1584_v27  ;;  %v1076_v58 = vand.u32 255, %v564_v34  ;;  %2097 = vst [vmem:[%s2747_s17 + $0x938] sm:$0xff] %v1585_v35  ;;  %v1077_v13 = vand.u32 255, %v565_v46  ;;  %v1078_v56 = vand.u32 255, %v566_v29  ;;  %v569_v22 = vunpack.c.1.s8 %v3462_v33 }
 0x118   : > { %v1079_v14 = vand.u32 255, %v567_v57  ;;  %2098 = vst [vmem:[%s2747_s17 + $0x940] sm:$0xff] %v1586_v10  ;;  %2099 = vst [vmem:[%s2747_s17 + $0x948] sm:$0xff] %v1587_v61  ;;  %v1080_v25 = vand.u32 255, %v568_v45  ;;  %v570_v62 = vunpack.c.1.s8 %v3471_v52  ;;  %v571_v9 = vunpack.c.1.s8 %v3474_v7 }
 0x119   : > { %v1588_v0 = vcvt.s32.f32 %v1076_v58  ;;  %v1589_v63 = vcvt.s32.f32 %v1077_v13  ;;  %v1590_v3 = vcvt.s32.f32 %v1078_v56  ;;  %v1081_v11 = vand.u32 255, %v569_v22 }
 0x11a   : > { %v1591_v6 = vcvt.s32.f32 %v1079_v14  ;;  %v1592_v8 = vcvt.s32.f32 %v1080_v25  ;;  %v1082_v42 = vand.u32 255, %v570_v62  ;;  %v1083_v17 = vand.u32 255, %v571_v9 }
 0x11b   : > { %2100 = vst [vmem:[%s2747_s17 + $0x950] sm:$0xff] %v1588_v0  ;;  %v572_v20 = vunpack.c.1.s8 %v3481_v1  ;;  %2101 = vst [vmem:[%s2747_s17 + $0x958] sm:$0xff] %v1589_v63  ;;  %v1593_v18 = vcvt.s32.f32 %v1081_v11  ;;  %v573_v19 = vunpack.c.1.s8 %v3488_v4  ;;  %v574_v49 = vunpack.c.1.s8 %v3491_v15 }
 0x11c   : > { %2102 = vst [vmem:[%s2747_s17 + $0x960] sm:$0xff] %v1590_v3  ;;  %2103 = vst [vmem:[%s2747_s17 + $0x968] sm:$0xff] %v1591_v6  ;;  %v575_v23 = vunpack.c.1.s8 %v3494_v2  ;;  %v1594_v27 = vcvt.s32.f32 %v1082_v42  ;;  %v1595_v59 = vcvt.s32.f32 %v1083_v17  ;;  %v576_v34 = vunpack.c.1.s8 %v3497_v21 }
 0x11d   : > { %2104 = vst [vmem:[%s2747_s17 + $0x970] sm:$0xff] %v1592_v8  ;;  %v1084_v31 = vand.u32 255, %v572_v20  ;;  %2105 = vst [vmem:[%s2747_s17 + $0x978] sm:$0xff] %v1593_v18  ;;  %v1085_v35 = vand.u32 255, %v573_v19  ;;  %v1086_v46 = vand.u32 255, %v574_v49  ;;  %v577_v57 = vunpack.c.1.s8 %v3502_v44 }
 0x11e   : > { %v1087_v29 = vand.u32 255, %v575_v23  ;;  %2106 = vst [vmem:[%s2747_s17 + $0x980] sm:$0xff] %v1594_v27  ;;  %2107 = vst [vmem:[%s2747_s17 + $0x988] sm:$0xff] %v1595_v59  ;;  %v1088_v61 = vand.u32 255, %v576_v34  ;;  %v578_v58 = vunpack.c.1.s8 %v3511_v51  ;;  %v579_v45 = vunpack.c.1.s8 %v3514_v28 }
 0x11f   : > { %v1596_v10 = vcvt.s32.f32 %v1084_v31  ;;  %v1597_v13 = vcvt.s32.f32 %v1085_v35  ;;  %v1598_v56 = vcvt.s32.f32 %v1086_v46  ;;  %v1089_v22 = vand.u32 255, %v577_v57 }
 0x120   : > { %v1599_v14 = vcvt.s32.f32 %v1087_v29  ;;  %v1600_v0 = vcvt.s32.f32 %v1088_v61  ;;  %v1090_v25 = vand.u32 255, %v578_v58  ;;  %v1091_v62 = vand.u32 255, %v579_v45 }
 0x121   : > { %2108 = vst [vmem:[%s2747_s17 + $0x990] sm:$0xff] %v1596_v10  ;;  %v580_v9 = vunpack.c.1.s8 %v3521_v30  ;;  %2109 = vst [vmem:[%s2747_s17 + $0x998] sm:$0xff] %v1597_v13  ;;  %v1601_v63 = vcvt.s32.f32 %v1089_v22  ;;  %v581_v3 = vunpack.c.1.s8 %v3528_v37  ;;  %v582_v6 = vunpack.c.1.s8 %v3531_v40 }
 0x122   : > { %2110 = vst [vmem:[%s2747_s17 + $0x9a0] sm:$0xff] %v1598_v56  ;;  %2111 = vst [vmem:[%s2747_s17 + $0x9a8] sm:$0xff] %v1599_v14  ;;  %v583_v11 = vunpack.c.1.s8 %v3534_v53  ;;  %v1602_v8 = vcvt.s32.f32 %v1090_v25  ;;  %v1603_v42 = vcvt.s32.f32 %v1091_v62  ;;  %v584_v20 = vunpack.c.1.s8 %v3537_v43 }
 0x123   : > { %2112 = vst [vmem:[%s2747_s17 + $0x9b0] sm:$0xff] %v1600_v0  ;;  %v1092_v17 = vand.u32 255, %v580_v9  ;;  %2113 = vst [vmem:[%s2747_s17 + $0x9b8] sm:$0xff] %v1601_v63  ;;  %v1093_v18 = vand.u32 255, %v581_v3  ;;  %v1094_v19 = vand.u32 255, %v582_v6  ;;  %v585_v23 = vunpack.c.1.s8 %v3542_v60 }
 0x124   : > { %v1095_v49 = vand.u32 255, %v583_v11  ;;  %2114 = vst [vmem:[%s2747_s17 + $0x9c0] sm:$0xff] %v1602_v8  ;;  %2115 = vst [vmem:[%s2747_s17 + $0x9c8] sm:$0xff] %v1603_v42  ;;  %v1096_v59 = vand.u32 255, %v584_v20  ;;  %v586_v31 = vunpack.c.2.s8 %v3391_v38  ;;  %v587_v34 = vunpack.c.2.s8 %v3394_v47 }
 0x125   : > { %v1604_v27 = vcvt.s32.f32 %v1092_v17  ;;  %v1605_v35 = vcvt.s32.f32 %v1093_v18  ;;  %v1606_v46 = vcvt.s32.f32 %v1094_v19  ;;  %v1097_v57 = vand.u32 255, %v585_v23 }
 0x126   : > { %v1607_v29 = vcvt.s32.f32 %v1095_v49  ;;  %v1608_v10 = vcvt.s32.f32 %v1096_v59  ;;  %v1098_v61 = vand.u32 255, %v586_v31  ;;  %v1099_v58 = vand.u32 255, %v587_v34 }
 0x127   : > { %2116 = vst [vmem:[%s2747_s17 + $0x9d0] sm:$0xff] %v1604_v27  ;;  %v588_v45 = vunpack.c.2.s8 %v3401_v48  ;;  %2117 = vst [vmem:[%s2747_s17 + $0x9d8] sm:$0xff] %v1605_v35  ;;  %v1609_v13 = vcvt.s32.f32 %v1097_v57  ;;  %v589_v56 = vunpack.c.2.s8 %v3408_v54  ;;  %v590_v14 = vunpack.c.2.s8 %v3411_v55 }
 0x128   : > { %2118 = vst [vmem:[%s2747_s17 + $0x9e0] sm:$0xff] %v1606_v46  ;;  %2119 = vst [vmem:[%s2747_s17 + $0x9e8] sm:$0xff] %v1607_v29  ;;  %v591_v22 = vunpack.c.2.s8 %v3414_v26  ;;  %v1610_v0 = vcvt.s32.f32 %v1098_v61  ;;  %v1611_v25 = vcvt.s32.f32 %v1099_v58  ;;  %v592_v9 = vunpack.c.2.s8 %v3417_v5 }
 0x129   : > { %2120 = vst [vmem:[%s2747_s17 + $0x9f0] sm:$0xff] %v1608_v10  ;;  %v1100_v62 = vand.u32 255, %v588_v45  ;;  %2121 = vst [vmem:[%s2747_s17 + $0x9f8] sm:$0xff] %v1609_v13  ;;  %v1101_v63 = vand.u32 255, %v589_v56  ;;  %v1102_v3 = vand.u32 255, %v590_v14  ;;  %v593_v11 = vunpack.c.2.s8 %v3422_v16 }
 0x12a   : > { %v1103_v6 = vand.u32 255, %v591_v22  ;;  %2122 = vst [vmem:[%s2747_s17 + $0xa00] sm:$0xff] %v1610_v0  ;;  %2123 = vst [vmem:[%s2747_s17 + $0xa08] sm:$0xff] %v1611_v25  ;;  %v1104_v42 = vand.u32 255, %v592_v9  ;;  %v594_v17 = vunpack.c.2.s8 %v3431_v41  ;;  %v595_v20 = vunpack.c.2.s8 %v3434_v12 }
 0x12b   : > { %v1612_v8 = vcvt.s32.f32 %v1100_v62  ;;  %v1613_v18 = vcvt.s32.f32 %v1101_v63  ;;  %v1614_v19 = vcvt.s32.f32 %v1102_v3  ;;  %v1105_v23 = vand.u32 255, %v593_v11 }
 0x12c   : > { %v1615_v49 = vcvt.s32.f32 %v1103_v6  ;;  %v1616_v27 = vcvt.s32.f32 %v1104_v42  ;;  %v1106_v59 = vand.u32 255, %v594_v17  ;;  %v1107_v31 = vand.u32 255, %v595_v20 }
 0x12d   : > { %2124 = vst [vmem:[%s2747_s17 + $0xa10] sm:$0xff] %v1612_v8  ;;  %v596_v34 = vunpack.c.2.s8 %v3441_v50  ;;  %2125 = vst [vmem:[%s2747_s17 + $0xa18] sm:$0xff] %v1613_v18  ;;  %v1617_v35 = vcvt.s32.f32 %v1105_v23  ;;  %v597_v46 = vunpack.c.2.s8 %v3448_v24  ;;  %v598_v29 = vunpack.c.2.s8 %v3451_v36 }
 0x12e   : > { %2126 = vst [vmem:[%s2747_s17 + $0xa20] sm:$0xff] %v1614_v19  ;;  %2127 = vst [vmem:[%s2747_s17 + $0xa28] sm:$0xff] %v1615_v49  ;;  %v599_v57 = vunpack.c.2.s8 %v3454_v39  ;;  %v1618_v10 = vcvt.s32.f32 %v1106_v59  ;;  %v1619_v61 = vcvt.s32.f32 %v1107_v31  ;;  %v600_v45 = vunpack.c.2.s8 %v3457_v32 }
 0x12f   : > { %2128 = vst [vmem:[%s2747_s17 + $0xa30] sm:$0xff] %v1616_v27  ;;  %v1108_v58 = vand.u32 255, %v596_v34  ;;  %2129 = vst [vmem:[%s2747_s17 + $0xa38] sm:$0xff] %v1617_v35  ;;  %v1109_v13 = vand.u32 255, %v597_v46  ;;  %v1110_v56 = vand.u32 255, %v598_v29  ;;  %v601_v22 = vunpack.c.2.s8 %v3462_v33 }
 0x130   : > { %v1111_v14 = vand.u32 255, %v599_v57  ;;  %2130 = vst [vmem:[%s2747_s17 + $0xa40] sm:$0xff] %v1618_v10  ;;  %2131 = vst [vmem:[%s2747_s17 + $0xa48] sm:$0xff] %v1619_v61  ;;  %v1112_v25 = vand.u32 255, %v600_v45  ;;  %v602_v62 = vunpack.c.2.s8 %v3471_v52  ;;  %v603_v9 = vunpack.c.2.s8 %v3474_v7 }
 0x131   : > { %v1620_v0 = vcvt.s32.f32 %v1108_v58  ;;  %v1621_v63 = vcvt.s32.f32 %v1109_v13  ;;  %v1622_v3 = vcvt.s32.f32 %v1110_v56  ;;  %v1113_v11 = vand.u32 255, %v601_v22 }
 0x132   : > { %v1623_v6 = vcvt.s32.f32 %v1111_v14  ;;  %v1624_v8 = vcvt.s32.f32 %v1112_v25  ;;  %v1114_v42 = vand.u32 255, %v602_v62  ;;  %v1115_v17 = vand.u32 255, %v603_v9 }
 0x133   : > { %2132 = vst [vmem:[%s2747_s17 + $0xa50] sm:$0xff] %v1620_v0  ;;  %v604_v20 = vunpack.c.2.s8 %v3481_v1  ;;  %2133 = vst [vmem:[%s2747_s17 + $0xa58] sm:$0xff] %v1621_v63  ;;  %v1625_v18 = vcvt.s32.f32 %v1113_v11  ;;  %v605_v19 = vunpack.c.2.s8 %v3488_v4  ;;  %v606_v49 = vunpack.c.2.s8 %v3491_v15 }
 0x134   : > { %2134 = vst [vmem:[%s2747_s17 + $0xa60] sm:$0xff] %v1622_v3  ;;  %2135 = vst [vmem:[%s2747_s17 + $0xa68] sm:$0xff] %v1623_v6  ;;  %v607_v23 = vunpack.c.2.s8 %v3494_v2  ;;  %v1626_v27 = vcvt.s32.f32 %v1114_v42  ;;  %v1627_v59 = vcvt.s32.f32 %v1115_v17  ;;  %v608_v34 = vunpack.c.2.s8 %v3497_v21 }
 0x135   : > { %2136 = vst [vmem:[%s2747_s17 + $0xa70] sm:$0xff] %v1624_v8  ;;  %v1116_v31 = vand.u32 255, %v604_v20  ;;  %2137 = vst [vmem:[%s2747_s17 + $0xa78] sm:$0xff] %v1625_v18  ;;  %v1117_v35 = vand.u32 255, %v605_v19  ;;  %v1118_v46 = vand.u32 255, %v606_v49  ;;  %v609_v57 = vunpack.c.2.s8 %v3502_v44 }
 0x136   : > { %v1119_v29 = vand.u32 255, %v607_v23  ;;  %2138 = vst [vmem:[%s2747_s17 + $0xa80] sm:$0xff] %v1626_v27  ;;  %2139 = vst [vmem:[%s2747_s17 + $0xa88] sm:$0xff] %v1627_v59  ;;  %v1120_v61 = vand.u32 255, %v608_v34  ;;  %v610_v58 = vunpack.c.2.s8 %v3511_v51  ;;  %v611_v45 = vunpack.c.2.s8 %v3514_v28 }
 0x137   : > { %v1628_v10 = vcvt.s32.f32 %v1116_v31  ;;  %v1629_v13 = vcvt.s32.f32 %v1117_v35  ;;  %v1630_v56 = vcvt.s32.f32 %v1118_v46  ;;  %v1121_v22 = vand.u32 255, %v609_v57 }
 0x138   : > { %v1631_v14 = vcvt.s32.f32 %v1119_v29  ;;  %v1632_v0 = vcvt.s32.f32 %v1120_v61  ;;  %v1122_v25 = vand.u32 255, %v610_v58  ;;  %v1123_v62 = vand.u32 255, %v611_v45 }
 0x139   : > { %2140 = vst [vmem:[%s2747_s17 + $0xa90] sm:$0xff] %v1628_v10  ;;  %v612_v9 = vunpack.c.2.s8 %v3521_v30  ;;  %2141 = vst [vmem:[%s2747_s17 + $0xa98] sm:$0xff] %v1629_v13  ;;  %v1633_v63 = vcvt.s32.f32 %v1121_v22  ;;  %v613_v3 = vunpack.c.2.s8 %v3528_v37  ;;  %v614_v6 = vunpack.c.2.s8 %v3531_v40 }
 0x13a   : > { %2142 = vst [vmem:[%s2747_s17 + $0xaa0] sm:$0xff] %v1630_v56  ;;  %2143 = vst [vmem:[%s2747_s17 + $0xaa8] sm:$0xff] %v1631_v14  ;;  %v615_v11 = vunpack.c.2.s8 %v3534_v53  ;;  %v1634_v8 = vcvt.s32.f32 %v1122_v25  ;;  %v1635_v42 = vcvt.s32.f32 %v1123_v62  ;;  %v616_v20 = vunpack.c.2.s8 %v3537_v43 }
 0x13b   : > { %2144 = vst [vmem:[%s2747_s17 + $0xab0] sm:$0xff] %v1632_v0  ;;  %v1124_v17 = vand.u32 255, %v612_v9  ;;  %2145 = vst [vmem:[%s2747_s17 + $0xab8] sm:$0xff] %v1633_v63  ;;  %v1125_v18 = vand.u32 255, %v613_v3  ;;  %v1126_v19 = vand.u32 255, %v614_v6  ;;  %v617_v23 = vunpack.c.2.s8 %v3542_v60 }
 0x13c   : > { %v1127_v49 = vand.u32 255, %v615_v11  ;;  %2146 = vst [vmem:[%s2747_s17 + $0xac0] sm:$0xff] %v1634_v8  ;;  %2147 = vst [vmem:[%s2747_s17 + $0xac8] sm:$0xff] %v1635_v42  ;;  %v1128_v59 = vand.u32 255, %v616_v20  ;;  %v618_v31 = vunpack.c.3.s8 %v3391_v38  ;;  %v619_v34 = vunpack.c.3.s8 %v3394_v47 }
 0x13d   : > { %v1636_v27 = vcvt.s32.f32 %v1124_v17  ;;  %v1637_v35 = vcvt.s32.f32 %v1125_v18  ;;  %v1638_v46 = vcvt.s32.f32 %v1126_v19  ;;  %v1129_v57 = vand.u32 255, %v617_v23 }
 0x13e   : > { %v1639_v29 = vcvt.s32.f32 %v1127_v49  ;;  %v1640_v10 = vcvt.s32.f32 %v1128_v59  ;;  %v1130_v61 = vand.u32 255, %v618_v31  ;;  %v1131_v58 = vand.u32 255, %v619_v34 }
 0x13f   : > { %2148 = vst [vmem:[%s2747_s17 + $0xad0] sm:$0xff] %v1636_v27  ;;  %v620_v45 = vunpack.c.3.s8 %v3401_v48  ;;  %2149 = vst [vmem:[%s2747_s17 + $0xad8] sm:$0xff] %v1637_v35  ;;  %v1641_v38 = vcvt.s32.f32 %v1129_v57  ;;  %v621_v47 = vunpack.c.3.s8 %v3408_v54  ;;  %v622_v13 = vunpack.c.3.s8 %v3411_v55 }
 0x140   : > { %2150 = vst [vmem:[%s2747_s17 + $0xae0] sm:$0xff] %v1638_v46  ;;  %2151 = vst [vmem:[%s2747_s17 + $0xae8] sm:$0xff] %v1639_v29  ;;  %v623_v56 = vunpack.c.3.s8 %v3414_v26  ;;  %v1642_v14 = vcvt.s32.f32 %v1130_v61  ;;  %v1643_v22 = vcvt.s32.f32 %v1131_v58  ;;  %v624_v25 = vunpack.c.3.s8 %v3417_v5 }
 0x141   : > { %2152 = vst [vmem:[%s2747_s17 + $0xaf0] sm:$0xff] %v1640_v10  ;;  %v1132_v0 = vand.u32 255, %v620_v45  ;;  %2153 = vst [vmem:[%s2747_s17 + $0xaf8] sm:$0xff] %v1641_v38  ;;  %v1133_v48 = vand.u32 255, %v621_v47  ;;  %v1134_v62 = vand.u32 255, %v622_v13  ;;  %v625_v63 = vunpack.c.3.s8 %v3422_v16 }
 0x142   : > { %v1135_v9 = vand.u32 255, %v623_v56  ;;  %2154 = vst [vmem:[%s2747_s17 + $0xb00] sm:$0xff] %v1642_v14  ;;  %2155 = vst [vmem:[%s2747_s17 + $0xb08] sm:$0xff] %v1643_v22  ;;  %v1136_v55 = vand.u32 255, %v624_v25  ;;  %v626_v26 = vunpack.c.3.s8 %v3431_v41  ;;  %v627_v3 = vunpack.c.3.s8 %v3434_v12 }
 0x143   : > { %v1644_v54 = vcvt.s32.f32 %v1132_v0  ;;  %v1645_v6 = vcvt.s32.f32 %v1133_v48  ;;  %v1646_v5 = vcvt.s32.f32 %v1134_v62  ;;  %v1137_v8 = vand.u32 255, %v625_v63 }
 0x144   : > { %v1647_v11 = vcvt.s32.f32 %v1135_v9  ;;  %v1648_v42 = vcvt.s32.f32 %v1136_v55  ;;  %v1138_v16 = vand.u32 255, %v626_v26  ;;  %v1139_v17 = vand.u32 255, %v627_v3 }
 0x145   : > { %2156 = vst [vmem:[%s2747_s17 + $0xb10] sm:$0xff] %v1644_v54  ;;  %v628_v20 = vunpack.c.3.s8 %v3441_v50  ;;  %2157 = vst [vmem:[%s2747_s17 + $0xb18] sm:$0xff] %v1645_v6  ;;  %v1649_v41 = vcvt.s32.f32 %v1137_v8  ;;  %v629_v12 = vunpack.c.3.s8 %v3448_v24  ;;  %v630_v18 = vunpack.c.3.s8 %v3451_v36  ;;  %v3746_v8 = vld [vmem:[%s2683_s30 + $0x308] sm:$0xff] }
 0x146   : > { %2158 = vst [vmem:[%s2747_s17 + $0xb20] sm:$0xff] %v1646_v5  ;;  %2159 = vst [vmem:[%s2747_s17 + $0xb28] sm:$0xff] %v1647_v11  ;;  %v631_v19 = vunpack.c.3.s8 %v3454_v39  ;;  %v1650_v49 = vcvt.s32.f32 %v1138_v16  ;;  %v1651_v23 = vcvt.s32.f32 %v1139_v17  ;;  %v632_v59 = vunpack.c.3.s8 %v3457_v32  ;;  %v3743_v11 = vld [vmem:[%s2683_s30 + $0x300] sm:$0xff] }
 0x147   : > { %2160 = vst [vmem:[%s2747_s17 + $0xb30] sm:$0xff] %v1648_v42  ;;  %v1140_v27 = vand.u32 255, %v628_v20  ;;  %2161 = vst [vmem:[%s2747_s17 + $0xb38] sm:$0xff] %v1649_v41  ;;  %v1141_v50 = vand.u32 255, %v629_v12  ;;  %v1142_v31 = vand.u32 255, %v630_v18  ;;  %v633_v35 = vunpack.c.3.s8 %v3462_v33  ;;  %v3753_v41 = vld [vmem:[%s2683_s30 + $0x310] sm:$0xff] }
 0x148   : > { %v1143_v34 = vand.u32 255, %v631_v19  ;;  %2162 = vst [vmem:[%s2747_s17 + $0xb40] sm:$0xff] %v1650_v49  ;;  %2163 = vst [vmem:[%s2747_s17 + $0xb48] sm:$0xff] %v1651_v23  ;;  %v1144_v36 = vand.u32 255, %v632_v59  ;;  %v634_v39 = vunpack.c.3.s8 %v3471_v52  ;;  %v635_v46 = vunpack.c.3.s8 %v3474_v7  ;;  %v3760_v49 = vld [vmem:[%s2683_s30 + $0x318] sm:$0xff]  ;;  %v3763_v23 = vld [vmem:[%s2683_s30 + $0x320] sm:$0xff] }
 0x149   : > { %v1652_v24 = vcvt.s32.f32 %v1140_v27  ;;  %v1653_v29 = vcvt.s32.f32 %v1141_v50  ;;  %v1654_v32 = vcvt.s32.f32 %v1142_v31  ;;  %v1145_v10 = vand.u32 255, %v633_v35 }
 0x14a   : > { %v1655_v57 = vcvt.s32.f32 %v1143_v34  ;;  %v1656_v61 = vcvt.s32.f32 %v1144_v36  ;;  %v1146_v33 = vand.u32 255, %v634_v39  ;;  %v1147_v58 = vand.u32 255, %v635_v46  ;;  %v3769_v34 = vld [vmem:[%s2683_s30 + $0x330] sm:$0xff]  ;;  %v3774_v46 = vld [vmem:[%s2683_s30 + $0x338] sm:$0xff] }
 0x14b   : > { %2164 = vst [vmem:[%s2747_s17 + $0xb50] sm:$0xff] %v1652_v24  ;;  %v636_v45 = vunpack.c.3.s8 %v3481_v1  ;;  %2165 = vst [vmem:[%s2747_s17 + $0xb58] sm:$0xff] %v1653_v29  ;;  %v1657_v52 = vcvt.s32.f32 %v1145_v10  ;;  %v637_v7 = vunpack.c.3.s8 %v3488_v4  ;;  %v638_v38 = vunpack.c.3.s8 %v3491_v15 }
 0x14c   : > { %2166 = vst [vmem:[%s2747_s17 + $0xb60] sm:$0xff] %v1654_v32  ;;  %2167 = vst [vmem:[%s2747_s17 + $0xb68] sm:$0xff] %v1655_v57  ;;  %v639_v47 = vunpack.c.3.s8 %v3494_v2  ;;  %v1658_v13 = vcvt.s32.f32 %v1146_v33  ;;  %v1659_v56 = vcvt.s32.f32 %v1147_v58  ;;  %v640_v22 = vunpack.c.3.s8 %v3497_v21  ;;  %v3786_v33 = vld [vmem:[%s2683_s30 + $0x348] sm:$0xff] }
 0x14d   : > { %2168 = vst [vmem:[%s2747_s17 + $0xb70] sm:$0xff] %v1656_v61  ;;  %v1148_v14 = vand.u32 255, %v636_v45  ;;  %2169 = vst [vmem:[%s2747_s17 + $0xb78] sm:$0xff] %v1657_v52  ;;  %v1149_v1 = vand.u32 255, %v637_v7  ;;  %v1150_v0 = vand.u32 255, %v638_v38  ;;  %v641_v48 = vunpack.c.3.s8 %v3502_v44  ;;  %v3783_v61 = vld [vmem:[%s2683_s30 + $0x340] sm:$0xff] }
 0x14e   : > { %v1151_v25 = vand.u32 255, %v639_v47  ;;  %2170 = vst [vmem:[%s2747_s17 + $0xb80] sm:$0xff] %v1658_v13  ;;  %2171 = vst [vmem:[%s2747_s17 + $0xb88] sm:$0xff] %v1659_v56  ;;  %v1152_v15 = vand.u32 255, %v640_v22  ;;  %v642_v2 = vunpack.c.3.s8 %v3511_v51  ;;  %v643_v62 = vunpack.c.3.s8 %v3514_v28 }
 0x14f   : > { %v1660_v4 = vcvt.s32.f32 %v1148_v14  ;;  %v1661_v9 = vcvt.s32.f32 %v1149_v1  ;;  %v1662_v21 = vcvt.s32.f32 %v1150_v0  ;;  %v1153_v54 = vand.u32 255, %v641_v48  ;;  %v3793_v14 = vld [vmem:[%s2683_s30 + $0x350] sm:$0xff]  ;;  %v3800_v48 = vld [vmem:[%s2683_s30 + $0x358] sm:$0xff] }
 0x150   : > { %v1663_v63 = vcvt.s32.f32 %v1151_v25  ;;  %v1664_v44 = vcvt.s32.f32 %v1152_v15  ;;  %v1154_v55 = vand.u32 255, %v642_v2  ;;  %v1155_v26 = vand.u32 255, %v643_v62  ;;  %v3806_v15 = vld [vmem:[%s2683_s30 + $0x368] sm:$0xff] }
 0x151   : > { %2172 = vst [vmem:[%s2747_s17 + $0xb90] sm:$0xff] %v1660_v4  ;;  %v644_v3 = vunpack.c.3.s8 %v3521_v30  ;;  %2173 = vst [vmem:[%s2747_s17 + $0xb98] sm:$0xff] %v1661_v9  ;;  %v1665_v51 = vcvt.s32.f32 %v1153_v54  ;;  %v645_v28 = vunpack.c.3.s8 %v3528_v37  ;;  %v646_v6 = vunpack.c.3.s8 %v3531_v40  ;;  %v3803_v4 = vld [vmem:[%s2683_s30 + $0x360] sm:$0xff] }
 0x152   : > { %2174 = vst [vmem:[%s2747_s17 + $0xba0] sm:$0xff] %v1662_v21  ;;  %2175 = vst [vmem:[%s2747_s17 + $0xba8] sm:$0xff] %v1663_v63  ;;  %v647_v5 = vunpack.c.3.s8 %v3534_v53  ;;  %v1666_v42 = vcvt.s32.f32 %v1154_v55  ;;  %v1667_v30 = vcvt.s32.f32 %v1155_v26  ;;  %v648_v17 = vunpack.c.3.s8 %v3537_v43  ;;  %v3809_v63 = vld [vmem:[%s2683_s30 + $0x370] sm:$0xff] }
 0x153   : > { %2176 = vst [vmem:[%s2747_s17 + $0xbb0] sm:$0xff] %v1664_v44  ;;  %v1156_v16 = vand.u32 255, %v644_v3  ;;  %2177 = vst [vmem:[%s2747_s17 + $0xbb8] sm:$0xff] %v1665_v51  ;;  %v1157_v37 = vand.u32 255, %v645_v28  ;;  %v1158_v20 = vand.u32 255, %v646_v6  ;;  %v649_v53 = vunpack.c.3.s8 %v3542_v60  ;;  %v3766_v60 = vld [vmem:[%s2683_s30 + $0x328] sm:$0xff] }
 0x154   : > { %v1159_v40 = vand.u32 255, %v647_v5  ;;  %2178 = vst [vmem:[%s2747_s17 + $0xbc0] sm:$0xff] %v1666_v42  ;;  %2179 = vst [vmem:[%s2747_s17 + $0xbc8] sm:$0xff] %v1667_v30  ;;  %v1160_v18 = vand.u32 255, %v648_v17  ;;  %v650_v19 = vunpack.c.0.s8 %v3743_v11  ;;  %v651_v43 = vunpack.c.0.s8 %v3746_v8  ;;  %v3814_v3 = vld [vmem:[%s2683_s30 + $0x378] sm:$0xff]  ;;  %v3823_v42 = vld [vmem:[%s2683_s30 + $0x380] sm:$0xff] }
 0x155   : > { %v1668_v12 = vcvt.s32.f32 %v1156_v16  ;;  %v1669_v27 = vcvt.s32.f32 %v1157_v37  ;;  %v1670_v59 = vcvt.s32.f32 %v1158_v20  ;;  %v1161_v31 = vand.u32 255, %v649_v53  ;;  %v3826_v30 = vld [vmem:[%s2683_s30 + $0x388] sm:$0xff] }
 0x156   : > { %v1671_v50 = vcvt.s32.f32 %v1159_v40  ;;  %v1672_v35 = vcvt.s32.f32 %v1160_v18  ;;  %v1162_v24 = vand.u32 255, %v650_v19  ;;  %v1163_v36 = vand.u32 255, %v651_v43  ;;  %v3833_v19 = vld [vmem:[%s2683_s30 + $0x390] sm:$0xff] }
 0x157   : > { %2180 = vst [vmem:[%s2747_s17 + $0xbd0] sm:$0xff] %v1668_v12  ;;  %v652_v39 = vunpack.c.0.s8 %v3753_v41  ;;  %2181 = vst [vmem:[%s2747_s17 + $0xbd8] sm:$0xff] %v1669_v27  ;;  %v1673_v29 = vcvt.s32.f32 %v1161_v31  ;;  %v653_v32 = vunpack.c.0.s8 %v3760_v49  ;;  %v654_v57 = vunpack.c.0.s8 %v3763_v23  ;;  %v3840_v31 = vld [vmem:[%s2683_s30 + $0x398] sm:$0xff] }
 0x158   : > { %2182 = vst [vmem:[%s2747_s17 + $0xbe0] sm:$0xff] %v1670_v59  ;;  %2183 = vst [vmem:[%s2747_s17 + $0xbe8] sm:$0xff] %v1671_v50  ;;  %v655_v10 = vunpack.c.0.s8 %v3766_v60  ;;  %v1674_v58 = vcvt.s32.f32 %v1162_v24  ;;  %v1675_v45 = vcvt.s32.f32 %v1163_v36  ;;  %v656_v7 = vunpack.c.0.s8 %v3769_v34  ;;  %v3846_v24 = vld [vmem:[%s2683_s30 + $0x3a8] sm:$0xff] }
 0x159   : > { %2184 = vst [vmem:[%s2747_s17 + $0xbf0] sm:$0xff] %v1672_v35  ;;  %v1164_v52 = vand.u32 255, %v652_v39  ;;  %2185 = vst [vmem:[%s2747_s17 + $0xbf8] sm:$0xff] %v1673_v29  ;;  %v1165_v38 = vand.u32 255, %v653_v32  ;;  %v1166_v47 = vand.u32 255, %v654_v57  ;;  %v657_v56 = vunpack.c.0.s8 %v3774_v46  ;;  %v3843_v35 = vld [vmem:[%s2683_s30 + $0x3a0] sm:$0xff] }
 0x15a   : > { %v1167_v13 = vand.u32 255, %v655_v10  ;;  %2186 = vst [vmem:[%s2747_s17 + $0xc00] sm:$0xff] %v1674_v58  ;;  %2187 = vst [vmem:[%s2747_s17 + $0xc08] sm:$0xff] %v1675_v45  ;;  %v1168_v1 = vand.u32 255, %v656_v7  ;;  %v658_v0 = vunpack.c.0.s8 %v3783_v61  ;;  %v659_v25 = vunpack.c.0.s8 %v3786_v33  ;;  %v3849_v57 = vld [vmem:[%s2683_s30 + $0x3b0] sm:$0xff]  ;;  %v3854_v7 = vld [vmem:[%s2683_s30 + $0x3b8] sm:$0xff] }
 0x15b   : > { %v1676_v22 = vcvt.s32.f32 %v1164_v52  ;;  %v1677_v2 = vcvt.s32.f32 %v1165_v38  ;;  %v1678_v62 = vcvt.s32.f32 %v1166_v47  ;;  %v1169_v21 = vand.u32 255, %v657_v56 }
 0x15c   : > { %v1679_v9 = vcvt.s32.f32 %v1167_v13  ;;  %v1680_v54 = vcvt.s32.f32 %v1168_v1  ;;  %v1170_v44 = vand.u32 255, %v658_v0  ;;  %v1171_v55 = vand.u32 255, %v659_v25  ;;  %v3866_v1 = vld [vmem:[%s2683_s30 + $0x3c8] sm:$0xff] }
 0x15d   : > { %2188 = vst [vmem:[%s2747_s17 + $0xc10] sm:$0xff] %v1676_v22  ;;  %v660_v26 = vunpack.c.0.s8 %v3793_v14  ;;  %2189 = vst [vmem:[%s2747_s17 + $0xc18] sm:$0xff] %v1677_v2  ;;  %v1681_v51 = vcvt.s32.f32 %v1169_v21  ;;  %v661_v28 = vunpack.c.0.s8 %v3800_v48  ;;  %v662_v6 = vunpack.c.0.s8 %v3803_v4  ;;  %v3863_v22 = vld [vmem:[%s2683_s30 + $0x3c0] sm:$0xff] }
 0x15e   : > { %2190 = vst [vmem:[%s2747_s17 + $0xc20] sm:$0xff] %v1678_v62  ;;  %2191 = vst [vmem:[%s2747_s17 + $0xc28] sm:$0xff] %v1679_v9  ;;  %v663_v5 = vunpack.c.0.s8 %v3806_v15  ;;  %v1682_v16 = vcvt.s32.f32 %v1170_v44  ;;  %v1683_v17 = vcvt.s32.f32 %v1171_v55  ;;  %v664_v20 = vunpack.c.0.s8 %v3809_v63  ;;  %v3873_v55 = vld [vmem:[%s2683_s30 + $0x3d0] sm:$0xff] }
 0x15f   : > { %2192 = vst [vmem:[%s2747_s17 + $0xc30] sm:$0xff] %v1680_v54  ;;  %v1172_v37 = vand.u32 255, %v660_v26  ;;  %2193 = vst [vmem:[%s2747_s17 + $0xc38] sm:$0xff] %v1681_v51  ;;  %v1173_v40 = vand.u32 255, %v661_v28  ;;  %v1174_v53 = vand.u32 255, %v662_v6  ;;  %v665_v18 = vunpack.c.0.s8 %v3814_v3 }
 0x160   : > { %v1175_v12 = vand.u32 255, %v663_v5  ;;  %2194 = vst [vmem:[%s2747_s17 + $0xc40] sm:$0xff] %v1682_v16  ;;  %2195 = vst [vmem:[%s2747_s17 + $0xc48] sm:$0xff] %v1683_v17  ;;  %v1176_v27 = vand.u32 255, %v664_v20  ;;  %v666_v59 = vunpack.c.0.s8 %v3823_v42  ;;  %v667_v50 = vunpack.c.0.s8 %v3826_v30  ;;  %v3880_v5 = vld [vmem:[%s2683_s30 + $0x3d8] sm:$0xff]  ;;  %v3883_v16 = vld [vmem:[%s2683_s30 + $0x3e0] sm:$0xff] }
 0x161   : > { %v1684_v43 = vcvt.s32.f32 %v1172_v37  ;;  %v1685_v36 = vcvt.s32.f32 %v1173_v40  ;;  %v1686_v39 = vcvt.s32.f32 %v1174_v53  ;;  %v1177_v32 = vand.u32 255, %v665_v18  ;;  %v3886_v17 = vld [vmem:[%s2683_s30 + $0x3e8] sm:$0xff] }
 0x162   : > { %v1687_v29 = vcvt.s32.f32 %v1175_v12  ;;  %v1688_v10 = vcvt.s32.f32 %v1176_v27  ;;  %v1178_v58 = vand.u32 255, %v666_v59  ;;  %v1179_v45 = vand.u32 255, %v667_v50  ;;  %v3889_v12 = vld [vmem:[%s2683_s30 + $0x3f0] sm:$0xff]  ;;  %v3894_v50 = vld [vmem:[%s2683_s30 + $0x3f8] sm:$0xff] }
 0x163   : > { %2196 = vst [vmem:[%s2747_s17 + $0xc50] sm:$0xff] %v1684_v43  ;;  %v668_v52 = vunpack.c.0.s8 %v3833_v19  ;;  %2197 = vst [vmem:[%s2747_s17 + $0xc58] sm:$0xff] %v1685_v36  ;;  %v1689_v38 = vcvt.s32.f32 %v1177_v32  ;;  %v669_v47 = vunpack.c.0.s8 %v3840_v31  ;;  %v670_v13 = vunpack.c.0.s8 %v3843_v35 }
 0x164   : > { %2198 = vst [vmem:[%s2747_s17 + $0xc60] sm:$0xff] %v1686_v39  ;;  %2199 = vst [vmem:[%s2747_s17 + $0xc68] sm:$0xff] %v1687_v29  ;;  %v671_v56 = vunpack.c.0.s8 %v3846_v24  ;;  %v1690_v0 = vcvt.s32.f32 %v1178_v58  ;;  %v1691_v25 = vcvt.s32.f32 %v1179_v45  ;;  %v672_v62 = vunpack.c.0.s8 %v3849_v57 }
 0x165   : > { %2200 = vst [vmem:[%s2747_s17 + $0xc70] sm:$0xff] %v1688_v10  ;;  %v1180_v2 = vand.u32 255, %v668_v52  ;;  %2201 = vst [vmem:[%s2747_s17 + $0xc78] sm:$0xff] %v1689_v38  ;;  %v1181_v9 = vand.u32 255, %v669_v47  ;;  %v1182_v21 = vand.u32 255, %v670_v13  ;;  %v673_v44 = vunpack.c.0.s8 %v3854_v7 }
 0x166   : > { %v1183_v54 = vand.u32 255, %v671_v56  ;;  %2202 = vst [vmem:[%s2747_s17 + $0xc80] sm:$0xff] %v1690_v0  ;;  %2203 = vst [vmem:[%s2747_s17 + $0xc88] sm:$0xff] %v1691_v25  ;;  %v1184_v51 = vand.u32 255, %v672_v62  ;;  %v674_v28 = vunpack.c.0.s8 %v3863_v22  ;;  %v675_v6 = vunpack.c.0.s8 %v3866_v1 }
 0x167   : > { %v1692_v26 = vcvt.s32.f32 %v1180_v2  ;;  %v1693_v37 = vcvt.s32.f32 %v1181_v9  ;;  %v1694_v20 = vcvt.s32.f32 %v1182_v21  ;;  %v1185_v53 = vand.u32 255, %v673_v44 }
 0x168   : > { %v1695_v40 = vcvt.s32.f32 %v1183_v54  ;;  %v1696_v18 = vcvt.s32.f32 %v1184_v51  ;;  %v1186_v43 = vand.u32 255, %v674_v28  ;;  %v1187_v27 = vand.u32 255, %v675_v6 }
 0x169   : > { %2204 = vst [vmem:[%s2747_s17 + $0xc90] sm:$0xff] %v1692_v26  ;;  %v676_v59 = vunpack.c.0.s8 %v3873_v55  ;;  %2205 = vst [vmem:[%s2747_s17 + $0xc98] sm:$0xff] %v1693_v37  ;;  %v1697_v36 = vcvt.s32.f32 %v1185_v53  ;;  %v677_v39 = vunpack.c.0.s8 %v3880_v5  ;;  %v678_v29 = vunpack.c.0.s8 %v3883_v16 }
 0x16a   : > { %2206 = vst [vmem:[%s2747_s17 + $0xca0] sm:$0xff] %v1694_v20  ;;  %2207 = vst [vmem:[%s2747_s17 + $0xca8] sm:$0xff] %v1695_v40  ;;  %v679_v32 = vunpack.c.0.s8 %v3886_v17  ;;  %v1698_v10 = vcvt.s32.f32 %v1186_v43  ;;  %v1699_v58 = vcvt.s32.f32 %v1187_v27  ;;  %v680_v52 = vunpack.c.0.s8 %v3889_v12 }
 0x16b   : > { %2208 = vst [vmem:[%s2747_s17 + $0xcb0] sm:$0xff] %v1696_v18  ;;  %v1188_v45 = vand.u32 255, %v676_v59  ;;  %2209 = vst [vmem:[%s2747_s17 + $0xcb8] sm:$0xff] %v1697_v36  ;;  %v1189_v38 = vand.u32 255, %v677_v39  ;;  %v1190_v47 = vand.u32 255, %v678_v29  ;;  %v681_v56 = vunpack.c.0.s8 %v3894_v50 }
 0x16c   : > { %v1191_v13 = vand.u32 255, %v679_v32  ;;  %2210 = vst [vmem:[%s2747_s17 + $0xcc0] sm:$0xff] %v1698_v10  ;;  %2211 = vst [vmem:[%s2747_s17 + $0xcc8] sm:$0xff] %v1699_v58  ;;  %v1192_v25 = vand.u32 255, %v680_v52  ;;  %v682_v2 = vunpack.c.1.s8 %v3743_v11  ;;  %v683_v62 = vunpack.c.1.s8 %v3746_v8 }
 0x16d   : > { %v1700_v0 = vcvt.s32.f32 %v1188_v45  ;;  %v1701_v9 = vcvt.s32.f32 %v1189_v38  ;;  %v1702_v21 = vcvt.s32.f32 %v1190_v47  ;;  %v1193_v44 = vand.u32 255, %v681_v56 }
 0x16e   : > { %v1703_v54 = vcvt.s32.f32 %v1191_v13  ;;  %v1704_v26 = vcvt.s32.f32 %v1192_v25  ;;  %v1194_v51 = vand.u32 255, %v682_v2  ;;  %v1195_v28 = vand.u32 255, %v683_v62 }
 0x16f   : > { %2212 = vst [vmem:[%s2747_s17 + $0xcd0] sm:$0xff] %v1700_v0  ;;  %v684_v6 = vunpack.c.1.s8 %v3753_v41  ;;  %2213 = vst [vmem:[%s2747_s17 + $0xcd8] sm:$0xff] %v1701_v9  ;;  %v1705_v37 = vcvt.s32.f32 %v1193_v44  ;;  %v685_v20 = vunpack.c.1.s8 %v3760_v49  ;;  %v686_v40 = vunpack.c.1.s8 %v3763_v23 }
 0x170   : > { %2214 = vst [vmem:[%s2747_s17 + $0xce0] sm:$0xff] %v1702_v21  ;;  %2215 = vst [vmem:[%s2747_s17 + $0xce8] sm:$0xff] %v1703_v54  ;;  %v687_v53 = vunpack.c.1.s8 %v3766_v60  ;;  %v1706_v18 = vcvt.s32.f32 %v1194_v51  ;;  %v1707_v43 = vcvt.s32.f32 %v1195_v28  ;;  %v688_v59 = vunpack.c.1.s8 %v3769_v34 }
 0x171   : > { %2216 = vst [vmem:[%s2747_s17 + $0xcf0] sm:$0xff] %v1704_v26  ;;  %v1196_v27 = vand.u32 255, %v684_v6  ;;  %2217 = vst [vmem:[%s2747_s17 + $0xcf8] sm:$0xff] %v1705_v37  ;;  %v1197_v36 = vand.u32 255, %v685_v20  ;;  %v1198_v39 = vand.u32 255, %v686_v40  ;;  %v689_v32 = vunpack.c.1.s8 %v3774_v46 }
 0x172   : > { %v1199_v29 = vand.u32 255, %v687_v53  ;;  %2218 = vst [vmem:[%s2747_s17 + $0xd00] sm:$0xff] %v1706_v18  ;;  %2219 = vst [vmem:[%s2747_s17 + $0xd08] sm:$0xff] %v1707_v43  ;;  %v1200_v58 = vand.u32 255, %v688_v59  ;;  %v690_v45 = vunpack.c.1.s8 %v3783_v61  ;;  %v691_v52 = vunpack.c.1.s8 %v3786_v33 }
 0x173   : > { %v1708_v10 = vcvt.s32.f32 %v1196_v27  ;;  %v1709_v38 = vcvt.s32.f32 %v1197_v36  ;;  %v1710_v47 = vcvt.s32.f32 %v1198_v39  ;;  %v1201_v56 = vand.u32 255, %v689_v32 }
 0x174   : > { %v1711_v13 = vcvt.s32.f32 %v1199_v29  ;;  %v1712_v0 = vcvt.s32.f32 %v1200_v58  ;;  %v1202_v25 = vand.u32 255, %v690_v45  ;;  %v1203_v2 = vand.u32 255, %v691_v52 }
 0x175   : > { %2220 = vst [vmem:[%s2747_s17 + $0xd10] sm:$0xff] %v1708_v10  ;;  %v692_v62 = vunpack.c.1.s8 %v3793_v14  ;;  %2221 = vst [vmem:[%s2747_s17 + $0xd18] sm:$0xff] %v1709_v38  ;;  %v1713_v9 = vcvt.s32.f32 %v1201_v56  ;;  %v693_v21 = vunpack.c.1.s8 %v3800_v48  ;;  %v694_v54 = vunpack.c.1.s8 %v3803_v4 }
 0x176   : > { %2222 = vst [vmem:[%s2747_s17 + $0xd20] sm:$0xff] %v1710_v47  ;;  %2223 = vst [vmem:[%s2747_s17 + $0xd28] sm:$0xff] %v1711_v13  ;;  %v695_v44 = vunpack.c.1.s8 %v3806_v15  ;;  %v1714_v26 = vcvt.s32.f32 %v1202_v25  ;;  %v1715_v51 = vcvt.s32.f32 %v1203_v2  ;;  %v696_v6 = vunpack.c.1.s8 %v3809_v63 }
 0x177   : > { %2224 = vst [vmem:[%s2747_s17 + $0xd30] sm:$0xff] %v1712_v0  ;;  %v1204_v28 = vand.u32 255, %v692_v62  ;;  %2225 = vst [vmem:[%s2747_s17 + $0xd38] sm:$0xff] %v1713_v9  ;;  %v1205_v37 = vand.u32 255, %v693_v21  ;;  %v1206_v20 = vand.u32 255, %v694_v54  ;;  %v697_v53 = vunpack.c.1.s8 %v3814_v3 }
 0x178   : > { %v1207_v40 = vand.u32 255, %v695_v44  ;;  %2226 = vst [vmem:[%s2747_s17 + $0xd40] sm:$0xff] %v1714_v26  ;;  %2227 = vst [vmem:[%s2747_s17 + $0xd48] sm:$0xff] %v1715_v51  ;;  %v1208_v43 = vand.u32 255, %v696_v6  ;;  %v698_v27 = vunpack.c.1.s8 %v3823_v42  ;;  %v699_v59 = vunpack.c.1.s8 %v3826_v30 }
 0x179   : > { %v1716_v18 = vcvt.s32.f32 %v1204_v28  ;;  %v1717_v36 = vcvt.s32.f32 %v1205_v37  ;;  %v1718_v39 = vcvt.s32.f32 %v1206_v20  ;;  %v1209_v32 = vand.u32 255, %v697_v53 }
 0x17a   : > { %v1719_v29 = vcvt.s32.f32 %v1207_v40  ;;  %v1720_v10 = vcvt.s32.f32 %v1208_v43  ;;  %v1210_v58 = vand.u32 255, %v698_v27  ;;  %v1211_v45 = vand.u32 255, %v699_v59 }
 0x17b   : > { %2228 = vst [vmem:[%s2747_s17 + $0xd50] sm:$0xff] %v1716_v18  ;;  %v700_v52 = vunpack.c.1.s8 %v3833_v19  ;;  %2229 = vst [vmem:[%s2747_s17 + $0xd58] sm:$0xff] %v1717_v36  ;;  %v1721_v38 = vcvt.s32.f32 %v1209_v32  ;;  %v701_v47 = vunpack.c.1.s8 %v3840_v31  ;;  %v702_v13 = vunpack.c.1.s8 %v3843_v35 }
 0x17c   : > { %2230 = vst [vmem:[%s2747_s17 + $0xd60] sm:$0xff] %v1718_v39  ;;  %2231 = vst [vmem:[%s2747_s17 + $0xd68] sm:$0xff] %v1719_v29  ;;  %v703_v56 = vunpack.c.1.s8 %v3846_v24  ;;  %v1722_v0 = vcvt.s32.f32 %v1210_v58  ;;  %v1723_v25 = vcvt.s32.f32 %v1211_v45  ;;  %v704_v62 = vunpack.c.1.s8 %v3849_v57 }
 0x17d   : > { %2232 = vst [vmem:[%s2747_s17 + $0xd70] sm:$0xff] %v1720_v10  ;;  %v1212_v2 = vand.u32 255, %v700_v52  ;;  %2233 = vst [vmem:[%s2747_s17 + $0xd78] sm:$0xff] %v1721_v38  ;;  %v1213_v9 = vand.u32 255, %v701_v47  ;;  %v1214_v21 = vand.u32 255, %v702_v13  ;;  %v705_v44 = vunpack.c.1.s8 %v3854_v7 }
 0x17e   : > { %v1215_v54 = vand.u32 255, %v703_v56  ;;  %2234 = vst [vmem:[%s2747_s17 + $0xd80] sm:$0xff] %v1722_v0  ;;  %2235 = vst [vmem:[%s2747_s17 + $0xd88] sm:$0xff] %v1723_v25  ;;  %v1216_v51 = vand.u32 255, %v704_v62  ;;  %v706_v28 = vunpack.c.1.s8 %v3863_v22  ;;  %v707_v6 = vunpack.c.1.s8 %v3866_v1 }
 0x17f   : > { %v1724_v26 = vcvt.s32.f32 %v1212_v2  ;;  %v1725_v37 = vcvt.s32.f32 %v1213_v9  ;;  %v1726_v20 = vcvt.s32.f32 %v1214_v21  ;;  %v1217_v53 = vand.u32 255, %v705_v44 }
 0x180   : > { %v1727_v40 = vcvt.s32.f32 %v1215_v54  ;;  %v1728_v18 = vcvt.s32.f32 %v1216_v51  ;;  %v1218_v43 = vand.u32 255, %v706_v28  ;;  %v1219_v27 = vand.u32 255, %v707_v6 }
 0x181   : > { %2236 = vst [vmem:[%s2747_s17 + $0xd90] sm:$0xff] %v1724_v26  ;;  %v708_v59 = vunpack.c.1.s8 %v3873_v55  ;;  %2237 = vst [vmem:[%s2747_s17 + $0xd98] sm:$0xff] %v1725_v37  ;;  %v1729_v36 = vcvt.s32.f32 %v1217_v53  ;;  %v709_v39 = vunpack.c.1.s8 %v3880_v5  ;;  %v710_v29 = vunpack.c.1.s8 %v3883_v16 }
 0x182   : > { %2238 = vst [vmem:[%s2747_s17 + $0xda0] sm:$0xff] %v1726_v20  ;;  %2239 = vst [vmem:[%s2747_s17 + $0xda8] sm:$0xff] %v1727_v40  ;;  %v711_v32 = vunpack.c.1.s8 %v3886_v17  ;;  %v1730_v10 = vcvt.s32.f32 %v1218_v43  ;;  %v1731_v58 = vcvt.s32.f32 %v1219_v27  ;;  %v712_v52 = vunpack.c.1.s8 %v3889_v12 }
 0x183   : > { %2240 = vst [vmem:[%s2747_s17 + $0xdb0] sm:$0xff] %v1728_v18  ;;  %v1220_v45 = vand.u32 255, %v708_v59  ;;  %2241 = vst [vmem:[%s2747_s17 + $0xdb8] sm:$0xff] %v1729_v36  ;;  %v1221_v38 = vand.u32 255, %v709_v39  ;;  %v1222_v47 = vand.u32 255, %v710_v29  ;;  %v713_v56 = vunpack.c.1.s8 %v3894_v50 }
 0x184   : > { %v1223_v13 = vand.u32 255, %v711_v32  ;;  %2242 = vst [vmem:[%s2747_s17 + $0xdc0] sm:$0xff] %v1730_v10  ;;  %2243 = vst [vmem:[%s2747_s17 + $0xdc8] sm:$0xff] %v1731_v58  ;;  %v1224_v25 = vand.u32 255, %v712_v52  ;;  %v714_v2 = vunpack.c.2.s8 %v3743_v11  ;;  %v715_v62 = vunpack.c.2.s8 %v3746_v8 }
 0x185   : > { %v1732_v0 = vcvt.s32.f32 %v1220_v45  ;;  %v1733_v9 = vcvt.s32.f32 %v1221_v38  ;;  %v1734_v21 = vcvt.s32.f32 %v1222_v47  ;;  %v1225_v44 = vand.u32 255, %v713_v56 }
 0x186   : > { %v1735_v54 = vcvt.s32.f32 %v1223_v13  ;;  %v1736_v26 = vcvt.s32.f32 %v1224_v25  ;;  %v1226_v51 = vand.u32 255, %v714_v2  ;;  %v1227_v28 = vand.u32 255, %v715_v62 }
 0x187   : > { %2244 = vst [vmem:[%s2747_s17 + $0xdd0] sm:$0xff] %v1732_v0  ;;  %v716_v6 = vunpack.c.2.s8 %v3753_v41  ;;  %2245 = vst [vmem:[%s2747_s17 + $0xdd8] sm:$0xff] %v1733_v9  ;;  %v1737_v37 = vcvt.s32.f32 %v1225_v44  ;;  %v717_v20 = vunpack.c.2.s8 %v3760_v49  ;;  %v718_v40 = vunpack.c.2.s8 %v3763_v23 }
 0x188   : > { %2246 = vst [vmem:[%s2747_s17 + $0xde0] sm:$0xff] %v1734_v21  ;;  %2247 = vst [vmem:[%s2747_s17 + $0xde8] sm:$0xff] %v1735_v54  ;;  %v719_v53 = vunpack.c.2.s8 %v3766_v60  ;;  %v1738_v18 = vcvt.s32.f32 %v1226_v51  ;;  %v1739_v43 = vcvt.s32.f32 %v1227_v28  ;;  %v720_v59 = vunpack.c.2.s8 %v3769_v34 }
 0x189   : > { %2248 = vst [vmem:[%s2747_s17 + $0xdf0] sm:$0xff] %v1736_v26  ;;  %v1228_v27 = vand.u32 255, %v716_v6  ;;  %2249 = vst [vmem:[%s2747_s17 + $0xdf8] sm:$0xff] %v1737_v37  ;;  %v1229_v36 = vand.u32 255, %v717_v20  ;;  %v1230_v39 = vand.u32 255, %v718_v40  ;;  %v721_v32 = vunpack.c.2.s8 %v3774_v46 }
 0x18a   : > { %v1231_v29 = vand.u32 255, %v719_v53  ;;  %2250 = vst [vmem:[%s2747_s17 + $0xe00] sm:$0xff] %v1738_v18  ;;  %2251 = vst [vmem:[%s2747_s17 + $0xe08] sm:$0xff] %v1739_v43  ;;  %v1232_v58 = vand.u32 255, %v720_v59  ;;  %v722_v45 = vunpack.c.2.s8 %v3783_v61  ;;  %v723_v52 = vunpack.c.2.s8 %v3786_v33 }
 0x18b   : > { %v1740_v10 = vcvt.s32.f32 %v1228_v27  ;;  %v1741_v38 = vcvt.s32.f32 %v1229_v36  ;;  %v1742_v47 = vcvt.s32.f32 %v1230_v39  ;;  %v1233_v56 = vand.u32 255, %v721_v32 }
 0x18c   : > { %v1743_v13 = vcvt.s32.f32 %v1231_v29  ;;  %v1744_v0 = vcvt.s32.f32 %v1232_v58  ;;  %v1234_v25 = vand.u32 255, %v722_v45  ;;  %v1235_v2 = vand.u32 255, %v723_v52 }
 0x18d   : > { %2252 = vst [vmem:[%s2747_s17 + $0xe10] sm:$0xff] %v1740_v10  ;;  %v724_v62 = vunpack.c.2.s8 %v3793_v14  ;;  %2253 = vst [vmem:[%s2747_s17 + $0xe18] sm:$0xff] %v1741_v38  ;;  %v1745_v9 = vcvt.s32.f32 %v1233_v56  ;;  %v725_v21 = vunpack.c.2.s8 %v3800_v48  ;;  %v726_v54 = vunpack.c.2.s8 %v3803_v4 }
 0x18e   : > { %2254 = vst [vmem:[%s2747_s17 + $0xe20] sm:$0xff] %v1742_v47  ;;  %2255 = vst [vmem:[%s2747_s17 + $0xe28] sm:$0xff] %v1743_v13  ;;  %v727_v44 = vunpack.c.2.s8 %v3806_v15  ;;  %v1746_v26 = vcvt.s32.f32 %v1234_v25  ;;  %v1747_v51 = vcvt.s32.f32 %v1235_v2  ;;  %v728_v6 = vunpack.c.2.s8 %v3809_v63 }
 0x18f   : > { %2256 = vst [vmem:[%s2747_s17 + $0xe30] sm:$0xff] %v1744_v0  ;;  %v1236_v28 = vand.u32 255, %v724_v62  ;;  %2257 = vst [vmem:[%s2747_s17 + $0xe38] sm:$0xff] %v1745_v9  ;;  %v1237_v37 = vand.u32 255, %v725_v21  ;;  %v1238_v20 = vand.u32 255, %v726_v54  ;;  %v729_v53 = vunpack.c.2.s8 %v3814_v3 }
 0x190   : > { %v1239_v40 = vand.u32 255, %v727_v44  ;;  %2258 = vst [vmem:[%s2747_s17 + $0xe40] sm:$0xff] %v1746_v26  ;;  %2259 = vst [vmem:[%s2747_s17 + $0xe48] sm:$0xff] %v1747_v51  ;;  %v1240_v43 = vand.u32 255, %v728_v6  ;;  %v730_v27 = vunpack.c.2.s8 %v3823_v42  ;;  %v731_v59 = vunpack.c.2.s8 %v3826_v30 }
 0x191   : > { %v1748_v18 = vcvt.s32.f32 %v1236_v28  ;;  %v1749_v36 = vcvt.s32.f32 %v1237_v37  ;;  %v1750_v39 = vcvt.s32.f32 %v1238_v20  ;;  %v1241_v32 = vand.u32 255, %v729_v53 }
 0x192   : > { %v1751_v29 = vcvt.s32.f32 %v1239_v40  ;;  %v1752_v10 = vcvt.s32.f32 %v1240_v43  ;;  %v1242_v58 = vand.u32 255, %v730_v27  ;;  %v1243_v45 = vand.u32 255, %v731_v59 }
 0x193   : > { %2260 = vst [vmem:[%s2747_s17 + $0xe50] sm:$0xff] %v1748_v18  ;;  %v732_v52 = vunpack.c.2.s8 %v3833_v19  ;;  %2261 = vst [vmem:[%s2747_s17 + $0xe58] sm:$0xff] %v1749_v36  ;;  %v1753_v38 = vcvt.s32.f32 %v1241_v32  ;;  %v733_v47 = vunpack.c.2.s8 %v3840_v31  ;;  %v734_v13 = vunpack.c.2.s8 %v3843_v35 }
 0x194   : > { %2262 = vst [vmem:[%s2747_s17 + $0xe60] sm:$0xff] %v1750_v39  ;;  %2263 = vst [vmem:[%s2747_s17 + $0xe68] sm:$0xff] %v1751_v29  ;;  %v735_v56 = vunpack.c.2.s8 %v3846_v24  ;;  %v1754_v0 = vcvt.s32.f32 %v1242_v58  ;;  %v1755_v25 = vcvt.s32.f32 %v1243_v45  ;;  %v736_v62 = vunpack.c.2.s8 %v3849_v57 }
 0x195   : > { %2264 = vst [vmem:[%s2747_s17 + $0xe70] sm:$0xff] %v1752_v10  ;;  %v1244_v2 = vand.u32 255, %v732_v52  ;;  %2265 = vst [vmem:[%s2747_s17 + $0xe78] sm:$0xff] %v1753_v38  ;;  %v1245_v9 = vand.u32 255, %v733_v47  ;;  %v1246_v21 = vand.u32 255, %v734_v13  ;;  %v737_v44 = vunpack.c.2.s8 %v3854_v7 }
 0x196   : > { %v1247_v54 = vand.u32 255, %v735_v56  ;;  %2266 = vst [vmem:[%s2747_s17 + $0xe80] sm:$0xff] %v1754_v0  ;;  %2267 = vst [vmem:[%s2747_s17 + $0xe88] sm:$0xff] %v1755_v25  ;;  %v1248_v51 = vand.u32 255, %v736_v62  ;;  %v738_v28 = vunpack.c.2.s8 %v3863_v22  ;;  %v739_v6 = vunpack.c.2.s8 %v3866_v1 }
 0x197   : > { %v1756_v26 = vcvt.s32.f32 %v1244_v2  ;;  %v1757_v37 = vcvt.s32.f32 %v1245_v9  ;;  %v1758_v20 = vcvt.s32.f32 %v1246_v21  ;;  %v1249_v53 = vand.u32 255, %v737_v44 }
 0x198   : > { %v1759_v40 = vcvt.s32.f32 %v1247_v54  ;;  %v1760_v18 = vcvt.s32.f32 %v1248_v51  ;;  %v1250_v43 = vand.u32 255, %v738_v28  ;;  %v1251_v27 = vand.u32 255, %v739_v6 }
 0x199   : > { %2268 = vst [vmem:[%s2747_s17 + $0xe90] sm:$0xff] %v1756_v26  ;;  %v740_v59 = vunpack.c.2.s8 %v3873_v55  ;;  %2269 = vst [vmem:[%s2747_s17 + $0xe98] sm:$0xff] %v1757_v37  ;;  %v1761_v36 = vcvt.s32.f32 %v1249_v53  ;;  %v741_v39 = vunpack.c.2.s8 %v3880_v5  ;;  %v742_v29 = vunpack.c.2.s8 %v3883_v16 }
 0x19a   : > { %2270 = vst [vmem:[%s2747_s17 + $0xea0] sm:$0xff] %v1758_v20  ;;  %2271 = vst [vmem:[%s2747_s17 + $0xea8] sm:$0xff] %v1759_v40  ;;  %v743_v32 = vunpack.c.2.s8 %v3886_v17  ;;  %v1762_v10 = vcvt.s32.f32 %v1250_v43  ;;  %v1763_v58 = vcvt.s32.f32 %v1251_v27  ;;  %v744_v52 = vunpack.c.2.s8 %v3889_v12 }
 0x19b   : > { %2272 = vst [vmem:[%s2747_s17 + $0xeb0] sm:$0xff] %v1760_v18  ;;  %v1252_v45 = vand.u32 255, %v740_v59  ;;  %2273 = vst [vmem:[%s2747_s17 + $0xeb8] sm:$0xff] %v1761_v36  ;;  %v1253_v38 = vand.u32 255, %v741_v39  ;;  %v1254_v47 = vand.u32 255, %v742_v29  ;;  %v745_v56 = vunpack.c.2.s8 %v3894_v50 }
 0x19c   : > { %v1255_v13 = vand.u32 255, %v743_v32  ;;  %2274 = vst [vmem:[%s2747_s17 + $0xec0] sm:$0xff] %v1762_v10  ;;  %2275 = vst [vmem:[%s2747_s17 + $0xec8] sm:$0xff] %v1763_v58  ;;  %v1256_v25 = vand.u32 255, %v744_v52  ;;  %v746_v2 = vunpack.c.3.s8 %v3743_v11  ;;  %v747_v62 = vunpack.c.3.s8 %v3746_v8 }
 0x19d   : > { %v1764_v0 = vcvt.s32.f32 %v1252_v45  ;;  %v1765_v9 = vcvt.s32.f32 %v1253_v38  ;;  %v1766_v21 = vcvt.s32.f32 %v1254_v47  ;;  %v1257_v44 = vand.u32 255, %v745_v56 }
 0x19e   : > { %v1767_v54 = vcvt.s32.f32 %v1255_v13  ;;  %v1768_v26 = vcvt.s32.f32 %v1256_v25  ;;  %v1258_v51 = vand.u32 255, %v746_v2  ;;  %v1259_v28 = vand.u32 255, %v747_v62 }
 0x19f   : > { %2276 = vst [vmem:[%s2747_s17 + $0xed0] sm:$0xff] %v1764_v0  ;;  %v748_v6 = vunpack.c.3.s8 %v3753_v41  ;;  %2277 = vst [vmem:[%s2747_s17 + $0xed8] sm:$0xff] %v1765_v9  ;;  %v1769_v11 = vcvt.s32.f32 %v1257_v44  ;;  %v749_v8 = vunpack.c.3.s8 %v3760_v49  ;;  %v750_v37 = vunpack.c.3.s8 %v3763_v23 }
 0x1a0   : > { %2278 = vst [vmem:[%s2747_s17 + $0xee0] sm:$0xff] %v1766_v21  ;;  %2279 = vst [vmem:[%s2747_s17 + $0xee8] sm:$0xff] %v1767_v54  ;;  %v751_v20 = vunpack.c.3.s8 %v3766_v60  ;;  %v1770_v40 = vcvt.s32.f32 %v1258_v51  ;;  %v1771_v53 = vcvt.s32.f32 %v1259_v28  ;;  %v752_v43 = vunpack.c.3.s8 %v3769_v34 }
 0x1a1   : > { %2280 = vst [vmem:[%s2747_s17 + $0xef0] sm:$0xff] %v1768_v26  ;;  %v1260_v18 = vand.u32 255, %v748_v6  ;;  %2281 = vst [vmem:[%s2747_s17 + $0xef8] sm:$0xff] %v1769_v11  ;;  %v1261_v41 = vand.u32 255, %v749_v8  ;;  %v1262_v27 = vand.u32 255, %v750_v37  ;;  %v753_v36 = vunpack.c.3.s8 %v3774_v46 }
 0x1a2   : > { %v1263_v59 = vand.u32 255, %v751_v20  ;;  %2282 = vst [vmem:[%s2747_s17 + $0xf00] sm:$0xff] %v1770_v40  ;;  %2283 = vst [vmem:[%s2747_s17 + $0xf08] sm:$0xff] %v1771_v53  ;;  %v1264_v23 = vand.u32 255, %v752_v43  ;;  %v754_v60 = vunpack.c.3.s8 %v3783_v61  ;;  %v755_v39 = vunpack.c.3.s8 %v3786_v33 }
 0x1a3   : > { %v1772_v49 = vcvt.s32.f32 %v1260_v18  ;;  %v1773_v29 = vcvt.s32.f32 %v1261_v41  ;;  %v1774_v34 = vcvt.s32.f32 %v1262_v27  ;;  %v1265_v10 = vand.u32 255, %v753_v36 }
 0x1a4   : > { %v1775_v32 = vcvt.s32.f32 %v1263_v59  ;;  %v1776_v58 = vcvt.s32.f32 %v1264_v23  ;;  %v1266_v46 = vand.u32 255, %v754_v60  ;;  %v1267_v45 = vand.u32 255, %v755_v39 }
 0x1a5   : > { %2284 = vst [vmem:[%s2747_s17 + $0xf10] sm:$0xff] %v1772_v49  ;;  %v756_v52 = vunpack.c.3.s8 %v3793_v14  ;;  %2285 = vst [vmem:[%s2747_s17 + $0xf18] sm:$0xff] %v1773_v29  ;;  %v1777_v61 = vcvt.s32.f32 %v1265_v10  ;;  %v757_v33 = vunpack.c.3.s8 %v3800_v48  ;;  %v758_v38 = vunpack.c.3.s8 %v3803_v4 }
 0x1a6   : > { %2286 = vst [vmem:[%s2747_s17 + $0xf20] sm:$0xff] %v1774_v34  ;;  %2287 = vst [vmem:[%s2747_s17 + $0xf28] sm:$0xff] %v1775_v32  ;;  %v759_v47 = vunpack.c.3.s8 %v3806_v15  ;;  %v1778_v13 = vcvt.s32.f32 %v1266_v46  ;;  %v1779_v56 = vcvt.s32.f32 %v1267_v45  ;;  %v760_v25 = vunpack.c.3.s8 %v3809_v63 }
 0x1a7   : > { %2288 = vst [vmem:[%s2747_s17 + $0xf30] sm:$0xff] %v1776_v58  ;;  %v1268_v0 = vand.u32 255, %v756_v52  ;;  %2289 = vst [vmem:[%s2747_s17 + $0xf38] sm:$0xff] %v1777_v61  ;;  %v1269_v14 = vand.u32 255, %v757_v33  ;;  %v1270_v2 = vand.u32 255, %v758_v38  ;;  %v761_v9 = vunpack.c.3.s8 %v3814_v3 }
 0x1a8   : > { %v1271_v62 = vand.u32 255, %v759_v47  ;;  %2290 = vst [vmem:[%s2747_s17 + $0xf40] sm:$0xff] %v1778_v13  ;;  %2291 = vst [vmem:[%s2747_s17 + $0xf48] sm:$0xff] %v1779_v56  ;;  %v1272_v4 = vand.u32 255, %v760_v25  ;;  %v762_v15 = vunpack.c.3.s8 %v3823_v42  ;;  %v763_v21 = vunpack.c.3.s8 %v3826_v30 }
 0x1a9   : > { %v1780_v48 = vcvt.s32.f32 %v1268_v0  ;;  %v1781_v54 = vcvt.s32.f32 %v1269_v14  ;;  %v1782_v63 = vcvt.s32.f32 %v1270_v2  ;;  %v1273_v26 = vand.u32 255, %v761_v9 }
 0x1aa   : > { %v1783_v44 = vcvt.s32.f32 %v1271_v62  ;;  %v1784_v51 = vcvt.s32.f32 %v1272_v4  ;;  %v1274_v3 = vand.u32 255, %v762_v15  ;;  %v1275_v28 = vand.u32 255, %v763_v21 }
 0x1ab   : > { %2292 = vst [vmem:[%s2747_s17 + $0xf50] sm:$0xff] %v1780_v48  ;;  %v764_v6 = vunpack.c.3.s8 %v3833_v19  ;;  %2293 = vst [vmem:[%s2747_s17 + $0xf58] sm:$0xff] %v1781_v54  ;;  %v1785_v42 = vcvt.s32.f32 %v1273_v26  ;;  %v765_v30 = vunpack.c.3.s8 %v3840_v31  ;;  %v766_v11 = vunpack.c.3.s8 %v3843_v35 }
 0x1ac   : > { %2294 = vst [vmem:[%s2747_s17 + $0xf60] sm:$0xff] %v1782_v63  ;;  %2295 = vst [vmem:[%s2747_s17 + $0xf68] sm:$0xff] %v1783_v44  ;;  %v767_v8 = vunpack.c.3.s8 %v3846_v24  ;;  %v1786_v37 = vcvt.s32.f32 %v1274_v3  ;;  %v1787_v20 = vcvt.s32.f32 %v1275_v28  ;;  %v768_v53 = vunpack.c.3.s8 %v3849_v57 }
 0x1ad   : > { %2296 = vst [vmem:[%s2747_s17 + $0xf70] sm:$0xff] %v1784_v51  ;;  %v1276_v40 = vand.u32 255, %v764_v6  ;;  %2297 = vst [vmem:[%s2747_s17 + $0xf78] sm:$0xff] %v1785_v42  ;;  %v1277_v19 = vand.u32 255, %v765_v30  ;;  %v1278_v18 = vand.u32 255, %v766_v11  ;;  %v769_v41 = vunpack.c.3.s8 %v3854_v7 }
 0x1ae   : > { %v1279_v43 = vand.u32 255, %v767_v8  ;;  %2298 = vst [vmem:[%s2747_s17 + $0xf80] sm:$0xff] %v1786_v37  ;;  %2299 = vst [vmem:[%s2747_s17 + $0xf88] sm:$0xff] %v1787_v20  ;;  %v1280_v35 = vand.u32 255, %v768_v53  ;;  %v770_v24 = vunpack.c.3.s8 %v3863_v22  ;;  %v771_v27 = vunpack.c.3.s8 %v3866_v1 }
 0x1af   : > { %v1788_v31 = vcvt.s32.f32 %v1276_v40  ;;  %v1789_v59 = vcvt.s32.f32 %v1277_v19  ;;  %v1790_v57 = vcvt.s32.f32 %v1278_v18  ;;  %v1281_v49 = vand.u32 255, %v769_v41 }
 0x1b0   : > { %v1791_v36 = vcvt.s32.f32 %v1279_v43  ;;  %v1792_v23 = vcvt.s32.f32 %v1280_v35  ;;  %v1282_v7 = vand.u32 255, %v770_v24  ;;  %v1283_v60 = vand.u32 255, %v771_v27 }
 0x1b1   : > { %2300 = vst [vmem:[%s2747_s17 + $0xf90] sm:$0xff] %v1788_v31  ;;  %v772_v39 = vunpack.c.3.s8 %v3873_v55  ;;  %2301 = vst [vmem:[%s2747_s17 + $0xf98] sm:$0xff] %v1789_v59  ;;  %v1793_v22 = vcvt.s32.f32 %v1281_v49  ;;  %v773_v1 = vunpack.c.3.s8 %v3880_v5  ;;  %v774_v29 = vunpack.c.3.s8 %v3883_v16 }
 0x1b2   : > { %2302 = vst [vmem:[%s2747_s17 + $0xfa0] sm:$0xff] %v1790_v57  ;;  %2303 = vst [vmem:[%s2747_s17 + $0xfa8] sm:$0xff] %v1791_v36  ;;  %v775_v34 = vunpack.c.3.s8 %v3886_v17  ;;  %v1794_v32 = vcvt.s32.f32 %v1282_v7  ;;  %v1795_v10 = vcvt.s32.f32 %v1283_v60  ;;  %v776_v55 = vunpack.c.3.s8 %v3889_v12 }
 0x1b3   : > { %2304 = vst [vmem:[%s2747_s17 + $0xfb0] sm:$0xff] %v1792_v23  ;;  %v1284_v58 = vand.u32 255, %v772_v39  ;;  %2305 = vst [vmem:[%s2747_s17 + $0xfb8] sm:$0xff] %v1793_v22  ;;  %v1285_v46 = vand.u32 255, %v773_v1  ;;  %v1286_v45 = vand.u32 255, %v774_v29  ;;  %v777_v61 = vunpack.c.3.s8 %v3894_v50 }
 0x1b4   : > { %v1287_v52 = vand.u32 255, %v775_v34  ;;  %2306 = vst [vmem:[%s2747_s17 + $0xfc0] sm:$0xff] %v1794_v32  ;;  %2307 = vst [vmem:[%s2747_s17 + $0xfc8] sm:$0xff] %v1795_v10  ;;  %v1288_v16 = vand.u32 255, %v776_v55 }
 0x1b5   : > { %v1796_v5 = vcvt.s32.f32 %v1284_v58  ;;  %v1797_v17 = vcvt.s32.f32 %v1285_v46  ;;  %v1798_v12 = vcvt.s32.f32 %v1286_v45  ;;  %v1289_v38 = vand.u32 255, %v777_v61 }
 0x1b6   : > { %v1799_v33 = vcvt.s32.f32 %v1287_v52  ;;  %v1800_v47 = vcvt.s32.f32 %v1288_v16 }
 0x1b7   : > { %2308 = vst [vmem:[%s2747_s17 + $0xfd0] sm:$0xff] %v1796_v5  ;;  %2309 = vst [vmem:[%s2747_s17 + $0xfd8] sm:$0xff] %v1797_v17  ;;  %v1801_v50 = vcvt.s32.f32 %v1289_v38 }
 0x1b8   : > { %2310 = vst [vmem:[%s2747_s17 + $0xfe0] sm:$0xff] %v1798_v12  ;;  %2311 = vst [vmem:[%s2747_s17 + $0xfe8] sm:$0xff] %v1799_v33 }
 0x1b9   : > { %2312 = vst [vmem:[%s2747_s17 + $0xff0] sm:$0xff] %v1800_v47  ;;  %2313 = vst [vmem:[%s2747_s17 + $0xff8] sm:$0xff] %v1801_v50 }
 0x1ba   : > { %2513 = shalt.err (!%p2510_p10)
}
 0x1bb   : > { %s2514_s14 = scalar_lea.hbm %s4106_s10, 65536  ;;  %s2518_s21 = scalar_lea.hbm %s4157_s1, 131072 }
 0x1bc   : > { %p2515_p0 = scmp.ne.s32.totalorder %s4106_s10, %s2514_s14  ;;  %p2519_p1 = scmp.lt.s32.totalorder %s4106_s10, %s4157_s1 }
 0x1bd   : > { %p2520_p3 = scmp.lt.s32.totalorder %s2518_s21, %s2514_s14 }
 0x1be   : > { %p2516_p2 = pnand %p2515_p0, %p4166_p12 }
 0x1bf   : > { %p2521_p6 = por %p2520_p3, %p2519_p1 }
 0x1c0   : > { %p2517_p9 = pneg %p2516_p2 }
 0x1c2   : > { %p2522_p11 = pnand %p2521_p6, %p2517_p9 }
 0x1c4   : > { %2525 = shalt.err (!%p2522_p11)
}
 0x1c5   : > { %s2570_s26 = smov 4096   ;;  %s2571_s30 = smov 256  }
 0x1c6   : > { %2424 = dma.vmem_to_hbm [thread:$0]  (%p4166_p12), %s4108_s28, 65536, %s4106_s10, %s2315_s3, %s2570_s26, %s2570_s26, %s2571_s30  }
 0x1c7 PF: > { %s2344_s25 = sand.u32 1, %s2552_s6   ;;  %p4167_p13 = scmp.ne.s32.totalorder %s4163_s19, 0 }
 0x1c8   : > { %p4168_p4 = scmp.ge.s32.totalorder %s2564_s9, 2  ;;  %s2345_s17 = scalar_lea.sflag [#allocation4], %s2344_s25 }
 0x1ca   : > { %p2431_p5 = pnand %p4168_p4, %p4167_p13 }
 0x1cc   : > { %p2432_p7 = pneg %p2431_p5 }
 0x1ce   : > { %2547 = dma.done.wait (%p2432_p7), %s2345_s17, 65536  }
 0x1cf   : > { %2549 = vsyncadd (%p2432_p7), %s2345_s17, 4294901760  ;;  %p14_p8 = scmp.ge.s32.totalorder %s2607_s12, 4   ;;  %s4169_s6 = smov %s2556_s7 }
 0x1d0   : > { %s4170_s7 = smov %s2560_s8  ;;  %s4171_s8 = smov %s2619_s15 }
 0x1d1   : > { %s4172_s9 = smov %s2607_s12  ;;  %16 = sbr.rel (!%p14_p8) target bundleno = 5 (0x5), region = 69 }
 0x1d6   :  { %2350 = vsyncpa [#allocation3], 1 }
 0x1d7   :  { %2352 = vsyncpa [#allocation3 + $0x1], 1 }
 0x1d8   :  { %2353 = vsyncpa [#allocation4], 1 }
 0x1d9   :  { %2355 = vsyncpa [#allocation4 + $0x1], 1 }

</bundles_post_ra>
